<compile_context>
chip_gen: v7x
topology: tpu7x:2x2x1
jax: 0.10.0
libtpu: 0.0.40
codegen_flags: <defaults>
</compile_context>

<pallas_src>
import functools

import numpy as np
import jax
import jax.numpy as jnp
from jax import lax
from jax.experimental import pallas as pl
from jax.experimental.pallas import tpu as pltpu

EPS = 1e-5                      # torch.nn.LayerNorm default eps
_SQRT_HALF = 0.7071067811865476


# ----------------------------- in-kernel helpers -----------------------------
def _layernorm(x, g, b):
    m = jnp.mean(x, axis=-1, keepdims=True)
    c = x - m
    v = jnp.mean(c * c, axis=-1, keepdims=True)
    return c * lax.rsqrt(v + EPS) * g + b


def _erf_approx(z):
    # Abramowitz & Stegun 7.1.26, |err| < 1.5e-7 -> exact-erf GELU in f32.
    a1, a2, a3, a4, a5 = (0.254829592, -0.284496736, 1.421413741,
                          -1.453152027, 1.061405429)
    p = 0.3275911
    sign = jnp.where(z >= 0, 1.0, -1.0).astype(z.dtype)
    az = jnp.abs(z)
    t = 1.0 / (1.0 + p * az)
    poly = ((((a5 * t + a4) * t + a3) * t + a2) * t + a1) * t
    return sign * (1.0 - poly * jnp.exp(-az * az))


def _gelu_exact(x):
    return 0.5 * x * (1.0 + _erf_approx(x * _SQRT_HALF))


def _bf16(x):
    return x.astype(jnp.bfloat16)


def _full_spec(shape):
    n = len(shape)
    return pl.BlockSpec(tuple(shape), lambda b, n=n: (0,) * n)


# ------------------------------ fused ViT kernel ------------------------------
def _vit_kernel(patches_ref, cls_ref,
                pg1_ref, pb1_ref, pw_ref, pbl_ref, pg2_ref, pb2_ref,
                sel_ref,
                ag_ref, ab_ref, wqk_ref, uniq_ref, wout_ref, bout_ref,
                fg_ref, fb_ref, w1_ref, b1_ref, w2_ref, b2_ref,
                hg_ref, hb_ref, hw_ref, hbias_ref,
                o_ref, *, heads, dim_head):
    depth = wqk_ref.shape[0]
    U = uniq_ref.shape[1]                      # number of unique rel-pos weights
    inner = heads * dim_head
    scale = float(dim_head) ** -0.5

    # ---------------- patch embedding: LN -> Linear -> LN ----------------
    p = patches_ref[0]                                         # (n_p, patch_dim)
    pn = _layernorm(p, pg1_ref[...], pb1_ref[...])
    emb = jnp.dot(_bf16(pn), pw_ref[...],
                  preferred_element_type=jnp.float32) + pbl_ref[...]
    emb = _layernorm(emb, pg2_ref[...], pb2_ref[...])          # (n_p, dim)

    # ---------------- prepend cls token (emb dropout p=0 -> identity) ----
    x = jnp.concatenate([cls_ref[...], emb], axis=0)           # (N, dim) f32
    N = x.shape[0]
    dim = x.shape[1]
    sel = sel_ref[...]                                         # (N, U*N) f32

    for l in range(depth):
        # ========================= attention =========================
        xn = _layernorm(x, ag_ref[l], ab_ref[l])               # (N, dim)
        xn_b = _bf16(xn)
        qk = jnp.dot(xn_b, wqk_ref[l],
                     preferred_element_type=jnp.float32)       # (N, 2*inner)
        q = qk[:, :inner]
        k = qk[:, inner:]

        # Relative-position value table: P[u, j, :] = xn[j] @ unique[u]
        # (one batched dot_general over the U shared weights; the (N,N,dim,inner)
        #  gather of the PyTorch module is never materialized).
        xu = jnp.broadcast_to(xn_b[None, :, :], (U, N, dim))   # (U, N, dim)
        P = lax.dot_general(xu, uniq_ref[l],
                            (((2,), (1,)), ((0,), (0,))),
                            preferred_element_type=jnp.float32)  # (U, N, inner)
        Pr = _bf16(P.reshape(U * N, inner))                    # rows ordered (u, j)

        outs = []
        for h in range(heads):
            sl = slice(h * dim_head, (h + 1) * dim_head)
            qh = q[:, sl] * scale
            kh = k[:, sl]
            dots = lax.dot_general(qh, kh, (((1,), (1,)), ((), ())),
                                   preferred_element_type=jnp.float32)  # (N, N)
            m = jnp.max(dots, axis=-1, keepdims=True)
            e = jnp.exp(dots - m)
            attn = e * pl.reciprocal(jnp.sum(e, axis=-1, keepdims=True),
                                     approx=True)              # (N_i, N_j)
            # Scatter attn into the (u, j) column layout and contract with P:
            #   C[i, u*N + j] = attn[i, j] * [index_map[i, j] == u]
            #   out_h[i, k]   = sum_{u,j} C[i, u*N+j] * P[u, j, k]
            #                 = sum_j attn[i, j] * (xn[j] @ unique[index_map[i,j]])[k]
            C = jnp.concatenate([attn] * U, axis=1) * sel      # (N, U*N)
            full = jnp.dot(_bf16(C), Pr,
                           preferred_element_type=jnp.float32)  # (N, inner)
            outs.append(full[:, sl])                           # head-h columns
        out_inner = jnp.concatenate(outs, axis=-1)             # (N, inner)

        y = jnp.dot(_bf16(out_inner), wout_ref[l],
                    preferred_element_type=jnp.float32) + bout_ref[l]
        x = y + x                                              # residual

        # ========================= feed-forward ======================
        xn2 = _layernorm(x, fg_ref[l], fb_ref[l])
        hmid = jnp.dot(_bf16(xn2), w1_ref[l],
                       preferred_element_type=jnp.float32) + b1_ref[l]
        hmid = _gelu_exact(hmid)
        y2 = jnp.dot(_bf16(hmid), w2_ref[l],
                     preferred_element_type=jnp.float32) + b2_ref[l]
        x = y2 + x                                             # residual

    # ------------- final LayerNorm (per-token, so cls-row-only is exact) -------
    cls_row = x[0:1, :]
    cn = _layernorm(cls_row, hg_ref[...], hb_ref[...])
    o_ref[0] = jnp.dot(_bf16(cn), hw_ref[...],
                       preferred_element_type=jnp.float32) + hbias_ref[...]


# ------------------------------ forward wrapper -------------------------------
def vit_forward(img, params, *, patch_size, heads, dim_head):
    B, C, H, W = img.shape
    ph = pw = patch_size
    h, w = H // ph, W // pw

    # rearrange 'b c (h p1) (w p2) -> b (h w) (p1 p2 c)'   (glue, plain JAX)
    patches = img.reshape(B, C, h, ph, w, pw)
    patches = jnp.transpose(patches, (0, 2, 4, 3, 5, 1))
    patches = patches.reshape(B, h * w, ph * pw * C)

    pp, at, ff, hp = params["patch"], params["attn"], params["ff"], params["head"]
    n_p = h * w
    patch_dim = patches.shape[-1]
    C_pad = hp["w"].shape[1]

    kern = functools.partial(_vit_kernel, heads=heads, dim_head=dim_head)

    inputs = [
        patches, params["cls"],
        pp["g1"], pp["b1"], pp["w"], pp["bl"], pp["g2"], pp["b2"],
        params["sel"],
        at["g"], at["b"], at["wqk"], at["uniq"], at["wout"], at["bout"],
        ff["g"], ff["b"], ff["w1"], ff["b1"], ff["w2"], ff["b2"],
        hp["g"], hp["b"], hp["w"], hp["bias"],
    ]
    in_specs = ([pl.BlockSpec((1, n_p, patch_dim), lambda b: (b, 0, 0))]
                + [_full_spec(a.shape) for a in inputs[1:]])

    out = pl.pallas_call(
        kern,
        out_shape=jax.ShapeDtypeStruct((B, 1, C_pad), jnp.float32),
        grid=(B,),
        in_specs=in_specs,
        out_specs=pl.BlockSpec((1, 1, C_pad), lambda b: (b, 0, 0)),
        compiler_params=pltpu.CompilerParams(
            dimension_semantics=("parallel",)),
    )(*inputs)
    return out[:, 0, :params["num_classes"]]


# ------------------------------ parameters ------------------------------------
def init_params(key, *, image_size, patch_size, channels, dim, depth, heads,
                dim_head, mlp_dim, num_classes):
    h = image_size // patch_size
    w = image_size // patch_size
    n_p = h * w
    N = n_p + 1
    patch_dim = channels * patch_size * patch_size
    inner = heads * dim_head
    num_img_weights = (2 * h - 1) * (2 * w - 1)
    U = num_img_weights + 3
    C_pad = ((num_classes + 127) // 128) * 128          # lane-dense head output

    def nrm(k, shape, scale=0.02):
        return scale * jax.random.normal(k, shape, dtype=jnp.float32)

    keys = jax.random.split(key, 4 + depth)

    # SharedParameterRelCls index map (exactly as the PyTorch module builds it)
    idx_cls = num_img_weights
    idx_cls_in = num_img_weights + 1
    idx_cls_out = num_img_weights + 2
    index_map = [[idx_cls] + [idx_cls_in] * (h * w)]
    for xx in range(h):
        for yy in range(w):
            tmp = [idx_cls_out]
            for i in range(h):
                for j in range(w):
                    dx = xx - i + h - 1
                    dy = yy - j + w - 1
                    tmp.append(dx * (2 * w - 1) + dy)
            index_map.append(tmp)
    index_map = np.asarray(index_map, dtype=np.int32)          # (N, N)

    # Selection matrix used inside the kernel: sel[i, u*N + j] = [index_map[i,j]==u]
    sel = (index_map[:, None, :] ==
           np.arange(U, dtype=np.int32)[None, :, None])        # (N, U, N)
    sel = sel.reshape(N, U * N).astype(np.float32)

    lkeys = [jax.random.split(keys[4 + l], 6) for l in range(depth)]

    def stack(fn):
        return jnp.stack([fn(l) for l in range(depth)], axis=0)

    params = {
        "num_classes": num_classes,
        "cls": nrm(keys[1], (1, dim), scale=1.0),
        "sel": jnp.asarray(sel),
        "patch": {
            "g1": jnp.ones((1, patch_dim), jnp.float32),
            "b1": jnp.zeros((1, patch_dim), jnp.float32),
            "w": nrm(keys[0], (patch_dim, dim)).astype(jnp.bfloat16),
            "bl": jnp.zeros((1, dim), jnp.float32),
            "g2": jnp.ones((1, dim), jnp.float32),
            "b2": jnp.zeros((1, dim), jnp.float32),
        },
        "attn": {
            "g": jnp.ones((depth, 1, dim), jnp.float32),
            "b": jnp.zeros((depth, 1, dim), jnp.float32),
            "wqk": stack(lambda l: nrm(lkeys[l][1], (dim, 2 * inner))
                         ).astype(jnp.bfloat16),
            # shared relative-position weight table (never gathered to N x N)
            "uniq": stack(lambda l: nrm(lkeys[l][0], (U, dim, inner))
                          ).astype(jnp.bfloat16),
            "wout": stack(lambda l: nrm(lkeys[l][2], (inner, dim))
                          ).astype(jnp.bfloat16),
            "bout": jnp.zeros((depth, 1, dim), jnp.float32),
        },
        "ff": {
            "g": jnp.ones((depth, 1, dim), jnp.float32),
            "b": jnp.zeros((depth, 1, dim), jnp.float32),
            "w1": stack(lambda l: nrm(lkeys[l][3], (dim, mlp_dim))
                        ).astype(jnp.bfloat16),
            "b1": jnp.zeros((depth, 1, mlp_dim), jnp.float32),
            "w2": stack(lambda l: nrm(lkeys[l][4], (mlp_dim, dim))
                        ).astype(jnp.bfloat16),
            "b2": jnp.zeros((depth, 1, dim), jnp.float32),
        },
        "head": {
            "g": jnp.ones((1, dim), jnp.float32),
            "b": jnp.zeros((1, dim), jnp.float32),
            "w": jnp.zeros((dim, C_pad), jnp.float32)
                   .at[:, :num_classes].set(nrm(keys[2], (dim, num_classes)))
                   .astype(jnp.bfloat16),
            "bias": jnp.zeros((1, C_pad), jnp.float32),
        },
    }
    return params


# ------------------------------ main -------------------------------------------
if __name__ == "__main__":
    image_size, patch_size, channels = 16, 8, 4
    dim, depth, heads, dim_head = 32, 2, 2, 16
    mlp_dim, num_classes = 64, 10
    B = 2

    key = jax.random.PRNGKey(0)
    kp, kx = jax.random.split(key)
    params = init_params(kp, image_size=image_size, patch_size=patch_size,
                         channels=channels, dim=dim, depth=depth, heads=heads,
                         dim_head=dim_head, mlp_dim=mlp_dim,
                         num_classes=num_classes)
    img = jax.random.normal(kx, (B, channels, image_size, image_size),
                            dtype=jnp.float32)

    logits = vit_forward(img, params, patch_size=patch_size, heads=heads,
                         dim_head=dim_head)
    jax.block_until_ready(logits)
    assert logits.shape == (B, num_classes)
    print("KERNEL_OK")
</pallas_src>

<mosaic_0001>
module attributes {stable_mosaic.version = 11 : i64} {
  func.func @_vit_kernel(%arg0: i32, %arg1: memref<1x4x256xf32, #tpu.memory_space<vmem>>, %arg2: memref<1x32xf32, #tpu.memory_space<vmem>>, %arg3: memref<1x256xf32, #tpu.memory_space<vmem>>, %arg4: memref<1x256xf32, #tpu.memory_space<vmem>>, %arg5: memref<256x32xbf16, #tpu.memory_space<vmem>>, %arg6: memref<1x32xf32, #tpu.memory_space<vmem>>, %arg7: memref<1x32xf32, #tpu.memory_space<vmem>>, %arg8: memref<1x32xf32, #tpu.memory_space<vmem>>, %arg9: memref<5x60xf32, #tpu.memory_space<vmem>>, %arg10: memref<2x1x32xf32, #tpu.memory_space<vmem>>, %arg11: memref<2x1x32xf32, #tpu.memory_space<vmem>>, %arg12: memref<2x32x64xbf16, #tpu.memory_space<vmem>>, %arg13: memref<2x12x32x32xbf16, #tpu.memory_space<vmem>>, %arg14: memref<2x32x32xbf16, #tpu.memory_space<vmem>>, %arg15: memref<2x1x32xf32, #tpu.memory_space<vmem>>, %arg16: memref<2x1x32xf32, #tpu.memory_space<vmem>>, %arg17: memref<2x1x32xf32, #tpu.memory_space<vmem>>, %arg18: memref<2x32x64xbf16, #tpu.memory_space<vmem>>, %arg19: memref<2x1x64xf32, #tpu.memory_space<vmem>>, %arg20: memref<2x64x32xbf16, #tpu.memory_space<vmem>>, %arg21: memref<2x1x32xf32, #tpu.memory_space<vmem>>, %arg22: memref<1x32xf32, #tpu.memory_space<vmem>>, %arg23: memref<1x32xf32, #tpu.memory_space<vmem>>, %arg24: memref<32x128xbf16, #tpu.memory_space<vmem>>, %arg25: memref<1x128xf32, #tpu.memory_space<vmem>>, %arg26: memref<1x1x128xf32, #tpu.memory_space<vmem>>) attributes {dimension_semantics = [#tpu.dimension_semantics<parallel>], iteration_bounds = array<i64: 2>, scalar_prefetch = 0 : i64, scratch_operands = 0 : i64, tpu.core_type = #tpu.core_type<tc>, window_params = [{transform_indices = @transform_0, window_bounds = array<i64: 1, 4, 256>}, {pipeline_mode = #tpu.pipeline_mode<synchronous>, transform_indices = @transform_1, window_bounds = array<i64: 1, 32>}, {pipeline_mode = #tpu.pipeline_mode<synchronous>, transform_indices = @transform_2, window_bounds = array<i64: 1, 256>}, {pipeline_mode = #tpu.pipeline_mode<synchronous>, transform_indices = @transform_3, window_bounds = array<i64: 1, 256>}, {pipeline_mode = #tpu.pipeline_mode<synchronous>, transform_indices = @transform_4, window_bounds = array<i64: 256, 32>}, {pipeline_mode = #tpu.pipeline_mode<synchronous>, transform_indices = @transform_5, window_bounds = array<i64: 1, 32>}, {pipeline_mode = #tpu.pipeline_mode<synchronous>, transform_indices = @transform_6, window_bounds = array<i64: 1, 32>}, {pipeline_mode = #tpu.pipeline_mode<synchronous>, transform_indices = @transform_7, window_bounds = array<i64: 1, 32>}, {pipeline_mode = #tpu.pipeline_mode<synchronous>, transform_indices = @transform_8, window_bounds = array<i64: 5, 60>}, {pipeline_mode = #tpu.pipeline_mode<synchronous>, transform_indices = @transform_9, window_bounds = array<i64: 2, 1, 32>}, {pipeline_mode = #tpu.pipeline_mode<synchronous>, transform_indices = @transform_10, window_bounds = array<i64: 2, 1, 32>}, {pipeline_mode = #tpu.pipeline_mode<synchronous>, transform_indices = @transform_11, window_bounds = array<i64: 2, 32, 64>}, {pipeline_mode = #tpu.pipeline_mode<synchronous>, transform_indices = @transform_12, window_bounds = array<i64: 2, 12, 32, 32>}, {pipeline_mode = #tpu.pipeline_mode<synchronous>, transform_indices = @transform_13, window_bounds = array<i64: 2, 32, 32>}, {pipeline_mode = #tpu.pipeline_mode<synchronous>, transform_indices = @transform_14, window_bounds = array<i64: 2, 1, 32>}, {pipeline_mode = #tpu.pipeline_mode<synchronous>, transform_indices = @transform_15, window_bounds = array<i64: 2, 1, 32>}, {pipeline_mode = #tpu.pipeline_mode<synchronous>, transform_indices = @transform_16, window_bounds = array<i64: 2, 1, 32>}, {pipeline_mode = #tpu.pipeline_mode<synchronous>, transform_indices = @transform_17, window_bounds = array<i64: 2, 32, 64>}, {pipeline_mode = #tpu.pipeline_mode<synchronous>, transform_indices = @transform_18, window_bounds = array<i64: 2, 1, 64>}, {pipeline_mode = #tpu.pipeline_mode<synchronous>, transform_indices = @transform_19, window_bounds = array<i64: 2, 64, 32>}, {pipeline_mode = #tpu.pipeline_mode<synchronous>, transform_indices = @transform_20, window_bounds = array<i64: 2, 1, 32>}, {pipeline_mode = #tpu.pipeline_mode<synchronous>, transform_indices = @transform_21, window_bounds = array<i64: 1, 32>}, {pipeline_mode = #tpu.pipeline_mode<synchronous>, transform_indices = @transform_22, window_bounds = array<i64: 1, 32>}, {pipeline_mode = #tpu.pipeline_mode<synchronous>, transform_indices = @transform_23, window_bounds = array<i64: 32, 128>}, {pipeline_mode = #tpu.pipeline_mode<synchronous>, transform_indices = @transform_24, window_bounds = array<i64: 1, 128>}, {transform_indices = @transform_25, window_bounds = array<i64: 1, 1, 128>}]} {
    %c0 = arith.constant 0 : index
    %c0_0 = arith.constant 0 : index
    %c0_1 = arith.constant 0 : index
    %0 = vector.load %arg1[%c0, %c0_0, %c0_1] : memref<1x4x256xf32, #tpu.memory_space<vmem>>, vector<1x4x256xf32>
    %1 = vector.shape_cast %0 : vector<1x4x256xf32> to vector<4x256xf32>
    %c0_2 = arith.constant 0 : index
    %c0_3 = arith.constant 0 : index
    %2 = vector.load %arg3[%c0_2, %c0_3] : memref<1x256xf32, #tpu.memory_space<vmem>>, vector<1x256xf32>
    %c0_4 = arith.constant 0 : index
    %c0_5 = arith.constant 0 : index
    %3 = vector.load %arg4[%c0_4, %c0_5] : memref<1x256xf32, #tpu.memory_space<vmem>>, vector<1x256xf32>
    %cst = arith.constant dense<0.000000e+00> : vector<4xf32>
    %4 = vector.multi_reduction <add>, %1, %cst [1] : vector<4x256xf32> to vector<4xf32>
    %5 = vector.shape_cast %4 : vector<4xf32> to vector<4x1xf32>
    %cst_6 = arith.constant 2.560000e+02 : f32
    %6 = vector.broadcast %cst_6 : f32 to vector<4x1xf32>
    %7 = arith.divf %5, %6 : vector<4x1xf32>
    %8 = vector.broadcast %7 : vector<4x1xf32> to vector<4x256xf32>
    %9 = arith.subf %1, %8 : vector<4x256xf32>
    %10 = arith.mulf %9, %9 : vector<4x256xf32>
    %cst_7 = arith.constant dense<0.000000e+00> : vector<4xf32>
    %11 = vector.multi_reduction <add>, %10, %cst_7 [1] : vector<4x256xf32> to vector<4xf32>
    %12 = vector.shape_cast %11 : vector<4xf32> to vector<4x1xf32>
    %cst_8 = arith.constant 2.560000e+02 : f32
    %13 = vector.broadcast %cst_8 : f32 to vector<4x1xf32>
    %14 = arith.divf %12, %13 : vector<4x1xf32>
    %cst_9 = arith.constant 9.99999974E-6 : f32
    %15 = vector.broadcast %cst_9 : f32 to vector<4x1xf32>
    %16 = arith.addf %14, %15 : vector<4x1xf32>
    %17 = math.rsqrt %16 : vector<4x1xf32>
    %18 = vector.broadcast %17 : vector<4x1xf32> to vector<4x256xf32>
    %19 = arith.mulf %9, %18 : vector<4x256xf32>
    %20 = vector.broadcast %2 : vector<1x256xf32> to vector<4x256xf32>
    %21 = arith.mulf %19, %20 : vector<4x256xf32>
    %22 = vector.broadcast %3 : vector<1x256xf32> to vector<4x256xf32>
    %23 = arith.addf %21, %22 : vector<4x256xf32>
    %24 = arith.truncf %23 : vector<4x256xf32> to vector<4x256xbf16>
    %c0_10 = arith.constant 0 : index
    %c0_11 = arith.constant 0 : index
    %25 = vector.load %arg5[%c0_10, %c0_11] : memref<256x32xbf16, #tpu.memory_space<vmem>>, vector<256x32xbf16>
    %cst_12 = arith.constant dense<0.000000e+00> : vector<4x32xf32>
    %26 = tpu.matmul %24, %25, %cst_12 {dimension_numbers = #tpu.dot_dimension_numbers<[1], [0], [0], [1], [0, 0, 1, 1], [], []>} : vector<4x256xbf16>, vector<256x32xbf16>, vector<4x32xf32> -> vector<4x32xf32>
    %c0_13 = arith.constant 0 : index
    %c0_14 = arith.constant 0 : index
    %27 = vector.load %arg6[%c0_13, %c0_14] : memref<1x32xf32, #tpu.memory_space<vmem>>, vector<1x32xf32>
    %28 = vector.broadcast %27 : vector<1x32xf32> to vector<4x32xf32>
    %29 = arith.addf %26, %28 : vector<4x32xf32>
    %c0_15 = arith.constant 0 : index
    %c0_16 = arith.constant 0 : index
    %30 = vector.load %arg7[%c0_15, %c0_16] : memref<1x32xf32, #tpu.memory_space<vmem>>, vector<1x32xf32>
    %c0_17 = arith.constant 0 : index
    %c0_18 = arith.constant 0 : index
    %31 = vector.load %arg8[%c0_17, %c0_18] : memref<1x32xf32, #tpu.memory_space<vmem>>, vector<1x32xf32>
    %cst_19 = arith.constant dense<0.000000e+00> : vector<4xf32>
    %32 = vector.multi_reduction <add>, %29, %cst_19 [1] : vector<4x32xf32> to vector<4xf32>
    %33 = vector.shape_cast %32 : vector<4xf32> to vector<4x1xf32>
    %cst_20 = arith.constant 3.200000e+01 : f32
    %34 = vector.broadcast %cst_20 : f32 to vector<4x1xf32>
    %35 = arith.divf %33, %34 : vector<4x1xf32>
    %36 = vector.broadcast %35 : vector<4x1xf32> to vector<4x32xf32>
    %37 = arith.subf %29, %36 : vector<4x32xf32>
    %38 = arith.mulf %37, %37 : vector<4x32xf32>
    %cst_21 = arith.constant dense<0.000000e+00> : vector<4xf32>
    %39 = vector.multi_reduction <add>, %38, %cst_21 [1] : vector<4x32xf32> to vector<4xf32>
    %40 = vector.shape_cast %39 : vector<4xf32> to vector<4x1xf32>
    %cst_22 = arith.constant 3.200000e+01 : f32
    %41 = vector.broadcast %cst_22 : f32 to vector<4x1xf32>
    %42 = arith.divf %40, %41 : vector<4x1xf32>
    %cst_23 = arith.constant 9.99999974E-6 : f32
    %43 = vector.broadcast %cst_23 : f32 to vector<4x1xf32>
    %44 = arith.addf %42, %43 : vector<4x1xf32>
    %45 = math.rsqrt %44 : vector<4x1xf32>
    %46 = vector.broadcast %45 : vector<4x1xf32> to vector<4x32xf32>
    %47 = arith.mulf %37, %46 : vector<4x32xf32>
    %48 = vector.broadcast %30 : vector<1x32xf32> to vector<4x32xf32>
    %49 = arith.mulf %47, %48 : vector<4x32xf32>
    %50 = vector.broadcast %31 : vector<1x32xf32> to vector<4x32xf32>
    %51 = arith.addf %49, %50 : vector<4x32xf32>
    %c0_24 = arith.constant 0 : index
    %c0_25 = arith.constant 0 : index
    %52 = vector.load %arg2[%c0_24, %c0_25] : memref<1x32xf32, #tpu.memory_space<vmem>>, vector<1x32xf32>
    %53 = tpu.concatenate %52, %51 in 0 : vector<1x32xf32>, vector<4x32xf32> -> vector<5x32xf32>
    %c0_26 = arith.constant 0 : index
    %c0_27 = arith.constant 0 : index
    %54 = vector.load %arg9[%c0_26, %c0_27] : memref<5x60xf32, #tpu.memory_space<vmem>>, vector<5x60xf32>
    %c0_28 = arith.constant 0 : index
    %c0_29 = arith.constant 0 : index
    %c0_30 = arith.constant 0 : index
    %55 = vector.load %arg10[%c0_28, %c0_29, %c0_30] : memref<2x1x32xf32, #tpu.memory_space<vmem>>, vector<1x1x32xf32>
    %56 = vector.shape_cast %55 : vector<1x1x32xf32> to vector<1x32xf32>
    %c0_31 = arith.constant 0 : index
    %c0_32 = arith.constant 0 : index
    %c0_33 = arith.constant 0 : index
    %57 = vector.load %arg11[%c0_31, %c0_32, %c0_33] : memref<2x1x32xf32, #tpu.memory_space<vmem>>, vector<1x1x32xf32>
    %58 = vector.shape_cast %57 : vector<1x1x32xf32> to vector<1x32xf32>
    %cst_34 = arith.constant dense<0.000000e+00> : vector<5xf32>
    %59 = vector.multi_reduction <add>, %53, %cst_34 [1] : vector<5x32xf32> to vector<5xf32>
    %60 = vector.shape_cast %59 : vector<5xf32> to vector<5x1xf32>
    %cst_35 = arith.constant 3.200000e+01 : f32
    %61 = vector.broadcast %cst_35 : f32 to vector<5x1xf32>
    %62 = arith.divf %60, %61 : vector<5x1xf32>
    %63 = vector.broadcast %62 : vector<5x1xf32> to vector<5x32xf32>
    %64 = arith.subf %53, %63 : vector<5x32xf32>
    %65 = arith.mulf %64, %64 : vector<5x32xf32>
    %cst_36 = arith.constant dense<0.000000e+00> : vector<5xf32>
    %66 = vector.multi_reduction <add>, %65, %cst_36 [1] : vector<5x32xf32> to vector<5xf32>
    %67 = vector.shape_cast %66 : vector<5xf32> to vector<5x1xf32>
    %cst_37 = arith.constant 3.200000e+01 : f32
    %68 = vector.broadcast %cst_37 : f32 to vector<5x1xf32>
    %69 = arith.divf %67, %68 : vector<5x1xf32>
    %cst_38 = arith.constant 9.99999974E-6 : f32
    %70 = vector.broadcast %cst_38 : f32 to vector<5x1xf32>
    %71 = arith.addf %69, %70 : vector<5x1xf32>
    %72 = math.rsqrt %71 : vector<5x1xf32>
    %73 = vector.broadcast %72 : vector<5x1xf32> to vector<5x32xf32>
    %74 = arith.mulf %64, %73 : vector<5x32xf32>
    %75 = vector.broadcast %56 : vector<1x32xf32> to vector<5x32xf32>
    %76 = arith.mulf %74, %75 : vector<5x32xf32>
    %77 = vector.broadcast %58 : vector<1x32xf32> to vector<5x32xf32>
    %78 = arith.addf %76, %77 : vector<5x32xf32>
    %79 = arith.truncf %78 : vector<5x32xf32> to vector<5x32xbf16>
    %c0_39 = arith.constant 0 : index
    %c0_40 = arith.constant 0 : index
    %c0_41 = arith.constant 0 : index
    %80 = vector.load %arg12[%c0_39, %c0_40, %c0_41] : memref<2x32x64xbf16, #tpu.memory_space<vmem>>, vector<1x32x64xbf16>
    %81 = vector.shape_cast %80 : vector<1x32x64xbf16> to vector<32x64xbf16>
    %cst_42 = arith.constant dense<0.000000e+00> : vector<5x64xf32>
    %82 = tpu.matmul %79, %81, %cst_42 {dimension_numbers = #tpu.dot_dimension_numbers<[1], [0], [0], [1], [0, 0, 1, 1], [], []>} : vector<5x32xbf16>, vector<32x64xbf16>, vector<5x64xf32> -> vector<5x64xf32>
    %83 = vector.extract_strided_slice %82 {offsets = [0, 0], sizes = [5, 32], strides = [1, 1]} : vector<5x64xf32> to vector<5x32xf32>
    %84 = vector.extract_strided_slice %82 {offsets = [0, 32], sizes = [5, 32], strides = [1, 1]} : vector<5x64xf32> to vector<5x32xf32>
    %85 = vector.shape_cast %79 : vector<5x32xbf16> to vector<1x5x32xbf16>
    %86 = vector.shape_cast %85 : vector<1x5x32xbf16> to vector<1x5x32xbf16>
    %87 = vector.broadcast %86 : vector<1x5x32xbf16> to vector<12x5x32xbf16>
    %c0_43 = arith.constant 0 : index
    %c0_44 = arith.constant 0 : index
    %c0_45 = arith.constant 0 : index
    %c0_46 = arith.constant 0 : index
    %88 = vector.load %arg13[%c0_43, %c0_44, %c0_45, %c0_46] : memref<2x12x32x32xbf16, #tpu.memory_space<vmem>>, vector<1x12x32x32xbf16>
    %89 = vector.shape_cast %88 : vector<1x12x32x32xbf16> to vector<12x32x32xbf16>
    %cst_47 = arith.constant dense<0.000000e+00> : vector<12x5x32xf32>
    %90 = tpu.matmul %87, %89, %cst_47 {dimension_numbers = #tpu.dot_dimension_numbers<[2], [1], [1], [2], [0, 0, 0, 1, 1, 2], [0], [0]>} : vector<12x5x32xbf16>, vector<12x32x32xbf16>, vector<12x5x32xf32> -> vector<12x5x32xf32>
    %91 = vector.shape_cast %90 : vector<12x5x32xf32> to vector<60x32xf32>
    %92 = arith.truncf %91 : vector<60x32xf32> to vector<60x32xbf16>
    %93 = vector.extract_strided_slice %83 {offsets = [0, 0], sizes = [5, 16], strides = [1, 1]} : vector<5x32xf32> to vector<5x16xf32>
    %cst_48 = arith.constant 2.500000e-01 : f32
    %94 = vector.broadcast %cst_48 : f32 to vector<5x16xf32>
    %95 = arith.mulf %93, %94 : vector<5x16xf32>
    %96 = vector.extract_strided_slice %84 {offsets = [0, 0], sizes = [5, 16], strides = [1, 1]} : vector<5x32xf32> to vector<5x16xf32>
    %cst_49 = arith.constant dense<0.000000e+00> : vector<5x5xf32>
    %97 = tpu.matmul %95, %96, %cst_49 {dimension_numbers = #tpu.dot_dimension_numbers<[1], [1], [0], [0], [0, 0, 1, 0], [], []>} : vector<5x16xf32>, vector<5x16xf32>, vector<5x5xf32> -> vector<5x5xf32>
    %cst_50 = arith.constant dense<0xFF800000> : vector<5xf32>
    %98 = vector.multi_reduction <maximumf>, %97, %cst_50 [1] : vector<5x5xf32> to vector<5xf32>
    %99 = vector.shape_cast %98 : vector<5xf32> to vector<5x1xf32>
    %100 = vector.broadcast %99 : vector<5x1xf32> to vector<5x5xf32>
    %101 = arith.subf %97, %100 : vector<5x5xf32>
    %102 = math.exp %101 : vector<5x5xf32>
    %cst_51 = arith.constant dense<0.000000e+00> : vector<5xf32>
    %103 = vector.multi_reduction <add>, %102, %cst_51 [1] : vector<5x5xf32> to vector<5xf32>
    %104 = vector.shape_cast %103 : vector<5xf32> to vector<5x1xf32>
    %105 = tpu.reciprocal %104 {approx = true} : vector<5x1xf32> -> vector<5x1xf32>
    %106 = vector.broadcast %105 : vector<5x1xf32> to vector<5x5xf32>
    %107 = arith.mulf %102, %106 : vector<5x5xf32>
    %108 = tpu.concatenate %107, %107, %107, %107, %107, %107, %107, %107, %107, %107, %107, %107 in 1 : vector<5x5xf32>, vector<5x5xf32>, vector<5x5xf32>, vector<5x5xf32>, vector<5x5xf32>, vector<5x5xf32>, vector<5x5xf32>, vector<5x5xf32>, vector<5x5xf32>, vector<5x5xf32>, vector<5x5xf32>, vector<5x5xf32> -> vector<5x60xf32>
    %109 = arith.mulf %108, %54 : vector<5x60xf32>
    %110 = arith.truncf %109 : vector<5x60xf32> to vector<5x60xbf16>
    %cst_52 = arith.constant dense<0.000000e+00> : vector<5x32xf32>
    %111 = tpu.matmul %110, %92, %cst_52 {dimension_numbers = #tpu.dot_dimension_numbers<[1], [0], [0], [1], [0, 0, 1, 1], [], []>} : vector<5x60xbf16>, vector<60x32xbf16>, vector<5x32xf32> -> vector<5x32xf32>
    %112 = vector.extract_strided_slice %111 {offsets = [0, 0], sizes = [5, 16], strides = [1, 1]} : vector<5x32xf32> to vector<5x16xf32>
    %113 = vector.extract_strided_slice %83 {offsets = [0, 16], sizes = [5, 16], strides = [1, 1]} : vector<5x32xf32> to vector<5x16xf32>
    %cst_53 = arith.constant 2.500000e-01 : f32
    %114 = vector.broadcast %cst_53 : f32 to vector<5x16xf32>
    %115 = arith.mulf %113, %114 : vector<5x16xf32>
    %116 = vector.extract_strided_slice %84 {offsets = [0, 16], sizes = [5, 16], strides = [1, 1]} : vector<5x32xf32> to vector<5x16xf32>
    %cst_54 = arith.constant dense<0.000000e+00> : vector<5x5xf32>
    %117 = tpu.matmul %115, %116, %cst_54 {dimension_numbers = #tpu.dot_dimension_numbers<[1], [1], [0], [0], [0, 0, 1, 0], [], []>} : vector<5x16xf32>, vector<5x16xf32>, vector<5x5xf32> -> vector<5x5xf32>
    %cst_55 = arith.constant dense<0xFF800000> : vector<5xf32>
    %118 = vector.multi_reduction <maximumf>, %117, %cst_55 [1] : vector<5x5xf32> to vector<5xf32>
    %119 = vector.shape_cast %118 : vector<5xf32> to vector<5x1xf32>
    %120 = vector.broadcast %119 : vector<5x1xf32> to vector<5x5xf32>
    %121 = arith.subf %117, %120 : vector<5x5xf32>
    %122 = math.exp %121 : vector<5x5xf32>
    %cst_56 = arith.constant dense<0.000000e+00> : vector<5xf32>
    %123 = vector.multi_reduction <add>, %122, %cst_56 [1] : vector<5x5xf32> to vector<5xf32>
    %124 = vector.shape_cast %123 : vector<5xf32> to vector<5x1xf32>
    %125 = tpu.reciprocal %124 {approx = true} : vector<5x1xf32> -> vector<5x1xf32>
    %126 = vector.broadcast %125 : vector<5x1xf32> to vector<5x5xf32>
    %127 = arith.mulf %122, %126 : vector<5x5xf32>
    %128 = tpu.concatenate %127, %127, %127, %127, %127, %127, %127, %127, %127, %127, %127, %127 in 1 : vector<5x5xf32>, vector<5x5xf32>, vector<5x5xf32>, vector<5x5xf32>, vector<5x5xf32>, vector<5x5xf32>, vector<5x5xf32>, vector<5x5xf32>, vector<5x5xf32>, vector<5x5xf32>, vector<5x5xf32>, vector<5x5xf32> -> vector<5x60xf32>
    %129 = arith.mulf %128, %54 : vector<5x60xf32>
    %130 = arith.truncf %129 : vector<5x60xf32> to vector<5x60xbf16>
    %cst_57 = arith.constant dense<0.000000e+00> : vector<5x32xf32>
    %131 = tpu.matmul %130, %92, %cst_57 {dimension_numbers = #tpu.dot_dimension_numbers<[1], [0], [0], [1], [0, 0, 1, 1], [], []>} : vector<5x60xbf16>, vector<60x32xbf16>, vector<5x32xf32> -> vector<5x32xf32>
    %132 = vector.extract_strided_slice %131 {offsets = [0, 16], sizes = [5, 16], strides = [1, 1]} : vector<5x32xf32> to vector<5x16xf32>
    %133 = tpu.concatenate %112, %132 in 1 : vector<5x16xf32>, vector<5x16xf32> -> vector<5x32xf32>
    %134 = arith.truncf %133 : vector<5x32xf32> to vector<5x32xbf16>
    %c0_58 = arith.constant 0 : index
    %c0_59 = arith.constant 0 : index
    %c0_60 = arith.constant 0 : index
    %135 = vector.load %arg14[%c0_58, %c0_59, %c0_60] : memref<2x32x32xbf16, #tpu.memory_space<vmem>>, vector<1x32x32xbf16>
    %136 = vector.shape_cast %135 : vector<1x32x32xbf16> to vector<32x32xbf16>
    %cst_61 = arith.constant dense<0.000000e+00> : vector<5x32xf32>
    %137 = tpu.matmul %134, %136, %cst_61 {dimension_numbers = #tpu.dot_dimension_numbers<[1], [0], [0], [1], [0, 0, 1, 1], [], []>} : vector<5x32xbf16>, vector<32x32xbf16>, vector<5x32xf32> -> vector<5x32xf32>
    %c0_62 = arith.constant 0 : index
    %c0_63 = arith.constant 0 : index
    %c0_64 = arith.constant 0 : index
    %138 = vector.load %arg15[%c0_62, %c0_63, %c0_64] : memref<2x1x32xf32, #tpu.memory_space<vmem>>, vector<1x1x32xf32>
    %139 = vector.shape_cast %138 : vector<1x1x32xf32> to vector<1x32xf32>
    %140 = vector.broadcast %139 : vector<1x32xf32> to vector<5x32xf32>
    %141 = arith.addf %137, %140 : vector<5x32xf32>
    %142 = arith.addf %141, %53 : vector<5x32xf32>
    %c0_65 = arith.constant 0 : index
    %c0_66 = arith.constant 0 : index
    %c0_67 = arith.constant 0 : index
    %143 = vector.load %arg16[%c0_65, %c0_66, %c0_67] : memref<2x1x32xf32, #tpu.memory_space<vmem>>, vector<1x1x32xf32>
    %144 = vector.shape_cast %143 : vector<1x1x32xf32> to vector<1x32xf32>
    %c0_68 = arith.constant 0 : index
    %c0_69 = arith.constant 0 : index
    %c0_70 = arith.constant 0 : index
    %145 = vector.load %arg17[%c0_68, %c0_69, %c0_70] : memref<2x1x32xf32, #tpu.memory_space<vmem>>, vector<1x1x32xf32>
    %146 = vector.shape_cast %145 : vector<1x1x32xf32> to vector<1x32xf32>
    %cst_71 = arith.constant dense<0.000000e+00> : vector<5xf32>
    %147 = vector.multi_reduction <add>, %142, %cst_71 [1] : vector<5x32xf32> to vector<5xf32>
    %148 = vector.shape_cast %147 : vector<5xf32> to vector<5x1xf32>
    %cst_72 = arith.constant 3.200000e+01 : f32
    %149 = vector.broadcast %cst_72 : f32 to vector<5x1xf32>
    %150 = arith.divf %148, %149 : vector<5x1xf32>
    %151 = vector.broadcast %150 : vector<5x1xf32> to vector<5x32xf32>
    %152 = arith.subf %142, %151 : vector<5x32xf32>
    %153 = arith.mulf %152, %152 : vector<5x32xf32>
    %cst_73 = arith.constant dense<0.000000e+00> : vector<5xf32>
    %154 = vector.multi_reduction <add>, %153, %cst_73 [1] : vector<5x32xf32> to vector<5xf32>
    %155 = vector.shape_cast %154 : vector<5xf32> to vector<5x1xf32>
    %cst_74 = arith.constant 3.200000e+01 : f32
    %156 = vector.broadcast %cst_74 : f32 to vector<5x1xf32>
    %157 = arith.divf %155, %156 : vector<5x1xf32>
    %cst_75 = arith.constant 9.99999974E-6 : f32
    %158 = vector.broadcast %cst_75 : f32 to vector<5x1xf32>
    %159 = arith.addf %157, %158 : vector<5x1xf32>
    %160 = math.rsqrt %159 : vector<5x1xf32>
    %161 = vector.broadcast %160 : vector<5x1xf32> to vector<5x32xf32>
    %162 = arith.mulf %152, %161 : vector<5x32xf32>
    %163 = vector.broadcast %144 : vector<1x32xf32> to vector<5x32xf32>
    %164 = arith.mulf %162, %163 : vector<5x32xf32>
    %165 = vector.broadcast %146 : vector<1x32xf32> to vector<5x32xf32>
    %166 = arith.addf %164, %165 : vector<5x32xf32>
    %167 = arith.truncf %166 : vector<5x32xf32> to vector<5x32xbf16>
    %c0_76 = arith.constant 0 : index
    %c0_77 = arith.constant 0 : index
    %c0_78 = arith.constant 0 : index
    %168 = vector.load %arg18[%c0_76, %c0_77, %c0_78] : memref<2x32x64xbf16, #tpu.memory_space<vmem>>, vector<1x32x64xbf16>
    %169 = vector.shape_cast %168 : vector<1x32x64xbf16> to vector<32x64xbf16>
    %cst_79 = arith.constant dense<0.000000e+00> : vector<5x64xf32>
    %170 = tpu.matmul %167, %169, %cst_79 {dimension_numbers = #tpu.dot_dimension_numbers<[1], [0], [0], [1], [0, 0, 1, 1], [], []>} : vector<5x32xbf16>, vector<32x64xbf16>, vector<5x64xf32> -> vector<5x64xf32>
    %c0_80 = arith.constant 0 : index
    %c0_81 = arith.constant 0 : index
    %c0_82 = arith.constant 0 : index
    %171 = vector.load %arg19[%c0_80, %c0_81, %c0_82] : memref<2x1x64xf32, #tpu.memory_space<vmem>>, vector<1x1x64xf32>
    %172 = vector.shape_cast %171 : vector<1x1x64xf32> to vector<1x64xf32>
    %173 = vector.broadcast %172 : vector<1x64xf32> to vector<5x64xf32>
    %174 = arith.addf %170, %173 : vector<5x64xf32>
    %cst_83 = arith.constant 5.000000e-01 : f32
    %175 = vector.broadcast %cst_83 : f32 to vector<5x64xf32>
    %176 = arith.mulf %175, %174 : vector<5x64xf32>
    %cst_84 = arith.constant 0.707106769 : f32
    %177 = vector.broadcast %cst_84 : f32 to vector<5x64xf32>
    %178 = arith.mulf %174, %177 : vector<5x64xf32>
    %cst_85 = arith.constant 0.000000e+00 : f32
    %179 = vector.broadcast %cst_85 : f32 to vector<5x64xf32>
    %180 = arith.cmpf oge, %178, %179 : vector<5x64xf32>
    %cst_86 = arith.constant 1.000000e+00 : f32
    %cst_87 = arith.constant -1.000000e+00 : f32
    %181 = vector.broadcast %cst_86 : f32 to vector<5x64xf32>
    %182 = vector.broadcast %cst_87 : f32 to vector<5x64xf32>
    %183 = arith.select %180, %181, %182 : vector<5x64xi1>, vector<5x64xf32>
    %184 = math.absf %178 : vector<5x64xf32>
    %cst_88 = arith.constant 0.327591091 : f32
    %185 = vector.broadcast %cst_88 : f32 to vector<5x64xf32>
    %186 = arith.mulf %185, %184 : vector<5x64xf32>
    %cst_89 = arith.constant 1.000000e+00 : f32
    %187 = vector.broadcast %cst_89 : f32 to vector<5x64xf32>
    %188 = arith.addf %187, %186 : vector<5x64xf32>
    %cst_90 = arith.constant 1.000000e+00 : f32
    %189 = vector.broadcast %cst_90 : f32 to vector<5x64xf32>
    %190 = arith.divf %189, %188 : vector<5x64xf32>
    %cst_91 = arith.constant 1.06140542 : f32
    %191 = vector.broadcast %cst_91 : f32 to vector<5x64xf32>
    %192 = arith.mulf %191, %190 : vector<5x64xf32>
    %cst_92 = arith.constant -1.45315206 : f32
    %193 = vector.broadcast %cst_92 : f32 to vector<5x64xf32>
    %194 = arith.addf %192, %193 : vector<5x64xf32>
    %195 = arith.mulf %194, %190 : vector<5x64xf32>
    %cst_93 = arith.constant 1.42141378 : f32
    %196 = vector.broadcast %cst_93 : f32 to vector<5x64xf32>
    %197 = arith.addf %195, %196 : vector<5x64xf32>
    %198 = arith.mulf %197, %190 : vector<5x64xf32>
    %cst_94 = arith.constant -0.284496725 : f32
    %199 = vector.broadcast %cst_94 : f32 to vector<5x64xf32>
    %200 = arith.addf %198, %199 : vector<5x64xf32>
    %201 = arith.mulf %200, %190 : vector<5x64xf32>
    %cst_95 = arith.constant 0.254829586 : f32
    %202 = vector.broadcast %cst_95 : f32 to vector<5x64xf32>
    %203 = arith.addf %201, %202 : vector<5x64xf32>
    %204 = arith.mulf %203, %190 : vector<5x64xf32>
    %cst_96 = arith.constant 0.000000e+00 : f32
    %205 = vector.broadcast %cst_96 : f32 to vector<5x64xf32>
    %206 = arith.subf %205, %184 : vector<5x64xf32>
    %207 = arith.mulf %206, %184 : vector<5x64xf32>
    %208 = math.exp %207 : vector<5x64xf32>
    %209 = arith.mulf %204, %208 : vector<5x64xf32>
    %cst_97 = arith.constant 1.000000e+00 : f32
    %210 = vector.broadcast %cst_97 : f32 to vector<5x64xf32>
    %211 = arith.subf %210, %209 : vector<5x64xf32>
    %212 = arith.mulf %183, %211 : vector<5x64xf32>
    %cst_98 = arith.constant 1.000000e+00 : f32
    %213 = vector.broadcast %cst_98 : f32 to vector<5x64xf32>
    %214 = arith.addf %213, %212 : vector<5x64xf32>
    %215 = arith.mulf %176, %214 : vector<5x64xf32>
    %216 = arith.truncf %215 : vector<5x64xf32> to vector<5x64xbf16>
    %c0_99 = arith.constant 0 : index
    %c0_100 = arith.constant 0 : index
    %c0_101 = arith.constant 0 : index
    %217 = vector.load %arg20[%c0_99, %c0_100, %c0_101] : memref<2x64x32xbf16, #tpu.memory_space<vmem>>, vector<1x64x32xbf16>
    %218 = vector.shape_cast %217 : vector<1x64x32xbf16> to vector<64x32xbf16>
    %cst_102 = arith.constant dense<0.000000e+00> : vector<5x32xf32>
    %219 = tpu.matmul %216, %218, %cst_102 {dimension_numbers = #tpu.dot_dimension_numbers<[1], [0], [0], [1], [0, 0, 1, 1], [], []>} : vector<5x64xbf16>, vector<64x32xbf16>, vector<5x32xf32> -> vector<5x32xf32>
    %c0_103 = arith.constant 0 : index
    %c0_104 = arith.constant 0 : index
    %c0_105 = arith.constant 0 : index
    %220 = vector.load %arg21[%c0_103, %c0_104, %c0_105] : memref<2x1x32xf32, #tpu.memory_space<vmem>>, vector<1x1x32xf32>
    %221 = vector.shape_cast %220 : vector<1x1x32xf32> to vector<1x32xf32>
    %222 = vector.broadcast %221 : vector<1x32xf32> to vector<5x32xf32>
    %223 = arith.addf %219, %222 : vector<5x32xf32>
    %224 = arith.addf %223, %142 : vector<5x32xf32>
    %c1 = arith.constant 1 : index
    %c0_106 = arith.constant 0 : index
    %c0_107 = arith.constant 0 : index
    %225 = vector.load %arg10[%c1, %c0_106, %c0_107] : memref<2x1x32xf32, #tpu.memory_space<vmem>>, vector<1x1x32xf32>
    %226 = vector.shape_cast %225 : vector<1x1x32xf32> to vector<1x32xf32>
    %c1_108 = arith.constant 1 : index
    %c0_109 = arith.constant 0 : index
    %c0_110 = arith.constant 0 : index
    %227 = vector.load %arg11[%c1_108, %c0_109, %c0_110] : memref<2x1x32xf32, #tpu.memory_space<vmem>>, vector<1x1x32xf32>
    %228 = vector.shape_cast %227 : vector<1x1x32xf32> to vector<1x32xf32>
    %cst_111 = arith.constant dense<0.000000e+00> : vector<5xf32>
    %229 = vector.multi_reduction <add>, %224, %cst_111 [1] : vector<5x32xf32> to vector<5xf32>
    %230 = vector.shape_cast %229 : vector<5xf32> to vector<5x1xf32>
    %cst_112 = arith.constant 3.200000e+01 : f32
    %231 = vector.broadcast %cst_112 : f32 to vector<5x1xf32>
    %232 = arith.divf %230, %231 : vector<5x1xf32>
    %233 = vector.broadcast %232 : vector<5x1xf32> to vector<5x32xf32>
    %234 = arith.subf %224, %233 : vector<5x32xf32>
    %235 = arith.mulf %234, %234 : vector<5x32xf32>
    %cst_113 = arith.constant dense<0.000000e+00> : vector<5xf32>
    %236 = vector.multi_reduction <add>, %235, %cst_113 [1] : vector<5x32xf32> to vector<5xf32>
    %237 = vector.shape_cast %236 : vector<5xf32> to vector<5x1xf32>
    %cst_114 = arith.constant 3.200000e+01 : f32
    %238 = vector.broadcast %cst_114 : f32 to vector<5x1xf32>
    %239 = arith.divf %237, %238 : vector<5x1xf32>
    %cst_115 = arith.constant 9.99999974E-6 : f32
    %240 = vector.broadcast %cst_115 : f32 to vector<5x1xf32>
    %241 = arith.addf %239, %240 : vector<5x1xf32>
    %242 = math.rsqrt %241 : vector<5x1xf32>
    %243 = vector.broadcast %242 : vector<5x1xf32> to vector<5x32xf32>
    %244 = arith.mulf %234, %243 : vector<5x32xf32>
    %245 = vector.broadcast %226 : vector<1x32xf32> to vector<5x32xf32>
    %246 = arith.mulf %244, %245 : vector<5x32xf32>
    %247 = vector.broadcast %228 : vector<1x32xf32> to vector<5x32xf32>
    %248 = arith.addf %246, %247 : vector<5x32xf32>
    %249 = arith.truncf %248 : vector<5x32xf32> to vector<5x32xbf16>
    %c1_116 = arith.constant 1 : index
    %c0_117 = arith.constant 0 : index
    %c0_118 = arith.constant 0 : index
    %250 = vector.load %arg12[%c1_116, %c0_117, %c0_118] : memref<2x32x64xbf16, #tpu.memory_space<vmem>>, vector<1x32x64xbf16>
    %251 = vector.shape_cast %250 : vector<1x32x64xbf16> to vector<32x64xbf16>
    %cst_119 = arith.constant dense<0.000000e+00> : vector<5x64xf32>
    %252 = tpu.matmul %249, %251, %cst_119 {dimension_numbers = #tpu.dot_dimension_numbers<[1], [0], [0], [1], [0, 0, 1, 1], [], []>} : vector<5x32xbf16>, vector<32x64xbf16>, vector<5x64xf32> -> vector<5x64xf32>
    %253 = vector.extract_strided_slice %252 {offsets = [0, 0], sizes = [5, 32], strides = [1, 1]} : vector<5x64xf32> to vector<5x32xf32>
    %254 = vector.extract_strided_slice %252 {offsets = [0, 32], sizes = [5, 32], strides = [1, 1]} : vector<5x64xf32> to vector<5x32xf32>
    %255 = vector.shape_cast %249 : vector<5x32xbf16> to vector<1x5x32xbf16>
    %256 = vector.shape_cast %255 : vector<1x5x32xbf16> to vector<1x5x32xbf16>
    %257 = vector.broadcast %256 : vector<1x5x32xbf16> to vector<12x5x32xbf16>
    %c1_120 = arith.constant 1 : index
    %c0_121 = arith.constant 0 : index
    %c0_122 = arith.constant 0 : index
    %c0_123 = arith.constant 0 : index
    %258 = vector.load %arg13[%c1_120, %c0_121, %c0_122, %c0_123] : memref<2x12x32x32xbf16, #tpu.memory_space<vmem>>, vector<1x12x32x32xbf16>
    %259 = vector.shape_cast %258 : vector<1x12x32x32xbf16> to vector<12x32x32xbf16>
    %cst_124 = arith.constant dense<0.000000e+00> : vector<12x5x32xf32>
    %260 = tpu.matmul %257, %259, %cst_124 {dimension_numbers = #tpu.dot_dimension_numbers<[2], [1], [1], [2], [0, 0, 0, 1, 1, 2], [0], [0]>} : vector<12x5x32xbf16>, vector<12x32x32xbf16>, vector<12x5x32xf32> -> vector<12x5x32xf32>
    %261 = vector.shape_cast %260 : vector<12x5x32xf32> to vector<60x32xf32>
    %262 = arith.truncf %261 : vector<60x32xf32> to vector<60x32xbf16>
    %263 = vector.extract_strided_slice %253 {offsets = [0, 0], sizes = [5, 16], strides = [1, 1]} : vector<5x32xf32> to vector<5x16xf32>
    %cst_125 = arith.constant 2.500000e-01 : f32
    %264 = vector.broadcast %cst_125 : f32 to vector<5x16xf32>
    %265 = arith.mulf %263, %264 : vector<5x16xf32>
    %266 = vector.extract_strided_slice %254 {offsets = [0, 0], sizes = [5, 16], strides = [1, 1]} : vector<5x32xf32> to vector<5x16xf32>
    %cst_126 = arith.constant dense<0.000000e+00> : vector<5x5xf32>
    %267 = tpu.matmul %265, %266, %cst_126 {dimension_numbers = #tpu.dot_dimension_numbers<[1], [1], [0], [0], [0, 0, 1, 0], [], []>} : vector<5x16xf32>, vector<5x16xf32>, vector<5x5xf32> -> vector<5x5xf32>
    %cst_127 = arith.constant dense<0xFF800000> : vector<5xf32>
    %268 = vector.multi_reduction <maximumf>, %267, %cst_127 [1] : vector<5x5xf32> to vector<5xf32>
    %269 = vector.shape_cast %268 : vector<5xf32> to vector<5x1xf32>
    %270 = vector.broadcast %269 : vector<5x1xf32> to vector<5x5xf32>
    %271 = arith.subf %267, %270 : vector<5x5xf32>
    %272 = math.exp %271 : vector<5x5xf32>
    %cst_128 = arith.constant dense<0.000000e+00> : vector<5xf32>
    %273 = vector.multi_reduction <add>, %272, %cst_128 [1] : vector<5x5xf32> to vector<5xf32>
    %274 = vector.shape_cast %273 : vector<5xf32> to vector<5x1xf32>
    %275 = tpu.reciprocal %274 {approx = true} : vector<5x1xf32> -> vector<5x1xf32>
    %276 = vector.broadcast %275 : vector<5x1xf32> to vector<5x5xf32>
    %277 = arith.mulf %272, %276 : vector<5x5xf32>
    %278 = tpu.concatenate %277, %277, %277, %277, %277, %277, %277, %277, %277, %277, %277, %277 in 1 : vector<5x5xf32>, vector<5x5xf32>, vector<5x5xf32>, vector<5x5xf32>, vector<5x5xf32>, vector<5x5xf32>, vector<5x5xf32>, vector<5x5xf32>, vector<5x5xf32>, vector<5x5xf32>, vector<5x5xf32>, vector<5x5xf32> -> vector<5x60xf32>
    %279 = arith.mulf %278, %54 : vector<5x60xf32>
    %280 = arith.truncf %279 : vector<5x60xf32> to vector<5x60xbf16>
    %cst_129 = arith.constant dense<0.000000e+00> : vector<5x32xf32>
    %281 = tpu.matmul %280, %262, %cst_129 {dimension_numbers = #tpu.dot_dimension_numbers<[1], [0], [0], [1], [0, 0, 1, 1], [], []>} : vector<5x60xbf16>, vector<60x32xbf16>, vector<5x32xf32> -> vector<5x32xf32>
    %282 = vector.extract_strided_slice %281 {offsets = [0, 0], sizes = [5, 16], strides = [1, 1]} : vector<5x32xf32> to vector<5x16xf32>
    %283 = vector.extract_strided_slice %253 {offsets = [0, 16], sizes = [5, 16], strides = [1, 1]} : vector<5x32xf32> to vector<5x16xf32>
    %cst_130 = arith.constant 2.500000e-01 : f32
    %284 = vector.broadcast %cst_130 : f32 to vector<5x16xf32>
    %285 = arith.mulf %283, %284 : vector<5x16xf32>
    %286 = vector.extract_strided_slice %254 {offsets = [0, 16], sizes = [5, 16], strides = [1, 1]} : vector<5x32xf32> to vector<5x16xf32>
    %cst_131 = arith.constant dense<0.000000e+00> : vector<5x5xf32>
    %287 = tpu.matmul %285, %286, %cst_131 {dimension_numbers = #tpu.dot_dimension_numbers<[1], [1], [0], [0], [0, 0, 1, 0], [], []>} : vector<5x16xf32>, vector<5x16xf32>, vector<5x5xf32> -> vector<5x5xf32>
    %cst_132 = arith.constant dense<0xFF800000> : vector<5xf32>
    %288 = vector.multi_reduction <maximumf>, %287, %cst_132 [1] : vector<5x5xf32> to vector<5xf32>
    %289 = vector.shape_cast %288 : vector<5xf32> to vector<5x1xf32>
    %290 = vector.broadcast %289 : vector<5x1xf32> to vector<5x5xf32>
    %291 = arith.subf %287, %290 : vector<5x5xf32>
    %292 = math.exp %291 : vector<5x5xf32>
    %cst_133 = arith.constant dense<0.000000e+00> : vector<5xf32>
    %293 = vector.multi_reduction <add>, %292, %cst_133 [1] : vector<5x5xf32> to vector<5xf32>
    %294 = vector.shape_cast %293 : vector<5xf32> to vector<5x1xf32>
    %295 = tpu.reciprocal %294 {approx = true} : vector<5x1xf32> -> vector<5x1xf32>
    %296 = vector.broadcast %295 : vector<5x1xf32> to vector<5x5xf32>
    %297 = arith.mulf %292, %296 : vector<5x5xf32>
    %298 = tpu.concatenate %297, %297, %297, %297, %297, %297, %297, %297, %297, %297, %297, %297 in 1 : vector<5x5xf32>, vector<5x5xf32>, vector<5x5xf32>, vector<5x5xf32>, vector<5x5xf32>, vector<5x5xf32>, vector<5x5xf32>, vector<5x5xf32>, vector<5x5xf32>, vector<5x5xf32>, vector<5x5xf32>, vector<5x5xf32> -> vector<5x60xf32>
    %299 = arith.mulf %298, %54 : vector<5x60xf32>
    %300 = arith.truncf %299 : vector<5x60xf32> to vector<5x60xbf16>
    %cst_134 = arith.constant dense<0.000000e+00> : vector<5x32xf32>
    %301 = tpu.matmul %300, %262, %cst_134 {dimension_numbers = #tpu.dot_dimension_numbers<[1], [0], [0], [1], [0, 0, 1, 1], [], []>} : vector<5x60xbf16>, vector<60x32xbf16>, vector<5x32xf32> -> vector<5x32xf32>
    %302 = vector.extract_strided_slice %301 {offsets = [0, 16], sizes = [5, 16], strides = [1, 1]} : vector<5x32xf32> to vector<5x16xf32>
    %303 = tpu.concatenate %282, %302 in 1 : vector<5x16xf32>, vector<5x16xf32> -> vector<5x32xf32>
    %304 = arith.truncf %303 : vector<5x32xf32> to vector<5x32xbf16>
    %c1_135 = arith.constant 1 : index
    %c0_136 = arith.constant 0 : index
    %c0_137 = arith.constant 0 : index
    %305 = vector.load %arg14[%c1_135, %c0_136, %c0_137] : memref<2x32x32xbf16, #tpu.memory_space<vmem>>, vector<1x32x32xbf16>
    %306 = vector.shape_cast %305 : vector<1x32x32xbf16> to vector<32x32xbf16>
    %cst_138 = arith.constant dense<0.000000e+00> : vector<5x32xf32>
    %307 = tpu.matmul %304, %306, %cst_138 {dimension_numbers = #tpu.dot_dimension_numbers<[1], [0], [0], [1], [0, 0, 1, 1], [], []>} : vector<5x32xbf16>, vector<32x32xbf16>, vector<5x32xf32> -> vector<5x32xf32>
    %c1_139 = arith.constant 1 : index
    %c0_140 = arith.constant 0 : index
    %c0_141 = arith.constant 0 : index
    %308 = vector.load %arg15[%c1_139, %c0_140, %c0_141] : memref<2x1x32xf32, #tpu.memory_space<vmem>>, vector<1x1x32xf32>
    %309 = vector.shape_cast %308 : vector<1x1x32xf32> to vector<1x32xf32>
    %310 = vector.broadcast %309 : vector<1x32xf32> to vector<5x32xf32>
    %311 = arith.addf %307, %310 : vector<5x32xf32>
    %312 = arith.addf %311, %224 : vector<5x32xf32>
    %c1_142 = arith.constant 1 : index
    %c0_143 = arith.constant 0 : index
    %c0_144 = arith.constant 0 : index
    %313 = vector.load %arg16[%c1_142, %c0_143, %c0_144] : memref<2x1x32xf32, #tpu.memory_space<vmem>>, vector<1x1x32xf32>
    %314 = vector.shape_cast %313 : vector<1x1x32xf32> to vector<1x32xf32>
    %c1_145 = arith.constant 1 : index
    %c0_146 = arith.constant 0 : index
    %c0_147 = arith.constant 0 : index
    %315 = vector.load %arg17[%c1_145, %c0_146, %c0_147] : memref<2x1x32xf32, #tpu.memory_space<vmem>>, vector<1x1x32xf32>
    %316 = vector.shape_cast %315 : vector<1x1x32xf32> to vector<1x32xf32>
    %cst_148 = arith.constant dense<0.000000e+00> : vector<5xf32>
    %317 = vector.multi_reduction <add>, %312, %cst_148 [1] : vector<5x32xf32> to vector<5xf32>
    %318 = vector.shape_cast %317 : vector<5xf32> to vector<5x1xf32>
    %cst_149 = arith.constant 3.200000e+01 : f32
    %319 = vector.broadcast %cst_149 : f32 to vector<5x1xf32>
    %320 = arith.divf %318, %319 : vector<5x1xf32>
    %321 = vector.broadcast %320 : vector<5x1xf32> to vector<5x32xf32>
    %322 = arith.subf %312, %321 : vector<5x32xf32>
    %323 = arith.mulf %322, %322 : vector<5x32xf32>
    %cst_150 = arith.constant dense<0.000000e+00> : vector<5xf32>
    %324 = vector.multi_reduction <add>, %323, %cst_150 [1] : vector<5x32xf32> to vector<5xf32>
    %325 = vector.shape_cast %324 : vector<5xf32> to vector<5x1xf32>
    %cst_151 = arith.constant 3.200000e+01 : f32
    %326 = vector.broadcast %cst_151 : f32 to vector<5x1xf32>
    %327 = arith.divf %325, %326 : vector<5x1xf32>
    %cst_152 = arith.constant 9.99999974E-6 : f32
    %328 = vector.broadcast %cst_152 : f32 to vector<5x1xf32>
    %329 = arith.addf %327, %328 : vector<5x1xf32>
    %330 = math.rsqrt %329 : vector<5x1xf32>
    %331 = vector.broadcast %330 : vector<5x1xf32> to vector<5x32xf32>
    %332 = arith.mulf %322, %331 : vector<5x32xf32>
    %333 = vector.broadcast %314 : vector<1x32xf32> to vector<5x32xf32>
    %334 = arith.mulf %332, %333 : vector<5x32xf32>
    %335 = vector.broadcast %316 : vector<1x32xf32> to vector<5x32xf32>
    %336 = arith.addf %334, %335 : vector<5x32xf32>
    %337 = arith.truncf %336 : vector<5x32xf32> to vector<5x32xbf16>
    %c1_153 = arith.constant 1 : index
    %c0_154 = arith.constant 0 : index
    %c0_155 = arith.constant 0 : index
    %338 = vector.load %arg18[%c1_153, %c0_154, %c0_155] : memref<2x32x64xbf16, #tpu.memory_space<vmem>>, vector<1x32x64xbf16>
    %339 = vector.shape_cast %338 : vector<1x32x64xbf16> to vector<32x64xbf16>
    %cst_156 = arith.constant dense<0.000000e+00> : vector<5x64xf32>
    %340 = tpu.matmul %337, %339, %cst_156 {dimension_numbers = #tpu.dot_dimension_numbers<[1], [0], [0], [1], [0, 0, 1, 1], [], []>} : vector<5x32xbf16>, vector<32x64xbf16>, vector<5x64xf32> -> vector<5x64xf32>
    %c1_157 = arith.constant 1 : index
    %c0_158 = arith.constant 0 : index
    %c0_159 = arith.constant 0 : index
    %341 = vector.load %arg19[%c1_157, %c0_158, %c0_159] : memref<2x1x64xf32, #tpu.memory_space<vmem>>, vector<1x1x64xf32>
    %342 = vector.shape_cast %341 : vector<1x1x64xf32> to vector<1x64xf32>
    %343 = vector.broadcast %342 : vector<1x64xf32> to vector<5x64xf32>
    %344 = arith.addf %340, %343 : vector<5x64xf32>
    %cst_160 = arith.constant 5.000000e-01 : f32
    %345 = vector.broadcast %cst_160 : f32 to vector<5x64xf32>
    %346 = arith.mulf %345, %344 : vector<5x64xf32>
    %cst_161 = arith.constant 0.707106769 : f32
    %347 = vector.broadcast %cst_161 : f32 to vector<5x64xf32>
    %348 = arith.mulf %344, %347 : vector<5x64xf32>
    %cst_162 = arith.constant 0.000000e+00 : f32
    %349 = vector.broadcast %cst_162 : f32 to vector<5x64xf32>
    %350 = arith.cmpf oge, %348, %349 : vector<5x64xf32>
    %cst_163 = arith.constant 1.000000e+00 : f32
    %cst_164 = arith.constant -1.000000e+00 : f32
    %351 = vector.broadcast %cst_163 : f32 to vector<5x64xf32>
    %352 = vector.broadcast %cst_164 : f32 to vector<5x64xf32>
    %353 = arith.select %350, %351, %352 : vector<5x64xi1>, vector<5x64xf32>
    %354 = math.absf %348 : vector<5x64xf32>
    %cst_165 = arith.constant 0.327591091 : f32
    %355 = vector.broadcast %cst_165 : f32 to vector<5x64xf32>
    %356 = arith.mulf %355, %354 : vector<5x64xf32>
    %cst_166 = arith.constant 1.000000e+00 : f32
    %357 = vector.broadcast %cst_166 : f32 to vector<5x64xf32>
    %358 = arith.addf %357, %356 : vector<5x64xf32>
    %cst_167 = arith.constant 1.000000e+00 : f32
    %359 = vector.broadcast %cst_167 : f32 to vector<5x64xf32>
    %360 = arith.divf %359, %358 : vector<5x64xf32>
    %cst_168 = arith.constant 1.06140542 : f32
    %361 = vector.broadcast %cst_168 : f32 to vector<5x64xf32>
    %362 = arith.mulf %361, %360 : vector<5x64xf32>
    %cst_169 = arith.constant -1.45315206 : f32
    %363 = vector.broadcast %cst_169 : f32 to vector<5x64xf32>
    %364 = arith.addf %362, %363 : vector<5x64xf32>
    %365 = arith.mulf %364, %360 : vector<5x64xf32>
    %cst_170 = arith.constant 1.42141378 : f32
    %366 = vector.broadcast %cst_170 : f32 to vector<5x64xf32>
    %367 = arith.addf %365, %366 : vector<5x64xf32>
    %368 = arith.mulf %367, %360 : vector<5x64xf32>
    %cst_171 = arith.constant -0.284496725 : f32
    %369 = vector.broadcast %cst_171 : f32 to vector<5x64xf32>
    %370 = arith.addf %368, %369 : vector<5x64xf32>
    %371 = arith.mulf %370, %360 : vector<5x64xf32>
    %cst_172 = arith.constant 0.254829586 : f32
    %372 = vector.broadcast %cst_172 : f32 to vector<5x64xf32>
    %373 = arith.addf %371, %372 : vector<5x64xf32>
    %374 = arith.mulf %373, %360 : vector<5x64xf32>
    %cst_173 = arith.constant 0.000000e+00 : f32
    %375 = vector.broadcast %cst_173 : f32 to vector<5x64xf32>
    %376 = arith.subf %375, %354 : vector<5x64xf32>
    %377 = arith.mulf %376, %354 : vector<5x64xf32>
    %378 = math.exp %377 : vector<5x64xf32>
    %379 = arith.mulf %374, %378 : vector<5x64xf32>
    %cst_174 = arith.constant 1.000000e+00 : f32
    %380 = vector.broadcast %cst_174 : f32 to vector<5x64xf32>
    %381 = arith.subf %380, %379 : vector<5x64xf32>
    %382 = arith.mulf %353, %381 : vector<5x64xf32>
    %cst_175 = arith.constant 1.000000e+00 : f32
    %383 = vector.broadcast %cst_175 : f32 to vector<5x64xf32>
    %384 = arith.addf %383, %382 : vector<5x64xf32>
    %385 = arith.mulf %346, %384 : vector<5x64xf32>
    %386 = arith.truncf %385 : vector<5x64xf32> to vector<5x64xbf16>
    %c1_176 = arith.constant 1 : index
    %c0_177 = arith.constant 0 : index
    %c0_178 = arith.constant 0 : index
    %387 = vector.load %arg20[%c1_176, %c0_177, %c0_178] : memref<2x64x32xbf16, #tpu.memory_space<vmem>>, vector<1x64x32xbf16>
    %388 = vector.shape_cast %387 : vector<1x64x32xbf16> to vector<64x32xbf16>
    %cst_179 = arith.constant dense<0.000000e+00> : vector<5x32xf32>
    %389 = tpu.matmul %386, %388, %cst_179 {dimension_numbers = #tpu.dot_dimension_numbers<[1], [0], [0], [1], [0, 0, 1, 1], [], []>} : vector<5x64xbf16>, vector<64x32xbf16>, vector<5x32xf32> -> vector<5x32xf32>
    %c1_180 = arith.constant 1 : index
    %c0_181 = arith.constant 0 : index
    %c0_182 = arith.constant 0 : index
    %390 = vector.load %arg21[%c1_180, %c0_181, %c0_182] : memref<2x1x32xf32, #tpu.memory_space<vmem>>, vector<1x1x32xf32>
    %391 = vector.shape_cast %390 : vector<1x1x32xf32> to vector<1x32xf32>
    %392 = vector.broadcast %391 : vector<1x32xf32> to vector<5x32xf32>
    %393 = arith.addf %389, %392 : vector<5x32xf32>
    %394 = arith.addf %393, %312 : vector<5x32xf32>
    %395 = vector.extract_strided_slice %394 {offsets = [0, 0], sizes = [1, 32], strides = [1, 1]} : vector<5x32xf32> to vector<1x32xf32>
    %c0_183 = arith.constant 0 : index
    %c0_184 = arith.constant 0 : index
    %396 = vector.load %arg22[%c0_183, %c0_184] : memref<1x32xf32, #tpu.memory_space<vmem>>, vector<1x32xf32>
    %c0_185 = arith.constant 0 : index
    %c0_186 = arith.constant 0 : index
    %397 = vector.load %arg23[%c0_185, %c0_186] : memref<1x32xf32, #tpu.memory_space<vmem>>, vector<1x32xf32>
    %cst_187 = arith.constant dense<0.000000e+00> : vector<1xf32>
    %398 = vector.multi_reduction <add>, %395, %cst_187 [1] : vector<1x32xf32> to vector<1xf32>
    %399 = vector.shape_cast %398 : vector<1xf32> to vector<1x1xf32>
    %cst_188 = arith.constant 3.200000e+01 : f32
    %400 = vector.broadcast %cst_188 : f32 to vector<1x1xf32>
    %401 = arith.divf %399, %400 : vector<1x1xf32>
    %402 = vector.broadcast %401 : vector<1x1xf32> to vector<1x32xf32>
    %403 = arith.subf %395, %402 : vector<1x32xf32>
    %404 = arith.mulf %403, %403 : vector<1x32xf32>
    %cst_189 = arith.constant dense<0.000000e+00> : vector<1xf32>
    %405 = vector.multi_reduction <add>, %404, %cst_189 [1] : vector<1x32xf32> to vector<1xf32>
    %406 = vector.shape_cast %405 : vector<1xf32> to vector<1x1xf32>
    %cst_190 = arith.constant 3.200000e+01 : f32
    %407 = vector.broadcast %cst_190 : f32 to vector<1x1xf32>
    %408 = arith.divf %406, %407 : vector<1x1xf32>
    %cst_191 = arith.constant 9.99999974E-6 : f32
    %409 = vector.broadcast %cst_191 : f32 to vector<1x1xf32>
    %410 = arith.addf %408, %409 : vector<1x1xf32>
    %411 = math.rsqrt %410 : vector<1x1xf32>
    %412 = vector.broadcast %411 : vector<1x1xf32> to vector<1x32xf32>
    %413 = arith.mulf %403, %412 : vector<1x32xf32>
    %414 = arith.mulf %413, %396 : vector<1x32xf32>
    %415 = arith.addf %414, %397 : vector<1x32xf32>
    %416 = arith.truncf %415 : vector<1x32xf32> to vector<1x32xbf16>
    %c0_192 = arith.constant 0 : index
    %c0_193 = arith.constant 0 : index
    %417 = vector.load %arg24[%c0_192, %c0_193] : memref<32x128xbf16, #tpu.memory_space<vmem>>, vector<32x128xbf16>
    %cst_194 = arith.constant dense<0.000000e+00> : vector<1x128xf32>
    %418 = tpu.matmul %416, %417, %cst_194 {dimension_numbers = #tpu.dot_dimension_numbers<[1], [0], [0], [1], [0, 0, 1, 1], [], []>} : vector<1x32xbf16>, vector<32x128xbf16>, vector<1x128xf32> -> vector<1x128xf32>
    %c0_195 = arith.constant 0 : index
    %c0_196 = arith.constant 0 : index
    %419 = vector.load %arg25[%c0_195, %c0_196] : memref<1x128xf32, #tpu.memory_space<vmem>>, vector<1x128xf32>
    %420 = arith.addf %418, %419 : vector<1x128xf32>
    %c0_197 = arith.constant 0 : index
    %c0_198 = arith.constant 0 : index
    %c0_199 = arith.constant 0 : index
    %421 = vector.load %arg26[%c0_197, %c0_198, %c0_199] : memref<1x1x128xf32, #tpu.memory_space<vmem>>, vector<1x1x128xf32>
    %422 = vector.shape_cast %421 : vector<1x1x128xf32> to vector<1x128xf32>
    %423 = vector.shape_cast %420 : vector<1x128xf32> to vector<1x1x128xf32>
    tpu.vector_store %arg26[%c0_197, %c0_198, %c0_199], %423 {strides = array<i32>} : memref<1x1x128xf32, #tpu.memory_space<vmem>>, vector<1x1x128xf32>,
    return
  }
  func.func @transform_0(%arg0: i32) -> (i32, i32, i32) {
    %c0_i32 = arith.constant 0 : i32
    %c0_i32_0 = arith.constant 0 : i32
    %c0_i32_1 = arith.constant 0 : i32
    return %arg0, %c0_i32, %c0_i32_0 : i32, i32, i32
  }
  func.func @transform_1(%arg0: i32) -> (i32, i32) {
    %c0_i32 = arith.constant 0 : i32
    %c0_i32_0 = arith.constant 0 : i32
    %c0_i32_1 = arith.constant 0 : i32
    return %c0_i32, %c0_i32_0 : i32, i32
  }
  func.func @transform_2(%arg0: i32) -> (i32, i32) {
    %c0_i32 = arith.constant 0 : i32
    %c0_i32_0 = arith.constant 0 : i32
    %c0_i32_1 = arith.constant 0 : i32
    return %c0_i32, %c0_i32_0 : i32, i32
  }
  func.func @transform_3(%arg0: i32) -> (i32, i32) {
    %c0_i32 = arith.constant 0 : i32
    %c0_i32_0 = arith.constant 0 : i32
    %c0_i32_1 = arith.constant 0 : i32
    return %c0_i32, %c0_i32_0 : i32, i32
  }
  func.func @transform_4(%arg0: i32) -> (i32, i32) {
    %c0_i32 = arith.constant 0 : i32
    %c0_i32_0 = arith.constant 0 : i32
    %c0_i32_1 = arith.constant 0 : i32
    return %c0_i32, %c0_i32_0 : i32, i32
  }
  func.func @transform_5(%arg0: i32) -> (i32, i32) {
    %c0_i32 = arith.constant 0 : i32
    %c0_i32_0 = arith.constant 0 : i32
    %c0_i32_1 = arith.constant 0 : i32
    return %c0_i32, %c0_i32_0 : i32, i32
  }
  func.func @transform_6(%arg0: i32) -> (i32, i32) {
    %c0_i32 = arith.constant 0 : i32
    %c0_i32_0 = arith.constant 0 : i32
    %c0_i32_1 = arith.constant 0 : i32
    return %c0_i32, %c0_i32_0 : i32, i32
  }
  func.func @transform_7(%arg0: i32) -> (i32, i32) {
    %c0_i32 = arith.constant 0 : i32
    %c0_i32_0 = arith.constant 0 : i32
    %c0_i32_1 = arith.constant 0 : i32
    return %c0_i32, %c0_i32_0 : i32, i32
  }
  func.func @transform_8(%arg0: i32) -> (i32, i32) {
    %c0_i32 = arith.constant 0 : i32
    %c0_i32_0 = arith.constant 0 : i32
    %c0_i32_1 = arith.constant 0 : i32
    return %c0_i32, %c0_i32_0 : i32, i32
  }
  func.func @transform_9(%arg0: i32) -> (i32, i32, i32) {
    %c0_i32 = arith.constant 0 : i32
    %c0_i32_0 = arith.constant 0 : i32
    %c0_i32_1 = arith.constant 0 : i32
    %c0_i32_2 = arith.constant 0 : i32
    return %c0_i32, %c0_i32_0, %c0_i32_1 : i32, i32, i32
  }
  func.func @transform_10(%arg0: i32) -> (i32, i32, i32) {
    %c0_i32 = arith.constant 0 : i32
    %c0_i32_0 = arith.constant 0 : i32
    %c0_i32_1 = arith.constant 0 : i32
    %c0_i32_2 = arith.constant 0 : i32
    return %c0_i32, %c0_i32_0, %c0_i32_1 : i32, i32, i32
  }
  func.func @transform_11(%arg0: i32) -> (i32, i32, i32) {
    %c0_i32 = arith.constant 0 : i32
    %c0_i32_0 = arith.constant 0 : i32
    %c0_i32_1 = arith.constant 0 : i32
    %c0_i32_2 = arith.constant 0 : i32
    return %c0_i32, %c0_i32_0, %c0_i32_1 : i32, i32, i32
  }
  func.func @transform_12(%arg0: i32) -> (i32, i32, i32, i32) {
    %c0_i32 = arith.constant 0 : i32
    %c0_i32_0 = arith.constant 0 : i32
    %c0_i32_1 = arith.constant 0 : i32
    %c0_i32_2 = arith.constant 0 : i32
    %c0_i32_3 = arith.constant 0 : i32
    return %c0_i32, %c0_i32_0, %c0_i32_1, %c0_i32_2 : i32, i32, i32, i32
  }
  func.func @transform_13(%arg0: i32) -> (i32, i32, i32) {
    %c0_i32 = arith.constant 0 : i32
    %c0_i32_0 = arith.constant 0 : i32
    %c0_i32_1 = arith.constant 0 : i32
    %c0_i32_2 = arith.constant 0 : i32
    return %c0_i32, %c0_i32_0, %c0_i32_1 : i32, i32, i32
  }
  func.func @transform_14(%arg0: i32) -> (i32, i32, i32) {
    %c0_i32 = arith.constant 0 : i32
    %c0_i32_0 = arith.constant 0 : i32
    %c0_i32_1 = arith.constant 0 : i32
    %c0_i32_2 = arith.constant 0 : i32
    return %c0_i32, %c0_i32_0, %c0_i32_1 : i32, i32, i32
  }
  func.func @transform_15(%arg0: i32) -> (i32, i32, i32) {
    %c0_i32 = arith.constant 0 : i32
    %c0_i32_0 = arith.constant 0 : i32
    %c0_i32_1 = arith.constant 0 : i32
    %c0_i32_2 = arith.constant 0 : i32
    return %c0_i32, %c0_i32_0, %c0_i32_1 : i32, i32, i32
  }
  func.func @transform_16(%arg0: i32) -> (i32, i32, i32) {
    %c0_i32 = arith.constant 0 : i32
    %c0_i32_0 = arith.constant 0 : i32
    %c0_i32_1 = arith.constant 0 : i32
    %c0_i32_2 = arith.constant 0 : i32
    return %c0_i32, %c0_i32_0, %c0_i32_1 : i32, i32, i32
  }
  func.func @transform_17(%arg0: i32) -> (i32, i32, i32) {
    %c0_i32 = arith.constant 0 : i32
    %c0_i32_0 = arith.constant 0 : i32
    %c0_i32_1 = arith.constant 0 : i32
    %c0_i32_2 = arith.constant 0 : i32
    return %c0_i32, %c0_i32_0, %c0_i32_1 : i32, i32, i32
  }
  func.func @transform_18(%arg0: i32) -> (i32, i32, i32) {
    %c0_i32 = arith.constant 0 : i32
    %c0_i32_0 = arith.constant 0 : i32
    %c0_i32_1 = arith.constant 0 : i32
    %c0_i32_2 = arith.constant 0 : i32
    return %c0_i32, %c0_i32_0, %c0_i32_1 : i32, i32, i32
  }
  func.func @transform_19(%arg0: i32) -> (i32, i32, i32) {
    %c0_i32 = arith.constant 0 : i32
    %c0_i32_0 = arith.constant 0 : i32
    %c0_i32_1 = arith.constant 0 : i32
    %c0_i32_2 = arith.constant 0 : i32
    return %c0_i32, %c0_i32_0, %c0_i32_1 : i32, i32, i32
  }
  func.func @transform_20(%arg0: i32) -> (i32, i32, i32) {
    %c0_i32 = arith.constant 0 : i32
    %c0_i32_0 = arith.constant 0 : i32
    %c0_i32_1 = arith.constant 0 : i32
    %c0_i32_2 = arith.constant 0 : i32
    return %c0_i32, %c0_i32_0, %c0_i32_1 : i32, i32, i32
  }
  func.func @transform_21(%arg0: i32) -> (i32, i32) {
    %c0_i32 = arith.constant 0 : i32
    %c0_i32_0 = arith.constant 0 : i32
    %c0_i32_1 = arith.constant 0 : i32
    return %c0_i32, %c0_i32_0 : i32, i32
  }
  func.func @transform_22(%arg0: i32) -> (i32, i32) {
    %c0_i32 = arith.constant 0 : i32
    %c0_i32_0 = arith.constant 0 : i32
    %c0_i32_1 = arith.constant 0 : i32
    return %c0_i32, %c0_i32_0 : i32, i32
  }
  func.func @transform_23(%arg0: i32) -> (i32, i32) {
    %c0_i32 = arith.constant 0 : i32
    %c0_i32_0 = arith.constant 0 : i32
    %c0_i32_1 = arith.constant 0 : i32
    return %c0_i32, %c0_i32_0 : i32, i32
  }
  func.func @transform_24(%arg0: i32) -> (i32, i32) {
    %c0_i32 = arith.constant 0 : i32
    %c0_i32_0 = arith.constant 0 : i32
    %c0_i32_1 = arith.constant 0 : i32
    return %c0_i32, %c0_i32_0 : i32, i32
  }
  func.func @transform_25(%arg0: i32) -> (i32, i32, i32) {
    %c0_i32 = arith.constant 0 : i32
    %c0_i32_0 = arith.constant 0 : i32
    %c0_i32_1 = arith.constant 0 : i32
    return %arg0, %c0_i32, %c0_i32_0 : i32, i32, i32
  }
}

</mosaic_0001>

<bundles_post_ra>
// kernel: tpu_custom_call.1
= control target key start
LH: loop header
LB: loop body
LE: loop exit
PB: predicated region body
PF: predicated region fallthrough
CT: control target
= control target key end

     0   :  { %s7930_s0 = inlined_call_operand.vmem [shape: f32[2,4,256], index: 0, kind: input, shape index: {}]   ;;  %s7931_s1 = inlined_call_operand.vmem [shape: f32[1,32], index: 1, kind: input, shape index: {}]   ;;  %s7932_s2 = inlined_call_operand.vmem [shape: f32[1,256], index: 2, kind: input, shape index: {}]   ;;  %s7933_s3 = inlined_call_operand.vmem [shape: f32[1,256], index: 3, kind: input, shape index: {}]   ;;  %s7934_s4 = inlined_call_operand.vmem [shape: bf16[256,32], index: 4, kind: input, shape index: {}]   ;;  %s7935_s5 = inlined_call_operand.vmem [shape: f32[1,32], index: 5, kind: input, shape index: {}]   ;;  %s7936_s6 = inlined_call_operand.vmem [shape: f32[1,32], index: 6, kind: input, shape index: {}]   ;;  %s7937_s7 = inlined_call_operand.vmem [shape: f32[1,32], index: 7, kind: input, shape index: {}]   ;;  %s7938_s8 = inlined_call_operand.vmem [shape: f32[5,60], index: 8, kind: input, shape index: {}]   ;;  %s7939_s9 = inlined_call_operand.vmem [shape: f32[2,1,32], index: 9, kind: input, shape index: {}]   ;;  %s7940_s10 = inlined_call_operand.vmem [shape: f32[2,1,32], index: 10, kind: input, shape index: {}]   ;;  %s7941_s11 = inlined_call_operand.vmem [shape: bf16[2,32,64], index: 11, kind: input, shape index: {}]   ;;  %s7942_s12 = inlined_call_operand.hbm [shape: bf16[2,12,32,32], index: 12, kind: input, shape index: {}]   ;;  %s7943_s13 = inlined_call_operand.vmem [shape: bf16[2,32,32], index: 13, kind: input, shape index: {}]   ;;  %s7944_s14 = inlined_call_operand.vmem [shape: f32[2,1,32], index: 14, kind: input, shape index: {}]   ;;  %s7945_s15 = inlined_call_operand.vmem [shape: f32[2,1,32], index: 15, kind: input, shape index: {}]   ;;  %s7946_s16 = inlined_call_operand.vmem [shape: f32[2,1,32], index: 16, kind: input, shape index: {}]   ;;  %s7947_s17 = inlined_call_operand.vmem [shape: bf16[2,32,64], index: 17, kind: input, shape index: {}]   ;;  %s7948_s18 = inlined_call_operand.vmem [shape: f32[2,1,64], index: 18, kind: input, shape index: {}]   ;;  %s7949_s19 = inlined_call_operand.vmem [shape: bf16[2,64,32], index: 19, kind: input, shape index: {}]   ;;  %s7950_s20 = inlined_call_operand.vmem [shape: f32[2,1,32], index: 20, kind: input, shape index: {}]   ;;  %s7951_s21 = inlined_call_operand.vmem [shape: f32[1,32], index: 21, kind: input, shape index: {}]   ;;  %s7952_s22 = inlined_call_operand.vmem [shape: f32[1,32], index: 22, kind: input, shape index: {}]   ;;  %s7953_s23 = inlined_call_operand.vmem [shape: bf16[32,128], index: 23, kind: input, shape index: {}]   ;;  %s7954_s24 = inlined_call_operand.vmem [shape: f32[1,128], index: 24, kind: input, shape index: {}]   ;;  %s7955_s25 = inlined_call_operand.hbm [shape: f32[2,1,128], index: 25, kind: output, shape index: {}]  }
   0x1   :  { %7996 = sst [smem:[#allocation14_spill]] %s7930_s0 }
   0x2   :  { %7997 = sst [smem:[#allocation15_spill]] %s7931_s1 }
   0x3   :  { %7998 = sst [smem:[#allocation16_spill]] %s7932_s2 }
   0x4   :  { %7999 = sst [smem:[#allocation17_spill]] %s7933_s3 }
   0x5   :  { %8000 = sst [smem:[#allocation18_spill]] %s7934_s4 }
   0x6   :  { %8001 = sst [smem:[#allocation19_spill]] %s7935_s5 }
   0x7   :  { %8002 = sst [smem:[#allocation20_spill]] %s7936_s6 }
   0x8   :  { %8003 = sst [smem:[#allocation21_spill]] %s7937_s7 }
   0x9   :  { %8004 = sst [smem:[#allocation22_spill]] %s7938_s8 }
   0xa   :  { %8005 = sst [smem:[#allocation23_spill]] %s7939_s9 }
   0xb   :  { %30 = vsyncpa [#allocation3], 0 }
   0xc   :  { %31 = vsyncpa [#allocation4], 0 }
   0xd   :  { %33 = vsyncpa [#allocation4 + $0x1], 0  ;;  %s6910_s29 = smov 0   ;;  %s6912_s2 = smov 0  }
   0xe   :  { %s6914_s6 = smov 0   ;;  %s6916_s30 = smov 0  }
   0xf LB: > { %8006 = sst [smem:[#allocation8_spill]] %s6743_s29  ;;  %s6931_s7 = sadd.s32 4294967295, %s6755_s30   ;;  %s6755_s30 = sphi %s6916_s30, %s8056_s30   ;;  %s6751_s6 = sphi %s6914_s6, %s8058_s6   ;;  %s6747_s2 = sphi %s6912_s2, %s8060_s2   ;;  %s6743_s29 = sphi %s6910_s29, %s8059_s29  }
  0x10   : > { %8007 = sst [smem:[#allocation9_spill]] %s6751_s6  ;;  %s5772_s3 = sadd.s32 4294967294, %s6755_s30  }
  0x11   : > { %8008 = sst [smem:[#allocation10_spill]] %s6755_s30  ;;  %s6935_s26 = sadd.s32 1, %s6755_s30  }
  0x12   : > { %8009 = sst [smem:[#allocation11_spill]] %s6935_s26  ;;  %s576_s1 = sadd.s32 1, %s6751_s6 }
  0x13   : > { %s573_s8 = ssub.s32 %s6755_s30, %s6935_s26  ;;  %p586_p0 = scmp.ne.s32.totalorder %s6751_s6, %s6747_s2 }
  0x14   : > { %p574_p1 = scmp.eq.s32.totalorder %s573_s8, 0  ;;  %p587_p2 = scmp.eq.s32.totalorder %s6931_s7, 1 }
  0x15   : > { %p592_p3 = scmp.ne.s32.totalorder %s6747_s2, %s6743_s29  ;;  %p593_p4 = scmp.eq.s32.totalorder %s5772_s3, 1 }
  0x16   : > { %s6946_s27 = scalar_select %p574_p1, %s6751_s6, %s576_s1  }
  0x17   : > { %p6948_p5 = por %p587_p2, %p586_p0  ;;  %p6952_p6 = por %p593_p4, %p592_p3 }
  0x18   : > { %8010 = sst [smem:[#allocation12_spill]] %s6946_s27  ;;  %p5773_p7 = scmp.ge.s32.totalorder %s6755_s30, 1 }
  0x19   : > { %s8011_s4 = scalar_select %p6948_p5, 1, 0 }
  0x1a   : > { %s8012_s28 = scalar_select %p6952_p6, 1, 0 }
  0x1b   : > { %p600_p8 = scmp.lt.s32.totalorder %s6755_s30, 3  ;;  %p7964_p9 = scmp.eq.s32.totalorder %s6931_s7, 0 }
  0x1c   : > { %8013 = sst [smem:[#allocation13_spill]] %s8012_s28  ;;  %s6757_s5 = smov [#allocation2]  }
  0x1d   : > { %p6959_p10 = pnand %p5773_p7, %p600_p8  ;;  %s645_s0 = sshll.u32 %s6757_s5, 4  ;;  %s646_s0 = int_to_ptr.vmem [resolvable:$true] %s645_s0 }
  0x1e   : > { %s6661_s27 = scalar_lea.hbm %s7942_s12, 6144 }
  0x1f   : > { %s8014_s9 = scalar_select %p6959_p10, 1, 0 }
  0x20   : > { %p6470_p11 = pneg %p6959_p10  ;;  %p6662_p13 = scmp.ne.s32.totalorder %s7942_s12, %s6661_s27 }
  0x21   : > { %p6668_p3 = scmp.lt.u32.totalorder %s6661_s27, %s7942_s12 }
  0x22   : > { %p6967_p12 = pnand %p7964_p9, %p6470_p11 }
  0x24   : > { %p6663_p0 = pneg %p6967_p12 }
  0x26   : > { %p6664_p1 = pnand %p6663_p0, %p6662_p13 }
  0x28   : > { %p6665_p2 = pneg %p6664_p1 }
  0x2a   : > { %p6670_p4 = pnand %p6668_p3, %p6665_p2 }
  0x2c   : > { %6673 = shalt.err (!%p6670_p4)
}
  0x2d   : > { %s6674_s29 = scalar_lea.vmem %s646_s0, 6144  ;;  %p6682_p9 = scmp.lt.s32.totalorder %s646_s0, %s646_s0 }
  0x2e   : > { %p6675_p7 = scmp.ne.s32.totalorder %s646_s0, %s6674_s29  ;;  %p6683_p6 = scmp.lt.s32.totalorder %s6674_s29, %s6674_s29 }
  0x30   : > { %p6677_p8 = pnand %p6675_p7, %p6663_p0  ;;  %p6684_p5 = por %p6683_p6, %p6682_p9 }
  0x32   : > { %p6678_p11 = pneg %p6677_p8 }
  0x34   : > { %p6685_p10 = pnand %p6684_p5, %p6678_p11 }
  0x36   : > { %6688 = shalt.err (!%p6685_p10)
}
  0x37   : > { %s6758_s6 = smov 64   ;;  %s6759_s26 = smov 4  }
  0x38   : > { %6473 = dma.hbm_to_vmem [thread:$0]  (!%p6967_p12), %s7942_s12, 6144, %s646_s0, [#allocation3], %s6758_s6, %s6758_s6, %s6759_s26  }
  0x39   : > { %p8016_p13 = scmp.ne.s32.totalorder %s8014_s9, 0 }
  0x3a   : > { %p8017_p1 = scmp.eq.s32.totalorder (!%p8016_p13), %s6931_s7, 0 }
  0x3b   : > { %705 = sbr.rel (%p8016_p13) target bundleno = 6601 (0x19c9), region = 120 }
  0x42   : > { %6734 = dma.done.wait (%p8017_p1), [#allocation3], 6144   ;;  %p8018_p0 = pmov %p8017_p1 }
  0x43   : > { %p772_p5 = scmp.lt.s32.totalorder %s6931_s7, 1  ;;  %s8019_s5 = sld [smem:[#allocation14_spill]]  ;;  %vm784_vm0 = vcmask 1043456   ;;  %v6760_v7 = vmov 839922192   ;;  %v796_v9 = vlaneseq  ;;  %vm1030_vm1 = vcmask 257024  }
  0x44   : > { %6736 = vsyncadd (%p8018_p0), [#allocation3], 4294961152  ;;  %s8020_s6 = sld [smem:[#allocation18_spill]]  ;;  %v794_v8 = vunpack.c.l.s4 %v6760_v7  ;;  %s8024_s28 = sld [smem:[#allocation19_spill]]  ;;  %vm1063_vm2 = vcmask 1040384   ;;  %vm1068_vm3 = vcmask 258048  }
  0x45   : > { %s773_s29 = scalar_select %p772_p5, %s6931_s7, 1  ;;  %v7006_v11 = vshrl.u32 %v796_v9, 7  ;;  %vm6762_vm4 = vmmov 0   ;;  %vm1113_vm5 = vcmask 261120   ;;  %vm2842_vm6 = vcmask 1045504  }
  0x46   : > { %v795_v10 = vunpack.c.0.s8 %v794_v8  ;;  %s8025_s9 = sld [smem:[#allocation20_spill]]  ;;  %s8026_s1 = sld [smem:[#allocation21_spill]]  ;;  %vm2692_vm7 = vcmask 130048   ;;  %vm2768_vm8 = vcmask 36864   ;;  %vm2814_vm9 = vcmask 39936  }
  0x47   : > { %s5970_s27 = sshll.u32 %s773_s29, 3  ;;  %v827_v39 = vsub.s32 0, %v7006_v11  ;;  %v831_v40 = vsub.s32 1, %v7006_v11  ;;  %s8027_s29 = sld [smem:[#allocation15_spill]]  ;;  %vm7976_vm10 = vcmask 80896   ;;  %vm2818_vm11 = vcmask 121856  }
  0x48   : > { %v798_v12 = vsub.s32 %v795_v10, %v7006_v11  ;;  %s7988_s3 = smov 5   ;;  %s7970_s0 = smov 20   ;;  %vm2820_vm12 = vcmask 162816   ;;  %vm2822_vm13 = vcmask 203776   ;;  %vm7983_vm14 = vcmask 244736  }
  0x49   : > { %s776_s30 = scalar_lea.vmem %s8019_s5, %s5970_s27  ;;  %s6765_s27 = smov 96   ;;  %vm2826_vm15 = vcmask 285696  }
  0x4a   : > { %v778_v0 = vld [vmem:[%s776_s30] sm:$0xff]  ;;  %s8021_s26 = smov %s8020_s6  ;;  %s8023_s30 = sld [smem:[#allocation17_spill]] }
  0x4b   : > { %v782_v1 = vcombine.high %v778_v0, %v778_v0  ;;  %v785_v2 = vsel %vm784_vm0, %v778_v0, 0.0  ;;  %v6536_v5 = vld [vmem:[%s8020_s6 + $0x40] sm:$0xff]   ;;  %v6538_v22 = vld [vmem:[%s8021_s26 + $0x48] sm:$0xff]   ;;  %v6540_v24 = vld [vmem:[%s8021_s26 + $0x50] sm:$0xff]   ;;  %s8022_s6 = sld [smem:[#allocation16_spill]]  ;;  %s7990_s5 = smov 10  }
  0x4c   : > { %v6537_v6 = vld [vmem:[%s8021_s26] sm:$0xff]   ;;  %5971 = vmatprep.subr.bf16.mxu0 %v6536_v5  ;;  %v6539_v23 = vld [vmem:[%s8021_s26 + $0x8] sm:$0xff]   ;;  %v6541_v25 = vld [vmem:[%s8021_s26 + $0x10] sm:$0xff]   ;;  %s7974_s8 = smov 30   ;;  %p8051_p9 = scmp.ne.s32.totalorder %s8011_s4, 0 }
  0x4d   : > { %v786_v3 = vsel %vm784_vm0, %v782_v1, 0.0  ;;  %5972 = vmatpush3.bf16.msra.mxu0 %v6537_v6  ;;  %v6542_v26 = vld [vmem:[%s8021_s26 + $0x58] sm:$0xff]   ;;  %v6544_v28 = vld [vmem:[%s8021_s26 + $0x60] sm:$0xff]   ;;  %v6546_v30 = vld [vmem:[%s8021_s26 + $0x68] sm:$0xff]  }
  0x4e   : > { %v787_v4 = vadd.f32 %v786_v3, %v785_v2  ;;  %5973 = vmatprep.subr.bf16.mxu0 %v6538_v22  ;;  %v6543_v27 = vld [vmem:[%s8021_s26 + $0x18] sm:$0xff]   ;;  %v6545_v29 = vld [vmem:[%s8021_s26 + $0x20] sm:$0xff]   ;;  %v6547_v31 = vld [vmem:[%s8021_s26 + $0x28] sm:$0xff]  }
  0x4f   : > { %v6548_v32 = vld [vmem:[%s8021_s26 + $0x70] sm:$0xff]   ;;  %v6550_v34 = vld [vmem:[%s8021_s26 + $0x78] sm:$0xff]   ;;  %v5780_v59 = vld [vmem:[%s8024_s28] ss:$0 sm:$0xff]  ;;  %s7992_s28 = smov 112  }
  0x50   : > { %788 = vadd.xlane.f32.xlu0 %v787_v4  ;;  %v6549_v33 = vld [vmem:[%s8021_s26 + $0x30] sm:$0xff]   ;;  %v6551_v35 = vld [vmem:[%s8021_s26 + $0x38] sm:$0xff]   ;;  %v780_v42 = vld [vmem:[%s8023_s30] sm:$0x3]  ;;  %s7986_s30 = smov 35  }
  0x51   : > { %5974 = vmatpush3.bf16.msra.mxu0 %v6539_v23  ;;  %v779_v41 = vld [vmem:[%s8022_s6] sm:$0x3]  ;;  %v840_v45 = vrot.slane %v780_v42, %v827_v39  ;;  %v844_v46 = vrot.slane %v780_v42, %v831_v40  ;;  %s8028_s6 = sld [smem:[#allocation23_spill]]  ;;  %v6558_v42 = vld [vmem:[#allocation2 + $0x8] sm:$0xff]  }
  0x52   : > { %5975 = vmatprep.subr.bf16.mxu0 %v6540_v24  ;;  %v828_v43 = vrot.slane %v779_v41, %v827_v39  ;;  %v832_v44 = vrot.slane %v779_v41, %v831_v40  ;;  %v5797_v10 = vld [vmem:[%s8025_s9] ss:$0 sm:$0xff]  ;;  %v6557_v40 = vld [vmem:[#allocation2 + $0x50] sm:$0xff]   ;;  %s7968_s9 = smov 15  }
  0x53   : > { %v845_v51 = vcombine.low %v840_v45, %v844_v46  ;;  %v6556_v39 = vld [vmem:[#allocation2] sm:$0xff]   ;;  %v6561_v45 = vld [vmem:[#allocation2 + $0x70] sm:$0xff]   ;;  %v6562_v46 = vld [vmem:[#allocation2 + $0x18] sm:$0xff]  }
  0x54   : > { %v833_v49 = vcombine.low %v828_v43, %v832_v44  ;;  %v6559_v43 = vld [vmem:[#allocation2 + $0x58] sm:$0xff]   ;;  %v6560_v44 = vld [vmem:[#allocation2 + $0x10] sm:$0xff]  }
  0x55   : > { %5976 = vmatpush3.bf16.msra.mxu0 %v6541_v25  ;;  %v6552_v25 = vld [vmem:[%s7941_s11] sm:$0xff]  }
  0x56   : > { %5977 = vmatprep.subr.bf16.mxu0 %v6542_v26  ;;  %v6553_v26 = vld [vmem:[#allocation2 + $0x30] sm:$0xff]  }
  0x59   : > { %5978 = vmatpush3.bf16.msra.mxu0 %v6543_v27  ;;  %v6761_v27 = vmov 0.0  }
  0x5a   : > { %5979 = vmatprep.subr.bf16.mxu0 %v6544_v28  ;;  %6124 = vmatprep.subr.bf16.mxu1 %v6761_v27  ;;  %v6554_v28 = vld [vmem:[%s7941_s11 + $0x8] sm:$0xff]  }
  0x5b   : > { %6125 = vmatpush3.bf16.msra.mxu1 %v6552_v25  ;;  %6128 = vmatprep.mubr.msk.bf16.mxu1 %vm6762_vm4, %v6761_v27 }
  0x5c   : > { %6126 = vmatprep.subr.bf16.mxu1 %v6761_v27 }
  0x5d   : > { %5980 = vmatpush3.bf16.msra.mxu0 %v6545_v29  ;;  %v6555_v29 = vld [vmem:[#allocation2 + $0x38] sm:$0xff]  }
  0x5e   : > { %5981 = vmatprep.subr.bf16.mxu0 %v6546_v30 }
  0x5f   : > { %6127 = vmatpush3.bf16.msra.mxu1 %v6554_v28 }
  0x60   : > { %6132 = vmatprep.subr.bf16.mxu1 %v6761_v27 }
  0x61   : > { %5982 = vmatpush3.bf16.msra.mxu0 %v6547_v31 }
  0x62   : > { %5983 = vmatprep.subr.bf16.mxu0 %v6548_v32 }
  0x65   : > { %5984 = vmatpush3.bf16.msra.mxu0 %v6549_v33 }
  0x66   : > { %5985 = vmatprep.subr.bf16.mxu0 %v6550_v34  ;;  %v5799_v34 = vld [vmem:[%s8028_s6] ss:$0 sm:$0xff] }
  0x69   : > { %5986 = vmatpush3.bf16.msra.mxu0 %v6551_v35 }
  0x6a   : > { %6156 = vmatprep.subr.bf16.mxu0 %v6761_v27 }
  0xdd   : > { %v789_v13 = vpop.xlane.xlu0 %788 }
  0xde   : > { %v791_v14 = vmul.f32 0.00390625, %v789_v13  ;;  %v5798_v13 = vld [vmem:[%s8026_s1] ss:$0 sm:$0xff]  ;;  %s8029_s1 = smov %s8028_s6  ;;  %s7972_s6 = smov 25  }
  0xe0   : > { %v799_v15 = vrot.slane %v791_v14, %v798_v12 }
  0xe2   : > { %v801_v16 = vsub.f32 %v778_v0, %v799_v15 }
  0xe4   : > { %v802_v17 = vmul.f32 %v801_v16, %v801_v16 }
  0xe6   : > { %v804_v18 = vcombine.high %v802_v17, %v802_v17  ;;  %v806_v19 = vsel %vm784_vm0, %v802_v17, 0.0 }
  0xe8   : > { %v807_v20 = vsel %vm784_vm0, %v804_v18, 0.0  ;;  %vm2828_vm0 = vcmask 326656  }
  0xe9   : > { %v808_v21 = vadd.f32 %v807_v20, %v806_v19 }
  0xeb   : > { %809 = vadd.xlane.f32.xlu0 %v808_v21 }
 0x178   : > { %v810_v36 = vpop.xlane.xlu0 %809 }
 0x179   : > { %v811_v37 = vmul.f32 0.00390625, %v810_v36  ;;  %v5800_v36 = vld [vmem:[%s7940_s10] ss:$0 sm:$0xff] }
 0x17b   : > { %v812_v38 = vadd.f32 1e-05, %v811_v37 }
 0x17d   : > { %6622 = vrsqrt.f32 %v812_v38 }
 0x187   : > { %v6623_v47 = vpop.eup %6622 }
 0x188   : > { %v821_v48 = vrot.slane %v6623_v47, %v798_v12  ;;  %v6563_v47 = vld [vmem:[#allocation2 + $0x78] sm:$0xff]  }
 0x18a   : > { %v823_v50 = vmul.f32 %v821_v48, %v801_v16  ;;  %v1059_v16 = vld [vmem:[%s8027_s29] sm:$0x1]  ;;  %s6764_s29 = smov 80  }
 0x18b   : > { %v6564_v48 = vld [vmem:[#allocation2 + $0x20] sm:$0xff]  }
 0x18c   : > { %v835_v52 = vmul.f32 %v833_v49, %v823_v50  ;;  %v6565_v49 = vld [vmem:[#allocation2 + $0x90] sm:$0xff]   ;;  %v6566_v50 = vld [vmem:[#allocation2 + $0x28] sm:$0xff]  }
 0x18e   : > { %v847_v53 = vadd.f32 %v845_v51, %v835_v52  ;;  %v6567_v51 = vld [vmem:[#allocation2 + $0x98] sm:$0xff]   ;;  %v6568_v52 = vld [vmem:[#allocation2 + $0x40] sm:$0xff]  }
 0x190   : > { %v849_v54 = vcombine.high %v847_v53, %v847_v53  ;;  %v851_v56 = vpack.c.bf16 %v847_v53, %v847_v53  ;;  %v6569_v53 = vld [vmem:[#allocation2 + $0xb0] sm:$0xff]  }
 0x192   : > { %v852_v55 = vpack.c.bf16 %v849_v54, %v849_v54  ;;  %v6570_v54 = vld [vmem:[#allocation2 + $0x48] sm:$0xff]  }
 0x194   : > { %1020 = vmatprep.mubr.bf16.mxu0 %v852_v55  ;;  %v6571_v55 = vld [vmem:[#allocation2 + $0xb8] sm:$0xff]  }
 0x195   : > { %1021 = vmatmul.mubr.bf16.vlgmr.msra.gmra.mrb[0].mxu0 %v851_v56  ;;  %v6572_v56 = vld [vmem:[#allocation2 + $0x60] sm:$0xff]  }
 0x196   : > { %6157 = vmatpush3.bf16.msra.mxu0 %v6553_v26  ;;  %6160 = vmatprep.mubr.msk.bf16.mxu0 %vm6762_vm4, %v6761_v27 }
 0x197   : > { %6158 = vmatprep.subr.bf16.mxu0 %v6761_v27 }
 0x19a   : > { %6159 = vmatpush3.bf16.msra.mxu0 %v6555_v29 }
 0x19b   : > { %6172 = vmatprep.subr.bf16.mxu0 %v6761_v27 }
 0x268   : > { %v5987_v57 = vpop.f32.mrb[0].mxu0 }
 0x269   : > { %v5988_v58 = vpop.f32.mrb[1].mxu0 }
 0x26a   : > { %v5989_v60 = vadd.f32 %v5988_v58, %v5987_v57  ;;  %v5990_v61 = vpop.f32.mrb[2].mxu0  ;;  %v6573_v57 = vld [vmem:[#allocation2 + $0x68] sm:$0xff]   ;;  %v6574_v58 = vld [vmem:[#allocation2 + $0x80] sm:$0xff]  }
 0x26b   : > { %v5991_v62 = vpop.f32.mrb[3].mxu0  ;;  %v6577_v61 = vld [vmem:[#allocation2 + $0xa8] sm:$0xff]  }
 0x26c   : > { %v1023_v63 = vadd.f32 %v5989_v60, %v5780_v59  ;;  %v6575_v59 = vld [vmem:[#allocation2 + $0x88] sm:$0xff]   ;;  %v6576_v60 = vld [vmem:[#allocation2 + $0xa0] sm:$0xff]   ;;  %v6763_v62 = vmov 1966171168  }
 0x26e   : > { %v1031_v0 = vsel %vm1030_vm1, %v1023_v63, 0.0 }
 0x26f   : > { %1032 = vadd.xlane.f32.xlu1 %v1031_v0 }
 0x2fc   : > { %v1033_v1 = vpop.xlane.xlu1 %1032 }
 0x2fd   : > { %v1035_v2 = vmul.f32 0.03125, %v1033_v1 }
 0x2ff   : > { %v1036_v3 = vsub.f32 %v1023_v63, %v1035_v2  ;;  %v1843_v63 = vunpack.c.l.s4 %v6763_v62 }
 0x301   : > { %v1037_v4 = vmul.f32 %v1036_v3, %v1036_v3 }
 0x303   : > { %v1038_v5 = vsel %vm1030_vm1, %v1037_v4, 0.0  ;;  %vm2832_vm1 = vcmask 408576  }
 0x304   : > { %1039 = vadd.xlane.f32.xlu1 %v1038_v5 }
 0x391   : > { %v1040_v6 = vpop.xlane.xlu1 %1039 }
 0x392   : > { %v1041_v7 = vmul.f32 0.03125, %v1040_v6  ;;  %v1844_v6 = vunpack.c.0.s8 %v1843_v63 }
 0x394   : > { %v1042_v8 = vadd.f32 1e-05, %v1041_v7 }
 0x396   : > { %6624 = vrsqrt.f32 %v1042_v8 }
 0x3a0   : > { %v6625_v9 = vpop.eup %6624 }
 0x3a1   : > { %v1044_v12 = vmul.f32 %v6625_v9, %v1036_v3 }
 0x3a3   : > { %v1051_v14 = vmul.f32 %v5797_v10, %v1044_v12  ;;  %v7184_v10 = vsub.s32 %v1844_v6, %v7006_v11 }
 0x3a5   : > { %v1058_v15 = vadd.f32 %v5798_v13, %v1051_v14 }
 0x3a7   : > { %v1061_v17 = vrot.slane %v1058_v15, 7 }
 0x3a9   : > { %v7073_v18 = vsel %vm1063_vm2, %v1059_v16, %v1061_v17  ;;  %vm2830_vm2 = vcmask 367616  }
 0x3aa   : > { %v1069_v19 = vsel %vm1068_vm3, %v7073_v18, 0.0 }
 0x3ab   : > { %1070 = vadd.xlane.f32.xlu0 %v1069_v19 }
 0x438   : > { %v1071_v20 = vpop.xlane.xlu0 %1070 }
 0x439   : > { %v1072_v21 = vmul.f32 0.03125, %v1071_v20 }
 0x43b   : > { %v1073_v22 = vsub.f32 %v7073_v18, %v1072_v21 }
 0x43d   : > { %v1074_v23 = vmul.f32 %v1073_v22, %v1073_v22 }
 0x43f   : > { %v1075_v24 = vsel %vm1068_vm3, %v1074_v23, 0.0 }
 0x440   : > { %1076 = vadd.xlane.f32.xlu1 %v1075_v24 }
 0x4cd   : > { %v1077_v30 = vpop.xlane.xlu1 %1076 }
 0x4ce   : > { %v1078_v31 = vmul.f32 0.03125, %v1077_v30 }
 0x4d0   : > { %v1079_v32 = vadd.f32 1e-05, %v1078_v31 }
 0x4d2   : > { %6626 = vrsqrt.f32 %v1079_v32 }
 0x4dc   : > { %v6627_v33 = vpop.eup %6626 }
 0x4dd   : > { %v1081_v35 = vmul.f32 %v6627_v33, %v1073_v22 }
 0x4df   : > { %v1088_v37 = vmul.f32 %v5799_v34, %v1081_v35 }
 0x4e1   : > { %v1095_v38 = vadd.f32 %v5800_v36, %v1088_v37 }
 0x4e3   : > { %v7101_v41 = vpack.c.bf16 %v1095_v38, %v1095_v38 }
 0x4e5   : > { %6129 = vmatmul.mubr.msk.bf16.vlgmr.msra.gmra.mrb[0].mxu1 %vm1113_vm5, %v7101_v41  ;;  %6161 = vmatmul.mubr.msk.bf16.vlgmr.msra.gmra.mrb[4].mxu0 %vm1113_vm5, %v7101_v41 }
 0x4e6   : > { %6133 = vmatpush3.bf16.msra.mxu1 %v6556_v39  ;;  %6173 = vmatpush3.bf16.msra.mxu0 %v6557_v40 }
 0x4e7   : > { %6134 = vmatprep.subr.bf16.mxu1 %v6761_v27  ;;  %6174 = vmatprep.subr.bf16.mxu0 %v6761_v27 }
 0x4e8   : > { %6136 = vmatprep.mubr.msk.bf16.mxu1 %vm6762_vm4, %v6761_v27  ;;  %6176 = vmatprep.mubr.msk.bf16.mxu0 %vm6762_vm4, %v6761_v27 }
 0x4ea   : > { %6135 = vmatpush3.bf16.msra.mxu1 %v6558_v42  ;;  %6175 = vmatpush3.bf16.msra.mxu0 %v6559_v43 }
 0x4eb   : > { %6140 = vmatprep.subr.bf16.mxu1 %v6761_v27  ;;  %6188 = vmatprep.subr.bf16.mxu0 %v6761_v27 }
 0x4ed   : > { %6137 = vmatmul.mubr.msk.bf16.vlgmr.msra.gmra.mrb[4].mxu1 %vm1113_vm5, %v7101_v41  ;;  %6177 = vmatmul.mubr.msk.bf16.vlgmr.msra.gmra.mrb[8].mxu0 %vm1113_vm5, %v7101_v41 }
 0x4ee   : > { %6141 = vmatpush3.bf16.msra.mxu1 %v6560_v44  ;;  %6189 = vmatpush3.bf16.msra.mxu0 %v6561_v45 }
 0x4ef   : > { %6142 = vmatprep.subr.bf16.mxu1 %v6761_v27  ;;  %6190 = vmatprep.subr.bf16.mxu0 %v6761_v27 }
 0x4f0   : > { %6144 = vmatprep.mubr.msk.bf16.mxu1 %vm6762_vm4, %v6761_v27  ;;  %6192 = vmatprep.mubr.msk.bf16.mxu0 %vm6762_vm4, %v6761_v27 }
 0x4f2   : > { %6143 = vmatpush3.bf16.msra.mxu1 %v6562_v46  ;;  %6191 = vmatpush3.bf16.msra.mxu0 %v6563_v47 }
 0x4f3   : > { %6148 = vmatprep.subr.bf16.mxu1 %v6761_v27  ;;  %6204 = vmatprep.subr.bf16.mxu0 %v6761_v27 }
 0x4f5   : > { %6145 = vmatmul.mubr.msk.bf16.vlgmr.msra.gmra.mrb[8].mxu1 %vm1113_vm5, %v7101_v41  ;;  %6193 = vmatmul.mubr.msk.bf16.vlgmr.msra.gmra.mrb[12].mxu0 %vm1113_vm5, %v7101_v41 }
 0x4f6   : > { %6149 = vmatpush3.bf16.msra.mxu1 %v6564_v48  ;;  %6205 = vmatpush3.bf16.msra.mxu0 %v6565_v49 }
 0x4f7   : > { %6150 = vmatprep.subr.bf16.mxu1 %v6761_v27  ;;  %6206 = vmatprep.subr.bf16.mxu0 %v6761_v27 }
 0x4f8   : > { %6152 = vmatprep.mubr.msk.bf16.mxu1 %vm6762_vm4, %v6761_v27  ;;  %6208 = vmatprep.mubr.msk.bf16.mxu0 %vm6762_vm4, %v6761_v27 }
 0x4fa   : > { %6151 = vmatpush3.bf16.msra.mxu1 %v6566_v50  ;;  %6207 = vmatpush3.bf16.msra.mxu0 %v6567_v51 }
 0x4fb   : > { %6164 = vmatprep.subr.bf16.mxu1 %v6761_v27  ;;  %6220 = vmatprep.subr.bf16.mxu0 %v6761_v27 }
 0x4fd   : > { %6153 = vmatmul.mubr.msk.bf16.vlgmr.msra.gmra.mrb[12].mxu1 %vm1113_vm5, %v7101_v41  ;;  %6209 = vmatmul.mubr.msk.bf16.vlgmr.msra.gmra.mrb[16].mxu0 %vm1113_vm5, %v7101_v41 }
 0x4fe   : > { %6165 = vmatpush3.bf16.msra.mxu1 %v6568_v52  ;;  %6221 = vmatpush3.bf16.msra.mxu0 %v6569_v53 }
 0x4ff   : > { %6166 = vmatprep.subr.bf16.mxu1 %v6761_v27  ;;  %6222 = vmatprep.subr.bf16.mxu0 %v6761_v27 }
 0x500   : > { %6168 = vmatprep.mubr.msk.bf16.mxu1 %vm6762_vm4, %v6761_v27  ;;  %6224 = vmatprep.mubr.msk.bf16.mxu0 %vm6762_vm4, %v6761_v27 }
 0x502   : > { %6167 = vmatpush3.bf16.msra.mxu1 %v6570_v54  ;;  %6223 = vmatpush3.bf16.msra.mxu0 %v6571_v55 }
 0x503   : > { %6180 = vmatprep.subr.bf16.mxu1 %v6761_v27  ;;  %6233 = vmatprep.subr.bf16.mxu0 %v6761_v27 }
 0x505   : > { %6169 = vmatmul.mubr.msk.bf16.vlgmr.msra.gmra.mrb[16].mxu1 %vm1113_vm5, %v7101_v41  ;;  %6225 = vmatmul.mubr.msk.bf16.vlgmr.msra.gmra.mrb[20].mxu0 %vm1113_vm5, %v7101_v41 }
 0x506   : > { %6181 = vmatpush3.bf16.msra.mxu1 %v6572_v56  ;;  %6184 = vmatprep.mubr.msk.bf16.mxu1 %vm6762_vm4, %v6761_v27 }
 0x507   : > { %6182 = vmatprep.subr.bf16.mxu1 %v6761_v27  ;;  %6241 = vmatprep.mubr.msk.bf16.mxu0 %vm6762_vm4, %v6761_v27 }
 0x50a   : > { %6183 = vmatpush3.bf16.msra.mxu1 %v6573_v57 }
 0x50b   : > { %6196 = vmatprep.subr.bf16.mxu1 %v6761_v27 }
 0x50d   : > { %6185 = vmatmul.mubr.msk.bf16.vlgmr.msra.gmra.mrb[20].mxu1 %vm1113_vm5, %v7101_v41 }
 0x50e   : > { %6197 = vmatpush3.bf16.msra.mxu1 %v6574_v58  ;;  %6200 = vmatprep.mubr.msk.bf16.mxu1 %vm6762_vm4, %v6761_v27 }
 0x50f   : > { %6198 = vmatprep.subr.bf16.mxu1 %v6761_v27 }
 0x512   : > { %6199 = vmatpush3.bf16.msra.mxu1 %v6575_v59 }
 0x513   : > { %6212 = vmatprep.subr.bf16.mxu1 %v6761_v27 }
 0x515   : > { %6201 = vmatmul.mubr.msk.bf16.vlgmr.msra.gmra.mrb[24].mxu1 %vm1113_vm5, %v7101_v41 }
 0x516   : > { %6213 = vmatpush3.bf16.msra.mxu1 %v6576_v60  ;;  %6216 = vmatprep.mubr.msk.bf16.mxu1 %vm6762_vm4, %v6761_v27 }
 0x517   : > { %6214 = vmatprep.subr.bf16.mxu1 %v6761_v27 }
 0x51a   : > { %6215 = vmatpush3.bf16.msra.mxu1 %v6577_v61 }
 0x51b   : > { %6228 = vmatprep.subr.mxu1 %v6761_v27 }
 0x51d   : > { %6217 = vmatmul.mubr.msk.bf16.vlgmr.msra.gmra.mrb[28].mxu1 %vm1113_vm5, %v7101_v41 }
 0x51e   : > { %6230 = vmatprep.mubr.msk.f32.mxu1 %vm6762_vm4, %v6761_v27 }
 0x5b8   : > { %v1151_v0 = vpop.f32.mrb[0].mxu1  ;;  %v1407_v1 = vpop.f32.mrb[4].mxu0 }
 0x5b9   : > { %v6162_v2 = vpop.f32.mrb[5].mxu0  ;;  %2888 = vrot.lane.b32.xlu1 %v1151_v0, %s6764_s29  ;;  %2690 = vrot.lane.b32.xlu0 %v1151_v0, %s6765_s27  ;;  %v6130_v3 = vpop.f32.mrb[1].mxu1  ;;  %v7179_v7 = vmul.f32 0.25, %v1151_v0  ;;  %v1965_v24 = vrot.slane %v1407_v1, %v7184_v10  ;;  %v1958_v26 = vcombine.high %v1407_v1, %v1407_v1 }
 0x5ba   : > { %v1154_v4 = vpop.f32.mrb[2].mxu1  ;;  %v1410_v5 = vpop.f32.mrb[6].mxu0 }
 0x5bb   : > { %v6131_v8 = vpop.f32.mrb[3].mxu1  ;;  %v6163_v9 = vpop.f32.mrb[7].mxu0  ;;  %v1973_v28 = vcombine.high %v1965_v24, %v1965_v24  ;;  %v7193_v29 = vrot.slane %v1965_v24, %v7184_v10  ;;  %v1972_v46 = vrot.slane %v1958_v26, %v7184_v10 }
 0x5bd   : > { %2886 = vrot.lane.b32.xlu1 %v7179_v7, %s7992_s28  ;;  %v1994_v47 = vrot.slane %v1973_v28, %v7184_v10  ;;  %v1995_v48 = vcombine.high %v7193_v29, %v7193_v29  ;;  %v1987_v58 = vrot.slane %v1972_v46, %v7184_v10  ;;  %s8037_s28 = smov 30  }
 0x5bf   : > { %v1996_v59 = vcombine.high %v1994_v47, %v1994_v47  ;;  %v7214_v60 = vcombine.low %v1994_v47, %v1995_v48 }
 0x5c0   : > { %v1251_v12 = vpop.f32.mrb[4].mxu1  ;;  %v7186_v13 = vpop.f32.mrb[8].mxu0 }
 0x5c1   : > { %v1848_v14 = vrot.slane %v1251_v12, %v7184_v10  ;;  %v6138_v15 = vpop.f32.mrb[5].mxu1  ;;  %v6178_v16 = vpop.f32.mrb[9].mxu0  ;;  %v1841_v20 = vcombine.high %v1251_v12, %v1251_v12  ;;  %v2043_v54 = vrot.slane %v7186_v13, %v7184_v10  ;;  %v2036_v24 = vcombine.high %v7186_v13, %v7186_v13 }
 0x5c2   : > { %v1254_v17 = vpop.f32.mrb[6].mxu1  ;;  %v1514_v19 = vpop.f32.mrb[10].mxu0 }
 0x5c3   : > { %v1856_v21 = vcombine.high %v1848_v14, %v1848_v14  ;;  %v6139_v22 = vpop.f32.mrb[7].mxu1  ;;  %v6179_v23 = vpop.f32.mrb[11].mxu0  ;;  %v1855_v11 = vrot.slane %v1841_v20, %v7184_v10  ;;  %v1863_v30 = vrot.slane %v1848_v14, %v7184_v10  ;;  %v2051_v8 = vcombine.high %v2043_v54, %v2043_v54 }
 0x5c4   : > { %v7222_v9 = vrot.slane %v2043_v54, %v7184_v10  ;;  %v2408_v23 = vcombine.low %v1996_v59, %v1987_v58 }
 0x5c5   : > { %v1877_v25 = vrot.slane %v1856_v21, %v7184_v10  ;;  %v1870_v41 = vrot.slane %v1855_v11, %v7184_v10 }
 0x5c7   : > { %v2309_v36 = vcombine.low %v1863_v30, %v1877_v25  ;;  %v5840_v37 = vcombine.high %v1863_v30, %v1877_v25 }
 0x5c8   : > { %v1303_v31 = vpop.f32.mrb[8].mxu1  ;;  %v7196_v32 = vpop.f32.mrb[12].mxu0 }
 0x5c9   : > { %v1887_v33 = vrot.slane %v1303_v31, %v7184_v10  ;;  %v6146_v34 = vpop.f32.mrb[9].mxu1  ;;  %v6194_v35 = vpop.f32.mrb[13].mxu0  ;;  %v1880_v38 = vcombine.high %v1303_v31, %v1303_v31  ;;  %v2319_v52 = vrot.slane %v2309_v36, %v7184_v10  ;;  %v2326_v53 = vrot.slane %v5840_v37, %v7184_v10 }
 0x5ca   : > { %v1306_v39 = vpop.f32.mrb[10].mxu1  ;;  %v1618_v40 = vpop.f32.mrb[14].mxu0  ;;  %v2121_v57 = vrot.slane %v7196_v32, %v7184_v10  ;;  %v2114_v11 = vcombine.high %v7196_v32, %v7196_v32  ;;  %v2073_v34 = vcombine.high %v7222_v9, %v7222_v9 }
 0x5cb   : > { %v1895_v42 = vcombine.high %v1887_v33, %v1887_v33  ;;  %v1902_v43 = vrot.slane %v1887_v33, %v7184_v10  ;;  %v6147_v44 = vpop.f32.mrb[11].mxu1  ;;  %v6195_v45 = vpop.f32.mrb[15].mxu0  ;;  %v1894_v55 = vrot.slane %v1880_v38, %v7184_v10  ;;  %v2341_v6 = vcombine.low %v2319_v52, %v2326_v53 }
 0x5cc   : > { %v2129_v17 = vcombine.high %v2121_v57, %v2121_v57  ;;  %v7235_v33 = vrot.slane %v2051_v8, %v7184_v10  ;;  %v7240_v13 = vrot.slane %v2121_v57, %v7184_v10  ;;  %v2424_v39 = vrot.slane %v2408_v23, %v7184_v10 }
 0x5cd   : > { %v1916_v49 = vrot.slane %v1895_v42, %v7184_v10  ;;  %v1917_v50 = vcombine.high %v1902_v43, %v1902_v43  ;;  %v2311_v51 = vcombine.low %v1870_v41, %v1902_v43  ;;  %v1909_v12 = vrot.slane %v1894_v55, %v7184_v10 }
 0x5ce   : > { %v2349_v35 = vrot.slane %v2341_v6, %v7184_v10  ;;  %v2150_v32 = vrot.slane %v2129_v17, %v7184_v10  ;;  %v2050_v40 = vrot.slane %v2036_v24, %v7184_v10  ;;  %v2128_v41 = vrot.slane %v2114_v11, %v7184_v10 }
 0x5cf   : > { %v2312_v56 = vcombine.low %v1916_v49, %v1917_v50  ;;  %v1918_v61 = vcombine.high %v1916_v49, %v1916_v49  ;;  %v2333_v0 = vrot.slane %v2311_v51, %v7184_v10  ;;  %v2417_v50 = vrot.slane %v7214_v60, %v7184_v10 }
 0x5d0   : > { %v1355_v62 = vpop.f32.mrb[12].mxu1  ;;  %v7216_v63 = vpop.f32.mrb[16].mxu0  ;;  %v2457_v51 = vcombine.low %v7235_v33, %v2073_v34  ;;  %v2152_v57 = vcombine.high %v2150_v32, %v2150_v32  ;;  %v2065_v60 = vrot.slane %v2050_v40, %v7184_v10 }
 0x5d1   : > { %v2340_v1 = vrot.slane %v2312_v56, %v7184_v10  ;;  %v1919_v2 = vcombine.high %v1355_v62, %v1355_v62  ;;  %v1926_v3 = vrot.slane %v1355_v62, %v7184_v10  ;;  %v6154_v4 = vpop.f32.mrb[13].mxu1  ;;  %v6210_v5 = vpop.f32.mrb[17].mxu0  ;;  %v2358_v25 = vcombine.low %v1918_v61, %v1909_v12 }
 0x5d2   : > { %v1358_v14 = vpop.f32.mrb[14].mxu1  ;;  %v1722_v15 = vpop.f32.mrb[18].mxu0  ;;  %v2151_v56 = vcombine.high %v7240_v13, %v7240_v13  ;;  %v2199_v4 = vrot.slane %v7216_v63, %v7184_v10 }
 0x5d3   : > { %v2342_v16 = vcombine.low %v2333_v0, %v2340_v1  ;;  %v1933_v19 = vrot.slane %v1919_v2, %v7184_v10  ;;  %v1934_v20 = vcombine.high %v1926_v3, %v1926_v3  ;;  %v6155_v21 = vpop.f32.mrb[15].mxu1  ;;  %v6211_v22 = vpop.f32.mrb[19].mxu0  ;;  %v1941_v26 = vrot.slane %v1926_v3, %v7184_v10 }
 0x5d4   : > { %v2368_v45 = vrot.slane %v2358_v25, %v7184_v10  ;;  %v2439_v0 = vcombine.low %v2417_v50, %v2424_v39  ;;  %v2143_v3 = vrot.slane %v2128_v41, %v7184_v10  ;;  %v2074_v15 = vcombine.high %v7235_v33, %v7235_v33 }
 0x5d5   : > { %v1948_v28 = vrot.slane %v1933_v19, %v7184_v10  ;;  %v1955_v30 = vrot.slane %v1934_v20, %v7184_v10  ;;  %v2356_v31 = vrot.slane %v2342_v16, %v7184_v10  ;;  %v2473_v16 = vrot.slane %v2457_v51, %v7184_v10 }
 0x5d6   : > { %v2507_v17 = vcombine.low %v2150_v32, %v2151_v56  ;;  %v2508_v19 = vcombine.low %v2152_v57, %v2143_v3  ;;  %v2207_v25 = vcombine.high %v2199_v4, %v2199_v4  ;;  %v7275_v11 = vrot.slane %v2199_v4, %v7184_v10 }
 0x5d7   : > { %v2359_v36 = vcombine.low %v1941_v26, %v1955_v30  ;;  %v5841_v37 = vcombine.high %v1941_v26, %v1955_v30  ;;  %v2361_v38 = vcombine.low %v1948_v28, %v7193_v29  ;;  %v2357_v44 = vcombine.low %v2349_v35, %v2356_v31 }
 0x5d8   : > { %v1459_v42 = vpop.f32.mrb[16].mxu1  ;;  %v7248_v43 = vpop.f32.mrb[20].mxu0  ;;  %v2447_v39 = vrot.slane %v2439_v0, %v7184_v10  ;;  %v2458_v40 = vcombine.low %v2074_v15, %v2065_v60  ;;  %v2536_v41 = vrot.slane %v2508_v19, %v7184_v10  ;;  %v2229_v50 = vcombine.high %v7275_v11, %v7275_v11 }
 0x5d9   : > { %v2375_v46 = vrot.slane %v2359_v36, %v7184_v10  ;;  %v2382_v47 = vrot.slane %v5841_v37, %v7184_v10  ;;  %v2389_v48 = vrot.slane %v2361_v38, %v7184_v10  ;;  %v6170_v49 = vpop.f32.mrb[17].mxu1  ;;  %v6226_v29 = vpop.f32.mrb[21].mxu0  ;;  %v1997_v52 = vcombine.high %v1459_v42, %v1459_v42 }
 0x5da   : > { %v2004_v53 = vrot.slane %v1459_v42, %v7184_v10  ;;  %v1462_v54 = vpop.f32.mrb[18].mxu1  ;;  %v1826_v55 = vpop.f32.mrb[22].mxu0  ;;  %v2192_v49 = vcombine.high %v7216_v63, %v7216_v63  ;;  %v7297_v29 = vrot.slane %v2207_v25, %v7184_v10  ;;  %v2480_v56 = vrot.slane %v2458_v40, %v7184_v10 }
 0x5db   : > { %v2390_v58 = vcombine.low %v2368_v45, %v2375_v46  ;;  %v2391_v59 = vcombine.low %v2382_v47, %v2389_v48  ;;  %v6171_v61 = vpop.f32.mrb[19].mxu1  ;;  %v6227_v62 = vpop.f32.mrb[23].mxu0  ;;  %v2011_v1 = vrot.slane %v1997_v52, %v7184_v10  ;;  %v2529_v46 = vrot.slane %v2507_v17, %v7184_v10 }
 0x5dc   : > { %v2012_v2 = vcombine.high %v2004_v53, %v2004_v53  ;;  %v2019_v6 = vrot.slane %v2004_v53, %v7184_v10  ;;  %v2206_v60 = vrot.slane %v2192_v49, %v7184_v10 }
 0x5dd   : > { %v2398_v5 = vrot.slane %v2390_v58, %v7184_v10  ;;  %v2026_v8 = vrot.slane %v2011_v1, %v7184_v10  ;;  %v2405_v14 = vrot.slane %v2391_v59, %v7184_v10  ;;  %v2538_v57 = vcombine.low %v2529_v46, %v2536_v41 }
 0x5de   : > { %v2033_v12 = vrot.slane %v2012_v2, %v7184_v10  ;;  %v2270_v58 = vcombine.high %v7248_v43, %v7248_v43 }
 0x5df   : > { %v2456_v22 = vcombine.low %v2026_v8, %v7222_v9  ;;  %v2406_v24 = vcombine.low %v2398_v5, %v2405_v14  ;;  %v2277_v9 = vrot.slane %v7248_v43, %v7184_v10  ;;  %v2552_v17 = vrot.slane %v2538_v57, %v7184_v10 }
 0x5e0   : > { %v2409_v20 = vcombine.low %v2019_v6, %v2033_v12  ;;  %v5842_v21 = vcombine.high %v2019_v6, %v2033_v12  ;;  %v1563_v23 = vpop.f32.mrb[20].mxu1  ;;  %v2284_v14 = vrot.slane %v2270_v58, %v7184_v10 }
 0x5e1   : > { %v2075_v26 = vcombine.high %v1563_v23, %v1563_v23  ;;  %v2082_v28 = vrot.slane %v1563_v23, %v7184_v10  ;;  %v6186_v30 = vpop.f32.mrb[21].mxu1  ;;  %v2466_v34 = vrot.slane %v2456_v22, %v7184_v10  ;;  %v7281_v32 = vpack.c.bf16 %v2406_v24, %v2357_v44 }
 0x5e2   : > { %v2431_v31 = vrot.slane %v2409_v20, %v7184_v10  ;;  %v2438_v33 = vrot.slane %v5842_v21, %v7184_v10  ;;  %v1566_v35 = vpop.f32.mrb[22].mxu1  ;;  %v2285_v52 = vcombine.high %v2277_v9, %v2277_v9  ;;  %v2292_v15 = vrot.slane %v2277_v9, %v7184_v10 }
 0x5e3   : > { %v2089_v36 = vrot.slane %v2075_v26, %v7184_v10  ;;  %v2090_v37 = vcombine.high %v2082_v28, %v2082_v28  ;;  %v6187_v38 = vpop.f32.mrb[23].mxu1  ;;  %v2488_v45 = vcombine.low %v2466_v34, %v2473_v16  ;;  %6234 = vmatpush3.bf16.msra.mxu0 %v7281_v32  ;;  %v2097_v44 = vrot.slane %v2082_v28, %v7184_v10 }
 0x5e4   : > { %v2440_v42 = vcombine.low %v2431_v31, %v2438_v33  ;;  %6235 = vmatprep.subr.bf16.mxu0 %v6761_v27  ;;  %v2306_v5 = vrot.slane %v2285_v52, %v7184_v10  ;;  %v2230_v23 = vcombine.high %v7297_v29, %v7297_v29  ;;  %v2299_v34 = vrot.slane %v2284_v14, %v7184_v10 }
 0x5e5   : > { %v2104_v47 = vrot.slane %v2089_v36, %v7184_v10  ;;  %v2111_v48 = vrot.slane %v2090_v37, %v7184_v10  ;;  %v2496_v20 = vrot.slane %v2488_v45, %v7184_v10  ;;  %v2307_v35 = vcombine.high %v2292_v15, %v2292_v15 }
 0x5e6   : > { %v2454_v51 = vrot.slane %v2440_v42, %v7184_v10  ;;  %v2308_v28 = vcombine.high %v2306_v5, %v2306_v5  ;;  %v2221_v45 = vrot.slane %v2206_v60, %v7184_v10 }
 0x5e7   : > { %v2459_v53 = vcombine.low %v2097_v44, %v2111_v48  ;;  %v5843_v54 = vcombine.high %v2097_v44, %v2111_v48  ;;  %v2506_v55 = vcombine.low %v2104_v47, %v7240_v13  ;;  %v2557_v13 = vcombine.low %v7297_v29, %v2229_v50 }
 0x5e8   : > { %v1667_v63 = vpop.f32.mrb[24].mxu1  ;;  %v2455_v59 = vcombine.low %v2447_v39, %v2454_v51  ;;  %v2653_v47 = vcombine.low %v2308_v28, %v2299_v34  ;;  %v2603_v51 = vcombine.low %v2230_v23, %v2221_v45  ;;  %v2652_v52 = vcombine.low %v2306_v5, %v2307_v35 }
 0x5e9   : > { %v2487_v61 = vrot.slane %v2459_v53, %v7184_v10  ;;  %v2515_v62 = vrot.slane %v5843_v54, %v7184_v10  ;;  %v2522_v0 = vrot.slane %v2506_v55, %v7184_v10  ;;  %v2153_v1 = vcombine.high %v1667_v63, %v1667_v63  ;;  %v6202_v2 = vpop.f32.mrb[25].mxu1 }
 0x5ea   : > { %v2160_v3 = vrot.slane %v1667_v63, %v7184_v10  ;;  %v1670_v4 = vpop.f32.mrb[26].mxu1  ;;  %v2585_v24 = vrot.slane %v2557_v13, %v7184_v10  ;;  %v2667_v63 = vrot.slane %v2653_v47, %v7184_v10  ;;  %v2660_v2 = vrot.slane %v2652_v52, %v7184_v10 }
 0x5eb   : > { %v2489_v43 = vcombine.low %v2480_v56, %v2487_v61  ;;  %v2537_v6 = vcombine.low %v2515_v62, %v2522_v0  ;;  %v2167_v8 = vrot.slane %v2153_v1, %v7184_v10  ;;  %v6203_v12 = vpop.f32.mrb[27].mxu1  ;;  %v2613_v0 = vrot.slane %v2603_v51, %v7184_v10 }
 0x5ec   : > { %v2168_v16 = vcombine.high %v2160_v3, %v2160_v3  ;;  %v2175_v25 = vrot.slane %v2160_v3, %v7184_v10 }
 0x5ed   : > { %v2182_v19 = vrot.slane %v2167_v8, %v7184_v10  ;;  %v2503_v21 = vrot.slane %v2489_v43, %v7184_v10  ;;  %v2545_v22 = vrot.slane %v2537_v6, %v7184_v10  ;;  %v2668_v6 = vcombine.low %v2660_v2, %v2667_v63 }
 0x5ee   : > { %v2189_v26 = vrot.slane %v2168_v16, %v7184_v10 }
 0x5ef   : > { %v2556_v30 = vcombine.low %v2182_v19, %v7275_v11  ;;  %v2504_v31 = vcombine.low %v2496_v20, %v2503_v21  ;;  %v2553_v33 = vcombine.low %v2545_v22, %v2552_v17 }
 0x5f0   : > { %v2554_v9 = vcombine.low %v2175_v25, %v2189_v26  ;;  %v5844_v36 = vcombine.high %v2175_v25, %v2189_v26  ;;  %v1771_v37 = vpop.f32.mrb[28].mxu1 }
 0x5f1   : > { %v2578_v38 = vrot.slane %v2556_v30, %v7184_v10  ;;  %v2231_v39 = vcombine.high %v1771_v37, %v1771_v37  ;;  %v2238_v40 = vrot.slane %v1771_v37, %v7184_v10  ;;  %v6218_v41 = vpop.f32.mrb[29].mxu1  ;;  %v2685_v42 = vpack.c.bf16 %v2504_v31, %v2455_v59 }
 0x5f2   : > { %v2564_v46 = vrot.slane %v2554_v9, %v7184_v10  ;;  %v2571_v11 = vrot.slane %v5844_v36, %v7184_v10  ;;  %v1774_v44 = vpop.f32.mrb[30].mxu1 }
 0x5f3   : > { %v2587_v48 = vcombine.low %v2578_v38, %v2585_v24  ;;  %v2245_v49 = vrot.slane %v2231_v39, %v7184_v10  ;;  %v2246_v29 = vcombine.high %v2238_v40, %v2238_v40  ;;  %v6219_v50 = vpop.f32.mrb[31].mxu1  ;;  %6236 = vmatpush3.bf16.msra.mxu0 %v2685_v42  ;;  %v2253_v54 = vrot.slane %v2238_v40, %v7184_v10 }
 0x5f4   : > { %v2586_v53 = vcombine.low %v2564_v46, %v2571_v11  ;;  %6237 = vmatprep.subr.bf16.mxu0 %v6761_v27 }
 0x5f5   : > { %v2260_v55 = vrot.slane %v2245_v49, %v7184_v10  ;;  %v2267_v56 = vrot.slane %v2246_v29, %v7184_v10  ;;  %v2601_v57 = vrot.slane %v2587_v48, %v7184_v10 }
 0x5f6   : > { %v2594_v58 = vrot.slane %v2586_v53, %v7184_v10 }
 0x5f7   : > { %v2604_v59 = vcombine.low %v2253_v54, %v2267_v56  ;;  %v5845_v61 = vcombine.high %v2253_v54, %v2267_v56  ;;  %v2606_v62 = vcombine.low %v2260_v55, %v2292_v15  ;;  %v2675_v15 = vrot.slane %v2668_v6, %v7184_v10 }
 0x5f8   : > { %v2602_v1 = vcombine.low %v2594_v58, %v2601_v57 }
 0x5f9   : > { %v2620_v60 = vrot.slane %v2604_v59, %v7184_v10  ;;  %v2627_v13 = vrot.slane %v5845_v61, %v7184_v10  ;;  %v2634_v3 = vrot.slane %v2606_v62, %v7184_v10 }
 0x5fa   : > { %v2686_v4 = vpack.c.bf16 %v2602_v1, %v2553_v33 }
 0x5fb   : > { %v2635_v5 = vcombine.low %v2613_v0, %v2620_v60  ;;  %v2636_v43 = vcombine.low %v2627_v13, %v2634_v3 }
 0x5fc   : > { %6238 = vmatpush3.bf16.msra.mxu0 %v2686_v4 }
 0x5fd   : > { %6239 = vmatprep.subr.bf16.mxu0 %v6761_v27  ;;  %v2643_v8 = vrot.slane %v2635_v5, %v7184_v10  ;;  %v2650_v12 = vrot.slane %v2636_v43, %v7184_v10 }
 0x5ff   : > { %v2651_v14 = vcombine.low %v2643_v8, %v2650_v12 }
 0x601   : > { %v2687_v16 = vpack.c.bf16 %v2675_v15, %v2651_v14 }
 0x603   : > { %v2844_v17 = vsel %vm2842_vm6, %v2687_v16, 0 }
 0x604   : > { %6240 = vmatpush3.bf16.msra.mxu0 %v2844_v17 }
 0x605   : > { %6262 = vmatprep.subr.bf16.mxu0 %v6761_v27 }
 0x62b   : > { %v2691_v19 = vpop.permute.xlu0 %2690  ;;  %v2889_v20 = vpop.permute.xlu1 %2888 }
 0x62c   : > { %6229 = vmatpush3.xpose.msk.msra.mxu1 %vm2692_vm7, %v2691_v19 }
 0x62d   : > { %6245 = vmatprep.subr.mxu1 %v6761_v27 }
 0x62f   : > { %6231 = vmatmul.mubr.msk.f32.vlgmr.msra.gmra.mrb[32].mxu1 %vm2692_vm7, %v7179_v7  ;;  %v2887_v21 = vpop.permute.xlu1 %2886 }
 0x630   : > { %6246 = vmatpush3.xpose.msk.msra.mxu1 %vm2692_vm7, %v2889_v20  ;;  %6247 = vmatprep.mubr.msk.f32.mxu1 %vm6762_vm4, %v6761_v27 }
 0x631   : > { %6250 = vmatprep.subr.bf16.mxu1 %v6761_v27 }
 0x633   : > { %6248 = vmatmul.mubr.msk.f32.vlgmr.msra.gmra.mrb[34].mxu1 %vm2692_vm7, %v2887_v21 }
 0x634   : > { %6251 = vmatpush3.bf16.msra.mxu1 %v7281_v32  ;;  %6258 = vmatprep.mubr.msk.bf16.mxu1 %vm6762_vm4, %v6761_v27 }
 0x635   : > { %6252 = vmatprep.subr.bf16.mxu1 %v6761_v27 }
 0x638   : > { %6253 = vmatpush3.bf16.msra.mxu1 %v2685_v42 }
 0x639   : > { %6254 = vmatprep.subr.bf16.mxu1 %v6761_v27 }
 0x63c   : > { %6255 = vmatpush3.bf16.msra.mxu1 %v2686_v4 }
 0x63d   : > { %6256 = vmatprep.subr.bf16.mxu1 %v6761_v27 }
 0x640   : > { %6257 = vmatpush3.bf16.msra.mxu1 %v2844_v17 }
 0x641   : > { %6270 = vmatprep.subr.bf16.mxu1 %v6761_v27 }
 0x702   : > { %v2764_v7 = vpop.f32.mrb[32].mxu1 }
 0x703   : > { %v6232_v22 = vpop.f32.mrb[33].mxu1  ;;  %v2769_v23 = vsel %vm2768_vm8, %v2764_v7, -inf }
 0x704   : > { %2770 = vmax.xlane.f32.xlu1 %v2769_v23 }
 0x706   : > { %v2960_v32 = vpop.f32.mrb[34].mxu1 }
 0x707   : > { %v6249_v24 = vpop.f32.mrb[35].mxu1  ;;  %v2964_v25 = vsel %vm2768_vm8, %v2960_v32, -inf }
 0x708   : > { %2965 = vmax.xlane.f32.xlu0 %v2964_v25 }
 0x791   : > { %v2771_v26 = vpop.xlane.xlu1 %2770 }
 0x792   : > { %v2772_v28 = vsub.f32 %v2764_v7, %v2771_v26 }
 0x794   : > { %v2773_v30 = vmul.f32 1.442695, %v2772_v28 }
 0x795   : > { %v2966_v31 = vpop.xlane.xlu0 %2965 }
 0x796   : > { %6628 = vpow2.f32 %v2773_v30  ;;  %v2967_v33 = vsub.f32 %v2960_v32, %v2966_v31 }
 0x798   : > { %v2968_v34 = vmul.f32 1.442695, %v2967_v33  ;;  %v6578_v33 = vld [vmem:[%s7943_s13] sm:$0xff]  }
 0x79a   : > { %6630 = vpow2.f32 %v2968_v34  ;;  %v6579_v34 = vld [vmem:[%s7943_s13 + $0x8] sm:$0xff]  }
 0x7a0   : > { %v6629_v35 = vpop.eup %6628 }
 0x7a1   : > { %v2775_v9 = vsel %vm2768_vm8, %v6629_v35, 0.0 }
 0x7a2   : > { %2776 = vadd.xlane.f32.xlu0 %v2775_v9 }
 0x7a4   : > { %v6631_v36 = vpop.eup %6630 }
 0x7a5   : > { %v2970_v37 = vsel %vm2768_vm8, %v6631_v36, 0.0 }
 0x7a6   : > { %2971 = vadd.xlane.f32.xlu0 %v2970_v37 }
 0x82f   : > { %v2777_v38 = vpop.xlane.xlu0 %2776 }
 0x830   : > { %6632 = vrcp.f32 %v2777_v38 }
 0x833   : > { %v2972_v39 = vpop.xlane.xlu0 %2971 }
 0x834   : > { %6634 = vrcp.f32 %v2972_v39 }
 0x83a   : > { %v6633_v40 = vpop.eup %6632 }
 0x83b   : > { %v2779_v41 = vmul.f32 %v6633_v40, %v6629_v35 }
 0x83d   : > { %2781 = vrot.lane.b32.xlu1 %v2779_v41, %s7988_s3 }
 0x83e   : > { %v6635_v42 = vpop.eup %6634 }
 0x83f   : > { %v2974_v45 = vmul.f32 %v6635_v42, %v6631_v36 }
 0x841   : > { %2784 = vrot.lane.b32.xlu1 %v2779_v41, %s7990_s5  ;;  %2976 = vrot.lane.b32.xlu0 %v2974_v45, %s7988_s3  ;;  %s8036_s3 = smov 25  }
 0x845   : > { %2787 = vrot.lane.b32.xlu1 %v2779_v41, %s7968_s9  ;;  %2982 = vrot.lane.b32.xlu0 %v2974_v45, %s7968_s9  ;;  %s7984_s9 = smov 40  }
 0x849   : > { %2790 = vrot.lane.b32.xlu1 %v2779_v41, %s7970_s0  ;;  %2985 = vrot.lane.b32.xlu0 %v2974_v45, %s7970_s0  ;;  %s7981_s0 = smov 45  }
 0x84d   : > { %2793 = vrot.lane.b32.xlu1 %v2779_v41, %s7972_s6  ;;  %2988 = vrot.lane.b32.xlu0 %v2974_v45, %s7972_s6  ;;  %s7979_s6 = smov 50  }
 0x851   : > { %2796 = vrot.lane.b32.xlu1 %v2779_v41, %s7974_s8  ;;  %2991 = vrot.lane.b32.xlu0 %v2974_v45, %s7974_s8  ;;  %s7977_s8 = smov 55  }
 0x855   : > { %2799 = vrot.lane.b32.xlu1 %v2779_v41, %s7986_s30  ;;  %2994 = vrot.lane.b32.xlu0 %v2974_v45, %s7986_s30  ;;  %s8035_s30 = smov 20  }
 0x859   : > { %2802 = vrot.lane.b32.xlu1 %v2779_v41, %s7984_s9  ;;  %2997 = vrot.lane.b32.xlu0 %v2974_v45, %s7984_s9  ;;  %s8034_s9 = smov 15  }
 0x85d   : > { %2979 = vrot.lane.b32.xlu1 %v2974_v45, %s7990_s5  ;;  %3000 = vrot.lane.b32.xlu0 %v2974_v45, %s7981_s0  ;;  %s8038_s5 = smov 35  }
 0x861   : > { %2805 = vrot.lane.b32.xlu1 %v2779_v41, %s7981_s0  ;;  %3003 = vrot.lane.b32.xlu0 %v2974_v45, %s7979_s6  ;;  %s8030_s0 = sld [smem:[#allocation22_spill]] }
 0x865   : > { %2808 = vrot.lane.b32.xlu1 %v2779_v41, %s7979_s6  ;;  %3006 = vrot.lane.b32.xlu0 %v2974_v45, %s7977_s8  ;;  %s8039_s6 = smov 40  }
 0x867   : > { %v1065_v17 = vld [vmem:[%s8030_s0] sm:$0x1f] }
 0x869   : > { %2811 = vrot.lane.b32.xlu1 %v2779_v41, %s7977_s8  ;;  %s8031_s8 = smov 112  }
 0x8af   : > { %v2782_v46 = vpop.permute.xlu1 %2781 }
 0x8b0   : > { %v2815_v0 = vsel %vm2814_vm9, %v2779_v41, %v2782_v46  ;;  %v5852_v46 = vld [vmem:[%s7944_s14] ss:$0 sm:$0xff] }
 0x8b3   : > { %v2785_v11 = vpop.permute.xlu1 %2784  ;;  %v2977_v44 = vpop.permute.xlu0 %2976 }
 0x8b4   : > { %v3009_v58 = vsel %vm2814_vm9, %v2974_v45, %v2977_v44  ;;  %v2817_v2 = vsel %vm7976_vm10, %v2815_v0, %v2785_v11  ;;  %v5857_v0 = vld [vmem:[%s7946_s16] ss:$0 sm:$0xff] }
 0x8b7   : > { %v2788_v47 = vpop.permute.xlu1 %2787  ;;  %v2983_v48 = vpop.permute.xlu0 %2982 }
 0x8b8   : > { %v2819_v4 = vsel %vm2818_vm11, %v2817_v2, %v2788_v47 }
 0x8bb   : > { %v2791_v49 = vpop.permute.xlu1 %2790  ;;  %v2986_v29 = vpop.permute.xlu0 %2985 }
 0x8bc   : > { %v2821_v43 = vsel %vm2820_vm12, %v2819_v4, %v2791_v49  ;;  %v6584_v4 = vld [vmem:[%s7949_s19 + $0x10] sm:$0xff]  }
 0x8bf   : > { %v2794_v50 = vpop.permute.xlu1 %2793  ;;  %v2989_v51 = vpop.permute.xlu0 %2988 }
 0x8c0   : > { %v2823_v8 = vsel %vm2822_vm13, %v2821_v43, %v2794_v50  ;;  %v5858_v43 = vld [vmem:[%s7948_s18] ss:$0 sm:$0xff] }
 0x8c3   : > { %v2797_v52 = vpop.permute.xlu1 %2796  ;;  %v2992_v53 = vpop.permute.xlu0 %2991 }
 0x8c4   : > { %v2825_v14 = vsel %vm7983_vm14, %v2823_v8, %v2797_v52 }
 0x8c7   : > { %v2800_v54 = vpop.permute.xlu1 %2799  ;;  %v2995_v55 = vpop.permute.xlu0 %2994 }
 0x8c8   : > { %v2827_v20 = vsel %vm2826_vm15, %v2825_v14, %v2800_v54 }
 0x8cb   : > { %v2803_v56 = vpop.permute.xlu1 %2802  ;;  %v2998_v57 = vpop.permute.xlu0 %2997 }
 0x8cc   : > { %v2829_v7 = vsel %vm2828_vm0, %v2827_v20, %v2803_v56  ;;  %v6580_v56 = vld [vmem:[%s7947_s17] sm:$0xff]  }
 0x8cf   : > { %v2980_v63 = vpop.permute.xlu1 %2979  ;;  %v3001_v59 = vpop.permute.xlu0 %3000 }
 0x8d0   : > { %v3010_v61 = vsel %vm7976_vm10, %v3009_v58, %v2980_v63  ;;  %vm7994_vm10 = vcmask 449536  }
 0x8d1   : > { %v3011_v62 = vsel %vm2818_vm11, %v3010_v61, %v2983_v48  ;;  %v5856_v61 = vld [vmem:[%s7945_s15] ss:$0 sm:$0xff] }
 0x8d2   : > { %v3012_v1 = vsel %vm2820_vm12, %v3011_v62, %v2986_v29 }
 0x8d3   : > { %v3013_v60 = vsel %vm2822_vm13, %v3012_v1, %v2989_v51  ;;  %v2806_v13 = vpop.permute.xlu1 %2805  ;;  %v3004_v3 = vpop.permute.xlu0 %3003 }
 0x8d4   : > { %v3014_v5 = vsel %vm7983_vm14, %v3013_v60, %v2992_v53  ;;  %v2831_v23 = vsel %vm2830_vm2, %v2829_v7, %v2806_v13  ;;  %vm7993_vm14 = vcmask 490496   ;;  %v6582_v13 = vld [vmem:[%s7949_s19] sm:$0xff]  }
 0x8d5   : > { %v3015_v6 = vsel %vm2826_vm15, %v3014_v5, %v2995_v55  ;;  %v6585_v5 = vld [vmem:[%s7949_s19 + $0x18] sm:$0xff]  }
 0x8d6   : > { %v3016_v12 = vsel %vm2828_vm0, %v3015_v6, %v2998_v57 }
 0x8d7   : > { %v3017_v15 = vsel %vm2830_vm2, %v3016_v12, %v3001_v59  ;;  %v2809_v16 = vpop.permute.xlu1 %2808  ;;  %v3007_v19 = vpop.permute.xlu0 %3006 }
 0x8d8   : > { %v3018_v21 = vsel %vm2832_vm1, %v3017_v15, %v3004_v3  ;;  %v2833_v24 = vsel %vm2832_vm1, %v2831_v23, %v2809_v16  ;;  %v6583_v3 = vld [vmem:[%s7949_s19 + $0x8] sm:$0xff]  }
 0x8d9   : > { %v3019_v22 = vsel %vm7994_vm10, %v3018_v21, %v3007_v19 }
 0x8da   : > { %v3020_v32 = vmul.f32 %v3019_v22, %v1065_v17 }
 0x8db   : > { %v2812_v25 = vpop.permute.xlu1 %2811 }
 0x8dc   : > { %v3021_v26 = vpack.c.bf16 %v3020_v32, %v3020_v32  ;;  %v2835_v28 = vsel %vm7994_vm10, %v2833_v24, %v2812_v25  ;;  %vm3297_vm10 = vcmask 523264  }
 0x8dd   : > { %v2836_v30 = vmul.f32 %v2835_v28, %v1065_v17 }
 0x8de   : > { %6259 = vmatmul.mubr.msk.bf16.vlgmr.msra.gmra.mrb[36].mxu1 %vm7993_vm14, %v3021_v26 }
 0x8df   : > { %v2837_v31 = vpack.c.bf16 %v2836_v30, %v2836_v30  ;;  %6274 = vmatprep.mubr.msk.bf16.mxu1 %vm6762_vm4, %v6761_v27  ;;  %6271 = vmatpush3.bf16.msra.mxu1 %v6580_v56 }
 0x8e0   : > { %6272 = vmatprep.subr.bf16.mxu1 %v6761_v27 }
 0x8e1   : > { %6242 = vmatmul.mubr.msk.bf16.vlgmr.msra.gmra.mrb[24].mxu0 %vm7993_vm14, %v2837_v31 }
 0x8e2   : > { %6266 = vmatprep.mubr.msk.bf16.mxu0 %vm6762_vm4, %v6761_v27  ;;  %6263 = vmatpush3.bf16.msra.mxu0 %v6578_v33 }
 0x8e3   : > { %6264 = vmatprep.subr.bf16.mxu0 %v6761_v27 }
 0x8e6   : > { %6265 = vmatpush3.bf16.msra.mxu0 %v6579_v34 }
 0x8e7   : > { %6278 = vmatprep.subr.bf16.mxu0 %v6761_v27 }
 0x9b1   : > { %v3059_v35 = vpop.f32.mrb[36].mxu1 }
 0x9b2   : > { %v6260_v9 = vpop.f32.mrb[37].mxu1 }
 0x9b3   : > { %v3062_v36 = vpop.f32.mrb[38].mxu1 }
 0x9b4   : > { %v2880_v37 = vpop.f32.mrb[24].mxu0  ;;  %v6261_v38 = vpop.f32.mrb[39].mxu1 }
 0x9b5   : > { %v3065_v39 = vsel %vm2692_vm7, %v2880_v37, %v3059_v35  ;;  %v6243_v40 = vpop.f32.mrb[25].mxu0  ;;  %v6778_v37 = vmov -1.0  }
 0x9b6   : > { %v3066_v41 = vpack.c.bf16 %v3065_v39, %v3065_v39  ;;  %v2883_v42 = vpop.f32.mrb[26].mxu0 }
 0x9b7   : > { %v6244_v45 = vpop.f32.mrb[27].mxu0 }
 0x9b8   : > { %6267 = vmatmul.mubr.msk.bf16.vlgmr.msra.gmra.mrb[28].mxu0 %vm1113_vm5, %v3066_v41 }
 0x9b9   : > { %6286 = vmatprep.mubr.msk.bf16.mxu0 %vm6762_vm4, %v6761_v27  ;;  %6279 = vmatpush3.bf16.msra.mxu0 %v6582_v13 }
 0x9ba   : > { %6280 = vmatprep.subr.bf16.mxu0 %v6761_v27 }
 0x9bd   : > { %6281 = vmatpush3.bf16.msra.mxu0 %v6583_v3  ;;  %v6590_v3 = vld [vmem:[#allocation2 + $0xc0] sm:$0xff]  }
 0x9be   : > { %6282 = vmatprep.subr.bf16.mxu0 %v6761_v27 }
 0x9c1   : > { %6283 = vmatpush3.bf16.msra.mxu0 %v6584_v4  ;;  %v6591_v4 = vld [vmem:[#allocation2 + $0xf0] sm:$0xff]  }
 0x9c2   : > { %6284 = vmatprep.subr.bf16.mxu0 %v6761_v27 }
 0x9c5   : > { %6285 = vmatpush3.bf16.msra.mxu0 %v6585_v5 }
 0x9c6   : > { %6306 = vmatprep.subr.bf16.mxu0 %v6761_v27 }
 0xa8b   : > { %v3127_v11 = vpop.f32.mrb[28].mxu0 }
 0xa8c   : > { %v3128_v44 = vadd.f32 %v5852_v46, %v3127_v11  ;;  %v6268_v47 = vpop.f32.mrb[29].mxu0  ;;  %v5862_v46 = vld [vmem:[%s7950_s20] ss:$0 sm:$0xff] }
 0xa8d   : > { %v3130_v48 = vpop.f32.mrb[30].mxu0 }
 0xa8e   : > { %v7441_v49 = vadd.f32 %v3128_v44, %v7073_v18  ;;  %v6269_v29 = vpop.f32.mrb[31].mxu0  ;;  %v6581_v18 = vld [vmem:[%s7947_s17 + $0x8] sm:$0xff]  }
 0xa8f   : > { %6273 = vmatpush3.bf16.msra.mxu1 %v6581_v18  ;;  %v6586_v18 = vld [vmem:[%s7941_s11 + $0x10] sm:$0xff]  }
 0xa90   : > { %v3136_v50 = vsel %vm1068_vm3, %v7441_v49, 0.0  ;;  %6290 = vmatprep.subr.bf16.mxu1 %v6761_v27 }
 0xa91   : > { %3137 = vadd.xlane.f32.xlu1 %v3136_v50 }
 0xb1e   : > { %v3138_v51 = vpop.xlane.xlu1 %3137 }
 0xb1f   : > { %v3139_v52 = vmul.f32 0.03125, %v3138_v51 }
 0xb21   : > { %v3140_v53 = vsub.f32 %v7441_v49, %v3139_v52 }
 0xb23   : > { %v3141_v54 = vmul.f32 %v3140_v53, %v3140_v53 }
 0xb25   : > { %v3142_v55 = vsel %vm1068_vm3, %v3141_v54, 0.0 }
 0xb26   : > { %3143 = vadd.xlane.f32.xlu0 %v3142_v55 }
 0xbb3   : > { %v3144_v57 = vpop.xlane.xlu0 %3143 }
 0xbb4   : > { %v3145_v58 = vmul.f32 0.03125, %v3144_v57  ;;  %v6587_v57 = vld [vmem:[#allocation2 + $0xd0] sm:$0xff]  }
 0xbb6   : > { %v3146_v63 = vadd.f32 1e-05, %v3145_v58  ;;  %v6589_v58 = vld [vmem:[#allocation2 + $0xd8] sm:$0xff]  }
 0xbb8   : > { %6636 = vrsqrt.f32 %v3146_v63 }
 0xbc2   : > { %v6637_v59 = vpop.eup %6636 }
 0xbc3   : > { %v3148_v62 = vmul.f32 %v6637_v59, %v3140_v53 }
 0xbc5   : > { %v3155_v1 = vmul.f32 %v5856_v61, %v3148_v62 }
 0xbc7   : > { %v3162_v2 = vadd.f32 %v5857_v0, %v3155_v1  ;;  %v5870_v0 = vld [vmem:[%s8029_s1 + $0x1] ss:$0 sm:$0xff] }
 0xbc9   : > { %v3163_v60 = vpack.c.bf16 %v3162_v2, %v3162_v2  ;;  %v5871_v2 = vld [vmem:[%s7940_s10 + $0x1] ss:$0 sm:$0xff] }
 0xbcb   : > { %6275 = vmatmul.mubr.msk.bf16.vlgmr.msra.gmra.mrb[40].mxu1 %vm1113_vm5, %v3163_v60 }
 0xbcc   : > { %6294 = vmatprep.mubr.msk.bf16.mxu1 %vm6762_vm4, %v6761_v27  ;;  %6291 = vmatpush3.bf16.msra.mxu1 %v6586_v18 }
 0xbcd   : > { %6292 = vmatprep.subr.bf16.mxu1 %v6761_v27 }
 0xc9e   : > { %v3224_v6 = vpop.f32.mrb[40].mxu1 }
 0xc9f   : > { %v3225_v8 = vadd.f32 %v5858_v43, %v3224_v6  ;;  %v6276_v12 = vpop.f32.mrb[41].mxu1  ;;  %v6592_v43 = vld [vmem:[#allocation2 + $0xc8] sm:$0xff]   ;;  %v6593_v6 = vld [vmem:[#allocation2 + $0xf8] sm:$0xff]  }
 0xca0   : > { %v3227_v14 = vpop.f32.mrb[42].mxu1  ;;  %v6595_v12 = vld [vmem:[#allocation2 + $0x110] sm:$0xff]  }
 0xca1   : > { %v3231_v15 = vmul.f32 0.70710677, %v3225_v8  ;;  %v6277_v16 = vpop.f32.mrb[43].mxu1  ;;  %v3230_v40 = vmul.f32 0.5, %v3225_v8  ;;  %v6594_v8 = vld [vmem:[#allocation2 + $0xe0] sm:$0xff]   ;;  %v6596_v14 = vld [vmem:[#allocation2 + $0xe8] sm:$0xff]  }
 0xca2   : > { %v6598_v16 = vld [vmem:[#allocation2 + $0x100] sm:$0xff]  }
 0xca3   : > { %v3234_v17 = vand.u32 2147483647, %v3231_v15  ;;  %vm3232_vm14 = vcmp.ge.f32.partialorder %v3231_v15, 0.0  ;;  %v6597_v15 = vld [vmem:[#allocation2 + $0x118] sm:$0xff]  }
 0xca4   : > { %v3233_v38 = vsel %vm3232_vm14, 1.0, %v6778_v37 }
 0xca5   : > { %v3235_v19 = vmul.f32 0.3275911, %v3234_v17  ;;  %v3248_v21 = vsub.f32 0.0, %v3234_v17 }
 0xca7   : > { %v3236_v20 = vadd.f32 1.0, %v3235_v19  ;;  %v3249_v22 = vmul.f32 %v3248_v21, %v3234_v17  ;;  %v6599_v17 = vld [vmem:[#allocation2 + $0x130] sm:$0xff]   ;;  %v6600_v19 = vld [vmem:[#allocation2 + $0x108] sm:$0xff]   ;;  %v6602_v21 = vld [vmem:[#allocation2 + $0x120] sm:$0xff]  }
 0xca9   : > { %6638 = vrcp.f32 %v3236_v20  ;;  %v3250_v24 = vmul.f32 1.442695, %v3249_v22  ;;  %v6601_v20 = vld [vmem:[#allocation2 + $0x138] sm:$0xff]   ;;  %v6604_v22 = vld [vmem:[#allocation2 + $0x128] sm:$0xff]  }
 0xcab   : > { %6640 = vpow2.f32 %v3250_v24  ;;  %v6607_v24 = vld [vmem:[#allocation2 + $0x170] sm:$0xff]  }
 0xcb3   : > { %v6639_v7 = vpop.eup %6638 }
 0xcb4   : > { %v3239_v23 = vmul.f32 1.0614054, %v6639_v7 }
 0xcb5   : > { %v6641_v35 = vpop.eup %6640 }
 0xcb6   : > { %v3240_v32 = vadd.f32 -1.4531521, %v3239_v23  ;;  %v6605_v23 = vld [vmem:[#allocation2 + $0x158] sm:$0xff]  }
 0xcb8   : > { %v3241_v25 = vmul.f32 %v6639_v7, %v3240_v32  ;;  %v6606_v32 = vld [vmem:[#allocation2 + $0x140] sm:$0xff]  }
 0xcba   : > { %v3242_v26 = vadd.f32 1.4214138, %v3241_v25  ;;  %v6608_v25 = vld [vmem:[#allocation2 + $0x148] sm:$0xff]  }
 0xcbc   : > { %v3243_v28 = vmul.f32 %v6639_v7, %v3242_v26  ;;  %v6609_v26 = vld [vmem:[#allocation2 + $0x178] sm:$0xff]  }
 0xcbe   : > { %v3244_v30 = vadd.f32 -0.28449672, %v3243_v28  ;;  %v6610_v28 = vld [vmem:[#allocation2 + $0x160] sm:$0xff]  }
 0xcc0   : > { %v3245_v31 = vmul.f32 %v6639_v7, %v3244_v30  ;;  %v6611_v30 = vld [vmem:[#allocation2 + $0x168] sm:$0xff]  }
 0xcc2   : > { %v3246_v33 = vadd.f32 0.2548296, %v3245_v31 }
 0xcc4   : > { %v3247_v34 = vmul.f32 %v6639_v7, %v3246_v33  ;;  %v6603_v7 = vld [vmem:[#allocation2 + $0x150] sm:$0xff]  }
 0xcc6   : > { %v3252_v9 = vmul.f32 %v6641_v35, %v3247_v34 }
 0xcc8   : > { %v3253_v36 = vsub.f32 1.0, %v3252_v9 }
 0xcca   : > { %v3254_v39 = vmul.f32 %v3253_v36, %v3233_v38 }
 0xccc   : > { %v3255_v41 = vadd.f32 1.0, %v3254_v39 }
 0xcce   : > { %v3256_v42 = vmul.f32 %v3255_v41, %v3230_v40 }
 0xcd0   : > { %v3257_v45 = vpack.c.bf16 %v3256_v42, %v3256_v42 }
 0xcd2   : > { %6287 = vmatmul.mubr.msk.bf16.vlgmr.msra.gmra.mrb[32].mxu0 %vm3297_vm10, %v3257_v45 }
 0xcd3   : > { %6310 = vmatprep.mubr.msk.bf16.mxu0 %vm6762_vm4, %v6761_v27  ;;  %6307 = vmatpush3.bf16.msra.mxu0 %v6587_v57 }
 0xcd4   : > { %6308 = vmatprep.subr.bf16.mxu0 %v6761_v27 }
 0xcd7   : > { %6309 = vmatpush3.bf16.msra.mxu0 %v6589_v58 }
 0xcd8   : > { %6322 = vmatprep.subr.bf16.mxu0 %v6761_v27 }
 0xda5   : > { %v3335_v11 = vpop.f32.mrb[32].mxu0 }
 0xda6   : > { %v3336_v44 = vadd.f32 %v5862_v46, %v3335_v11  ;;  %v6288_v47 = vpop.f32.mrb[33].mxu0 }
 0xda7   : > { %v3338_v48 = vpop.f32.mrb[34].mxu0 }
 0xda8   : > { %v7491_v29 = vadd.f32 %v3336_v44, %v7441_v49  ;;  %v6289_v50 = vpop.f32.mrb[35].mxu0  ;;  %v6588_v49 = vld [vmem:[%s7941_s11 + $0x18] sm:$0xff]  }
 0xda9   : > { %6293 = vmatpush3.bf16.msra.mxu1 %v6588_v49 }
 0xdaa   : > { %v3346_v51 = vsel %vm1068_vm3, %v7491_v29, 0.0  ;;  %6298 = vmatprep.subr.bf16.mxu1 %v6761_v27 }
 0xdab   : > { %3347 = vadd.xlane.f32.xlu0 %v3346_v51 }
 0xe38   : > { %v3348_v52 = vpop.xlane.xlu0 %3347 }
 0xe39   : > { %v3349_v53 = vmul.f32 0.03125, %v3348_v52 }
 0xe3b   : > { %v3350_v54 = vsub.f32 %v7491_v29, %v3349_v53 }
 0xe3d   : > { %v3351_v55 = vmul.f32 %v3350_v54, %v3350_v54 }
 0xe3f   : > { %v3352_v56 = vsel %vm1068_vm3, %v3351_v55, 0.0 }
 0xe40   : > { %3353 = vadd.xlane.f32.xlu0 %v3352_v56 }
 0xecd   : > { %v3354_v63 = vpop.xlane.xlu0 %3353 }
 0xece   : > { %v3355_v59 = vmul.f32 0.03125, %v3354_v63 }
 0xed0   : > { %v3356_v61 = vadd.f32 1e-05, %v3355_v59 }
 0xed2   : > { %6642 = vrsqrt.f32 %v3356_v61 }
 0xedc   : > { %v6643_v62 = vpop.eup %6642 }
 0xedd   : > { %v3358_v1 = vmul.f32 %v6643_v62, %v3350_v54 }
 0xedf   : > { %v3365_v60 = vmul.f32 %v5870_v0, %v3358_v1 }
 0xee1   : > { %v3372_v13 = vadd.f32 %v5871_v2, %v3365_v60 }
 0xee3   : > { %v7513_v5 = vpack.c.bf16 %v3372_v13, %v3372_v13 }
 0xee5   : > { %6295 = vmatmul.mubr.msk.bf16.vlgmr.msra.gmra.mrb[44].mxu1 %vm1113_vm5, %v7513_v5  ;;  %6311 = vmatmul.mubr.msk.bf16.vlgmr.msra.gmra.mrb[36].mxu0 %vm1113_vm5, %v7513_v5 }
 0xee6   : > { %6299 = vmatpush3.bf16.msra.mxu1 %v6590_v3  ;;  %6323 = vmatpush3.bf16.msra.mxu0 %v6591_v4 }
 0xee7   : > { %6300 = vmatprep.subr.bf16.mxu1 %v6761_v27  ;;  %6324 = vmatprep.subr.bf16.mxu0 %v6761_v27 }
 0xee8   : > { %6302 = vmatprep.mubr.msk.bf16.mxu1 %vm6762_vm4, %v6761_v27  ;;  %6326 = vmatprep.mubr.msk.bf16.mxu0 %vm6762_vm4, %v6761_v27 }
 0xeea   : > { %6301 = vmatpush3.bf16.msra.mxu1 %v6592_v43  ;;  %6325 = vmatpush3.bf16.msra.mxu0 %v6593_v6 }
 0xeeb   : > { %6314 = vmatprep.subr.bf16.mxu1 %v6761_v27  ;;  %6338 = vmatprep.subr.bf16.mxu0 %v6761_v27 }
 0xeed   : > { %6303 = vmatmul.mubr.msk.bf16.vlgmr.msra.gmra.mrb[48].mxu1 %vm1113_vm5, %v7513_v5  ;;  %6327 = vmatmul.mubr.msk.bf16.vlgmr.msra.gmra.mrb[40].mxu0 %vm1113_vm5, %v7513_v5 }
 0xeee   : > { %6315 = vmatpush3.bf16.msra.mxu1 %v6594_v8  ;;  %6339 = vmatpush3.bf16.msra.mxu0 %v6595_v12 }
 0xeef   : > { %6316 = vmatprep.subr.bf16.mxu1 %v6761_v27  ;;  %6340 = vmatprep.subr.bf16.mxu0 %v6761_v27 }
 0xef0   : > { %6318 = vmatprep.mubr.msk.bf16.mxu1 %vm6762_vm4, %v6761_v27  ;;  %6342 = vmatprep.mubr.msk.bf16.mxu0 %vm6762_vm4, %v6761_v27 }
 0xef2   : > { %6317 = vmatpush3.bf16.msra.mxu1 %v6596_v14  ;;  %6341 = vmatpush3.bf16.msra.mxu0 %v6597_v15 }
 0xef3   : > { %6330 = vmatprep.subr.bf16.mxu1 %v6761_v27  ;;  %6354 = vmatprep.subr.bf16.mxu0 %v6761_v27 }
 0xef5   : > { %6319 = vmatmul.mubr.msk.bf16.vlgmr.msra.gmra.mrb[52].mxu1 %vm1113_vm5, %v7513_v5  ;;  %6343 = vmatmul.mubr.msk.bf16.vlgmr.msra.gmra.mrb[44].mxu0 %vm1113_vm5, %v7513_v5 }
 0xef6   : > { %6331 = vmatpush3.bf16.msra.mxu1 %v6598_v16  ;;  %6355 = vmatpush3.bf16.msra.mxu0 %v6599_v17 }
 0xef7   : > { %6332 = vmatprep.subr.bf16.mxu1 %v6761_v27  ;;  %6356 = vmatprep.subr.bf16.mxu0 %v6761_v27 }
 0xef8   : > { %6334 = vmatprep.mubr.msk.bf16.mxu1 %vm6762_vm4, %v6761_v27  ;;  %6358 = vmatprep.mubr.msk.bf16.mxu0 %vm6762_vm4, %v6761_v27 }
 0xefa   : > { %6333 = vmatpush3.bf16.msra.mxu1 %v6600_v19  ;;  %6357 = vmatpush3.bf16.msra.mxu0 %v6601_v20 }
 0xefb   : > { %6346 = vmatprep.subr.bf16.mxu1 %v6761_v27  ;;  %6370 = vmatprep.subr.bf16.mxu0 %v6761_v27 }
 0xefd   : > { %6335 = vmatmul.mubr.msk.bf16.vlgmr.msra.gmra.mrb[56].mxu1 %vm1113_vm5, %v7513_v5  ;;  %6359 = vmatmul.mubr.msk.bf16.vlgmr.msra.gmra.mrb[48].mxu0 %vm1113_vm5, %v7513_v5 }
 0xefe   : > { %6347 = vmatpush3.bf16.msra.mxu1 %v6602_v21  ;;  %6371 = vmatpush3.bf16.msra.mxu0 %v6603_v7 }
 0xeff   : > { %6348 = vmatprep.subr.bf16.mxu1 %v6761_v27  ;;  %6372 = vmatprep.subr.bf16.mxu0 %v6761_v27 }
 0xf00   : > { %6350 = vmatprep.mubr.msk.bf16.mxu1 %vm6762_vm4, %v6761_v27  ;;  %6374 = vmatprep.mubr.msk.bf16.mxu0 %vm6762_vm4, %v6761_v27 }
 0xf02   : > { %6349 = vmatpush3.bf16.msra.mxu1 %v6604_v22  ;;  %6373 = vmatpush3.bf16.msra.mxu0 %v6605_v23 }
 0xf03   : > { %6362 = vmatprep.subr.bf16.mxu1 %v6761_v27  ;;  %6386 = vmatprep.subr.bf16.mxu0 %v6761_v27 }
 0xf05   : > { %6351 = vmatmul.mubr.msk.bf16.vlgmr.msra.gmra.mrb[60].mxu1 %vm1113_vm5, %v7513_v5  ;;  %6375 = vmatmul.mubr.msk.bf16.vlgmr.msra.gmra.mrb[52].mxu0 %vm1113_vm5, %v7513_v5 }
 0xf06   : > { %6363 = vmatpush3.bf16.msra.mxu1 %v6606_v32  ;;  %6387 = vmatpush3.bf16.msra.mxu0 %v6607_v24 }
 0xf07   : > { %6364 = vmatprep.subr.bf16.mxu1 %v6761_v27  ;;  %6388 = vmatprep.subr.bf16.mxu0 %v6761_v27 }
 0xf08   : > { %6366 = vmatprep.mubr.msk.bf16.mxu1 %vm6762_vm4, %v6761_v27  ;;  %6390 = vmatprep.mubr.msk.bf16.mxu0 %vm6762_vm4, %v6761_v27 }
 0xf0a   : > { %6365 = vmatpush3.bf16.msra.mxu1 %v6608_v25  ;;  %6389 = vmatpush3.bf16.msra.mxu0 %v6609_v26 }
 0xf0b   : > { %6378 = vmatprep.subr.bf16.mxu1 %v6761_v27  ;;  %6399 = vmatprep.subr.bf16.mxu0 %v6761_v27 }
 0xf0d   : > { %6367 = vmatmul.mubr.msk.bf16.vlgmr.msra.gmra.mrb[64].mxu1 %vm1113_vm5, %v7513_v5  ;;  %6391 = vmatmul.mubr.msk.bf16.vlgmr.msra.gmra.mrb[56].mxu0 %vm1113_vm5, %v7513_v5 }
 0xf0e   : > { %6379 = vmatpush3.bf16.msra.mxu1 %v6610_v28  ;;  %6382 = vmatprep.mubr.msk.bf16.mxu1 %vm6762_vm4, %v6761_v27 }
 0xf0f   : > { %6380 = vmatprep.subr.bf16.mxu1 %v6761_v27  ;;  %6407 = vmatprep.mubr.msk.bf16.mxu0 %vm6762_vm4, %v6761_v27 }
 0xf12   : > { %6381 = vmatpush3.bf16.msra.mxu1 %v6611_v30 }
 0xf13   : > { %6394 = vmatprep.subr.mxu1 %v6761_v27 }
 0xf15   : > { %6383 = vmatmul.mubr.msk.bf16.vlgmr.msra.gmra.mrb[68].mxu1 %vm1113_vm5, %v7513_v5 }
 0xf16   : > { %6396 = vmatprep.mubr.msk.f32.mxu1 %vm6762_vm4, %v6761_v27 }
 0xfb8   : > { %v3428_v31 = vpop.f32.mrb[44].mxu1  ;;  %v3581_v33 = vpop.f32.mrb[36].mxu0 }
 0xfb9   : > { %v4165_v34 = vrot.slane %v3581_v33, %v7184_v10  ;;  %v6312_v35 = vpop.f32.mrb[37].mxu0  ;;  %5151 = vrot.lane.b32.xlu0 %v3428_v31, %s6764_s29  ;;  %4968 = vrot.lane.b32.xlu1 %v3428_v31, %s6765_s27  ;;  %v6296_v9 = vpop.f32.mrb[45].mxu1  ;;  %v7592_v39 = vmul.f32 0.25, %v3428_v31  ;;  %v4158_v53 = vcombine.high %v3581_v33, %v3581_v33  ;;  %s8032_s29 = smov 10   ;;  %s8033_s27 = smov 5  }
 0xfba   : > { %v3431_v36 = vpop.f32.mrb[46].mxu1  ;;  %v3584_v38 = vpop.f32.mrb[38].mxu0 }
 0xfbb   : > { %v6297_v40 = vpop.f32.mrb[47].mxu1  ;;  %v6313_v41 = vpop.f32.mrb[39].mxu0  ;;  %v4173_v42 = vcombine.high %v4165_v34, %v4165_v34  ;;  %v4180_v45 = vrot.slane %v4165_v34, %v7184_v10  ;;  %v4172_v13 = vrot.slane %v4158_v53, %v7184_v10 }
 0xfbd   : > { %5149 = vrot.lane.b32.xlu1 %v7592_v39, %s8031_s8  ;;  %v4194_v46 = vrot.slane %v4173_v42, %v7184_v10  ;;  %v4195_v11 = vcombine.high %v4180_v45, %v4180_v45  ;;  %v4187_v32 = vrot.slane %v4172_v13, %v7184_v10  ;;  %s8040_s8 = smov 45  }
 0xfbf   : > { %v4590_v59 = vcombine.low %v4194_v46, %v4195_v11  ;;  %v4196_v8 = vcombine.high %v4194_v46, %v4194_v46 }
 0xfc0   : > { %v3529_v44 = vpop.f32.mrb[48].mxu1  ;;  %v3685_v47 = vpop.f32.mrb[40].mxu0 }
 0xfc1   : > { %v4119_v48 = vcombine.high %v3529_v44, %v3529_v44  ;;  %v4126_v50 = vrot.slane %v3529_v44, %v7184_v10  ;;  %v6304_v51 = vpop.f32.mrb[49].mxu1  ;;  %v6328_v52 = vpop.f32.mrb[41].mxu0  ;;  %v4236_v54 = vcombine.high %v3685_v47, %v3685_v47  ;;  %v4243_v55 = vrot.slane %v3685_v47, %v7184_v10 }
 0xfc2   : > { %v3532_v56 = vpop.f32.mrb[50].mxu1  ;;  %v3688_v18 = vpop.f32.mrb[42].mxu0  ;;  %v4618_v12 = vrot.slane %v4590_v59, %v7184_v10  ;;  %v4636_v38 = vcombine.low %v4196_v8, %v4187_v32 }
 0xfc3   : > { %v4133_v57 = vrot.slane %v4119_v48, %v7184_v10  ;;  %v4134_v49 = vcombine.high %v4126_v50, %v4126_v50  ;;  %v6305_v58 = vpop.f32.mrb[51].mxu1  ;;  %v6329_v63 = vpop.f32.mrb[43].mxu0  ;;  %v4250_v61 = vrot.slane %v4236_v54, %v7184_v10  ;;  %v4251_v62 = vcombine.high %v4243_v55, %v4243_v55 }
 0xfc4   : > { %v4258_v0 = vrot.slane %v4243_v55, %v7184_v10  ;;  %v4141_v1 = vrot.slane %v4126_v50, %v7184_v10  ;;  %v4646_v63 = vrot.slane %v4636_v38, %v7184_v10 }
 0xfc5   : > { %v4148_v2 = vrot.slane %v4133_v57, %v7184_v10  ;;  %v4155_v60 = vrot.slane %v4134_v49, %v7184_v10  ;;  %v4272_v3 = vrot.slane %v4251_v62, %v7184_v10  ;;  %v4265_v14 = vrot.slane %v4250_v61, %v7184_v10 }
 0xfc6   : > { %v4273_v4 = vcombine.high %v4258_v0, %v4258_v0 }
 0xfc7   : > { %v4587_v5 = vcombine.low %v4141_v1, %v4155_v60  ;;  %v5915_v43 = vcombine.high %v4141_v1, %v4155_v60  ;;  %v4589_v6 = vcombine.low %v4148_v2, %v4180_v45  ;;  %v4274_v15 = vcombine.high %v4272_v3, %v4272_v3 }
 0xfc8   : > { %v3633_v16 = vpop.f32.mrb[52].mxu1  ;;  %v3789_v17 = vpop.f32.mrb[44].mxu0  ;;  %v4685_v24 = vcombine.low %v4272_v3, %v4273_v4 }
 0xfc9   : > { %v4597_v19 = vrot.slane %v4587_v5, %v7184_v10  ;;  %v4604_v20 = vrot.slane %v5915_v43, %v7184_v10  ;;  %v4611_v21 = vrot.slane %v4589_v6, %v7184_v10  ;;  %v4197_v7 = vcombine.high %v3633_v16, %v3633_v16  ;;  %v6320_v22 = vpop.f32.mrb[53].mxu1  ;;  %v6344_v23 = vpop.f32.mrb[45].mxu0 }
 0xfca   : > { %v4686_v25 = vcombine.low %v4274_v15, %v4265_v14  ;;  %v4204_v26 = vrot.slane %v3633_v16, %v7184_v10  ;;  %v3636_v28 = vpop.f32.mrb[54].mxu1  ;;  %v3792_v30 = vpop.f32.mrb[46].mxu0  ;;  %v4321_v35 = vrot.slane %v3789_v17, %v7184_v10  ;;  %v4314_v42 = vcombine.high %v3789_v17, %v3789_v17 }
 0xfcb   : > { %v4619_v31 = vcombine.low %v4597_v19, %v4604_v20  ;;  %v4620_v33 = vcombine.low %v4611_v21, %v4618_v12  ;;  %v4211_v34 = vrot.slane %v4197_v7, %v7184_v10  ;;  %v6321_v9 = vpop.f32.mrb[55].mxu1  ;;  %v6345_v36 = vpop.f32.mrb[47].mxu0  ;;  %v4695_v51 = vrot.slane %v4685_v24, %v7184_v10 }
 0xfcc   : > { %v4702_v40 = vrot.slane %v4686_v25, %v7184_v10  ;;  %v4212_v41 = vcombine.high %v4204_v26, %v4204_v26  ;;  %v4329_v46 = vcombine.high %v4321_v35, %v4321_v35  ;;  %v4336_v11 = vrot.slane %v4321_v35, %v7184_v10 }
 0xfcd   : > { %v4226_v45 = vrot.slane %v4211_v34, %v7184_v10  ;;  %v4627_v44 = vrot.slane %v4619_v31, %v7184_v10  ;;  %v4219_v47 = vrot.slane %v4204_v26, %v7184_v10  ;;  %v4634_v50 = vrot.slane %v4620_v33, %v7184_v10 }
 0xfce   : > { %v4233_v48 = vrot.slane %v4212_v41, %v7184_v10  ;;  %v4350_v53 = vrot.slane %v4329_v46, %v7184_v10  ;;  %v4351_v54 = vcombine.high %v4336_v11, %v4336_v11  ;;  %v4328_v18 = vrot.slane %v4314_v42, %v7184_v10 }
 0xfcf   : > { %v4639_v52 = vcombine.low %v4226_v45, %v4258_v0  ;;  %v7627_v58 = vcombine.low %v4627_v44, %v4634_v50  ;;  %v7630_v59 = vcombine.low %v4695_v51, %v4702_v40 }
 0xfd0   : > { %v4637_v55 = vcombine.low %v4219_v47, %v4233_v48  ;;  %v5916_v56 = vcombine.high %v4219_v47, %v4233_v48  ;;  %v3737_v57 = vpop.f32.mrb[56].mxu1  ;;  %v3893_v49 = vpop.f32.mrb[48].mxu0  ;;  %v4352_v43 = vcombine.high %v4350_v53, %v4350_v53  ;;  %v4735_v6 = vcombine.low %v4350_v53, %v4351_v54 }
 0xfd1   : > { %v4667_v61 = vrot.slane %v4639_v52, %v7184_v10  ;;  %v4275_v62 = vcombine.high %v3737_v57, %v3737_v57  ;;  %v6336_v1 = vpop.f32.mrb[57].mxu1  ;;  %v6360_v0 = vpop.f32.mrb[49].mxu0  ;;  %v4282_v13 = vrot.slane %v3737_v57, %v7184_v10  ;;  %v4392_v3 = vcombine.high %v3893_v49, %v3893_v49 }
 0xfd2   : > { %v4653_v2 = vrot.slane %v4637_v55, %v7184_v10  ;;  %v4660_v60 = vrot.slane %v5916_v56, %v7184_v10  ;;  %v3740_v4 = vpop.f32.mrb[58].mxu1  ;;  %v3896_v5 = vpop.f32.mrb[50].mxu0  ;;  %v4399_v12 = vrot.slane %v3893_v49, %v7184_v10  ;;  %v4343_v19 = vrot.slane %v4328_v18, %v7184_v10 }
 0xfd3   : > { %v4289_v8 = vrot.slane %v4275_v62, %v7184_v10  ;;  %v6337_v14 = vpop.f32.mrb[59].mxu1  ;;  %v6361_v15 = vpop.f32.mrb[51].mxu0  ;;  %v4290_v20 = vcombine.high %v4282_v13, %v4282_v13  ;;  %v4297_v21 = vrot.slane %v4282_v13, %v7184_v10  ;;  %v4406_v22 = vrot.slane %v4392_v3, %v7184_v10 }
 0xfd4   : > { %v4668_v16 = vcombine.low %v4646_v63, %v4653_v2  ;;  %v4669_v17 = vcombine.low %v4660_v60, %v4667_v61  ;;  %v4407_v23 = vcombine.high %v4399_v12, %v4399_v12  ;;  %v4414_v24 = vrot.slane %v4399_v12, %v7184_v10 }
 0xfd5   : > { %v4304_v7 = vrot.slane %v4289_v8, %v7184_v10  ;;  %v4311_v32 = vrot.slane %v4290_v20, %v7184_v10  ;;  %v7646_v28 = vcombine.low %v4352_v43, %v4343_v19  ;;  %v4751_v30 = vrot.slane %v4735_v6, %v7184_v10 }
 0xfd6   : > { %v4676_v25 = vrot.slane %v4668_v16, %v7184_v10  ;;  %v4683_v26 = vrot.slane %v4669_v17, %v7184_v10  ;;  %v4428_v33 = vrot.slane %v4407_v23, %v7184_v10  ;;  %v4429_v9 = vcombine.high %v4414_v24, %v4414_v24 }
 0xfd7   : > { %v4734_v31 = vcombine.low %v4304_v7, %v4336_v11  ;;  %v4687_v34 = vcombine.low %v4297_v21, %v4311_v32  ;;  %v5917_v35 = vcombine.high %v4297_v21, %v4311_v32  ;;  %v4421_v50 = vrot.slane %v4406_v22, %v7184_v10 }
 0xfd8   : > { %v3841_v36 = vpop.f32.mrb[60].mxu1  ;;  %v7650_v38 = vpop.f32.mrb[52].mxu0  ;;  %v4684_v40 = vcombine.low %v4676_v25, %v4683_v26  ;;  %v4430_v42 = vcombine.high %v4428_v33, %v4428_v33  ;;  %v4725_v57 = vrot.slane %v7630_v59, %v7184_v10  ;;  %v4758_v49 = vrot.slane %v7646_v28, %v7184_v10 }
 0xfd9   : > { %v4744_v41 = vrot.slane %v4734_v31, %v7184_v10  ;;  %v4353_v45 = vcombine.high %v3841_v36, %v3841_v36  ;;  %v4360_v46 = vrot.slane %v3841_v36, %v7184_v10  ;;  %v6352_v44 = vpop.f32.mrb[61].mxu1  ;;  %v6376_v47 = vpop.f32.mrb[53].mxu0  ;;  %v4709_v48 = vrot.slane %v4687_v34, %v7184_v10 }
 0xfda   : > { %v4716_v11 = vrot.slane %v5917_v35, %v7184_v10  ;;  %v3844_v51 = vpop.f32.mrb[62].mxu1  ;;  %v4000_v52 = vpop.f32.mrb[54].mxu0  ;;  %v4786_v61 = vcombine.low %v4430_v42, %v4421_v50  ;;  %v4477_v62 = vrot.slane %v7650_v38, %v7184_v10  ;;  %v4785_v1 = vcombine.low %v4428_v33, %v4429_v9 }
 0xfdb   : > { %v7657_v53 = vcombine.low %v4744_v41, %v4751_v30  ;;  %v4367_v54 = vrot.slane %v4353_v45, %v7184_v10  ;;  %v4368_v55 = vcombine.high %v4360_v46, %v4360_v46  ;;  %v6353_v56 = vpop.f32.mrb[63].mxu1  ;;  %v6377_v18 = vpop.f32.mrb[55].mxu0  ;;  %v4375_v0 = vrot.slane %v4360_v46, %v7184_v10 }
 0xfdc   : > { %v4718_v63 = vcombine.low %v4709_v48, %v4716_v11  ;;  %v4485_v13 = vcombine.high %v4477_v62, %v4477_v62  ;;  %v4492_v3 = vrot.slane %v4477_v62, %v7184_v10  ;;  %v7671_v59 = vpack.c.bf16 %v4684_v40, %v7627_v58 }
 0xfdd   : > { %v4382_v2 = vrot.slane %v4367_v54, %v7184_v10  ;;  %v4389_v60 = vrot.slane %v4368_v55, %v7184_v10  ;;  %v4470_v8 = vcombine.high %v7650_v38, %v7650_v38  ;;  %v4814_v12 = vrot.slane %v4786_v61, %v7184_v10 }
 0xfde   : > { %v4732_v4 = vrot.slane %v4718_v63, %v7184_v10  ;;  %v7678_v14 = vrot.slane %v4485_v13, %v7184_v10  ;;  %v4507_v15 = vcombine.high %v4492_v3, %v4492_v3  ;;  %6400 = vmatpush3.bf16.msra.mxu0 %v7671_v59  ;;  %v4807_v32 = vrot.slane %v4785_v1, %v7184_v10 }
 0xfdf   : > { %v4737_v5 = vcombine.low %v4375_v0, %v4389_v60  ;;  %v5918_v43 = vcombine.high %v4375_v0, %v4389_v60  ;;  %v4784_v6 = vcombine.low %v4382_v2, %v4414_v24  ;;  %6401 = vmatprep.subr.bf16.mxu0 %v6761_v27  ;;  %v4484_v40 = vrot.slane %v4470_v8, %v7184_v10 }
 0xfe0   : > { %v3945_v16 = vpop.f32.mrb[64].mxu1  ;;  %v4101_v17 = vpop.f32.mrb[56].mxu0  ;;  %v4733_v58 = vcombine.low %v4725_v57, %v4732_v4  ;;  %v4835_v24 = vcombine.low %v7678_v14, %v4507_v15  ;;  %v4816_v38 = vcombine.low %v4807_v32, %v4814_v12  ;;  %v4508_v41 = vcombine.high %v7678_v14, %v7678_v14 }
 0xfe1   : > { %v4765_v19 = vrot.slane %v4737_v5, %v7184_v10  ;;  %v4793_v20 = vrot.slane %v5918_v43, %v7184_v10  ;;  %v4800_v21 = vrot.slane %v4784_v6, %v7184_v10  ;;  %v4431_v7 = vcombine.high %v3945_v16, %v3945_v16  ;;  %v6368_v22 = vpop.f32.mrb[65].mxu1  ;;  %v6392_v23 = vpop.f32.mrb[57].mxu0 }
 0xfe2   : > { %v4438_v25 = vrot.slane %v3945_v16, %v7184_v10  ;;  %v4548_v26 = vcombine.high %v4101_v17, %v4101_v17  ;;  %v3948_v28 = vpop.f32.mrb[66].mxu1  ;;  %v4104_v30 = vpop.f32.mrb[58].mxu0  ;;  %v4555_v35 = vrot.slane %v4101_v17, %v7184_v10  ;;  %v4774_v50 = vrot.slane %v7657_v53, %v7184_v10 }
 0xfe3   : > { %v4767_v31 = vcombine.low %v4758_v49, %v4765_v19  ;;  %v4815_v33 = vcombine.low %v4793_v20, %v4800_v21  ;;  %v4445_v34 = vrot.slane %v4431_v7, %v7184_v10  ;;  %v6369_v9 = vpop.f32.mrb[67].mxu1  ;;  %v6393_v36 = vpop.f32.mrb[59].mxu0  ;;  %v4863_v52 = vrot.slane %v4835_v24, %v7184_v10 }
 0xfe4   : > { %v4446_v42 = vcombine.high %v4438_v25, %v4438_v25  ;;  %v4562_v46 = vrot.slane %v4548_v26, %v7184_v10  ;;  %v4563_v44 = vcombine.high %v4555_v35, %v4555_v35  ;;  %v4570_v47 = vrot.slane %v4555_v35, %v7184_v10 }
 0xfe5   : > { %v4460_v45 = vrot.slane %v4445_v34, %v7184_v10  ;;  %v4453_v48 = vrot.slane %v4438_v25, %v7184_v10  ;;  %v4781_v51 = vrot.slane %v4767_v31, %v7184_v10  ;;  %v4823_v53 = vrot.slane %v4815_v33, %v7184_v10 }
 0xfe6   : > { %v4467_v11 = vrot.slane %v4446_v42, %v7184_v10  ;;  %v4577_v55 = vrot.slane %v4562_v46, %v7184_v10  ;;  %v4584_v56 = vrot.slane %v4563_v44, %v7184_v10  ;;  %v4585_v49 = vcombine.high %v4570_v47, %v4570_v47 }
 0xfe7   : > { %v4834_v54 = vcombine.low %v4460_v45, %v4492_v3  ;;  %v4782_v61 = vcombine.low %v4774_v50, %v4781_v51  ;;  %v4499_v43 = vrot.slane %v4484_v40, %v7184_v10  ;;  %v4830_v17 = vrot.slane %v4816_v38, %v7184_v10 }
 0xfe8   : > { %v4832_v18 = vcombine.low %v4453_v48, %v4467_v11  ;;  %v5919_v57 = vcombine.high %v4453_v48, %v4467_v11  ;;  %v4049_v63 = vpop.f32.mrb[68].mxu1  ;;  %v4586_v1 = vcombine.high %v4584_v56, %v4584_v56  ;;  %v4930_v20 = vcombine.low %v4584_v56, %v4585_v49 }
 0xfe9   : > { %v4856_v62 = vrot.slane %v4834_v54, %v7184_v10  ;;  %v4509_v0 = vcombine.high %v4049_v63, %v4049_v63  ;;  %v6384_v2 = vpop.f32.mrb[69].mxu1  ;;  %v4516_v3 = vrot.slane %v4049_v63, %v7184_v10  ;;  %v4963_v5 = vpack.c.bf16 %v4782_v61, %v4733_v58 }
 0xfea   : > { %v4842_v60 = vrot.slane %v4832_v18, %v7184_v10  ;;  %v4849_v13 = vrot.slane %v5919_v57, %v7184_v10  ;;  %v4052_v4 = vpop.f32.mrb[70].mxu1  ;;  %v4931_v15 = vcombine.low %v4586_v1, %v4577_v55  ;;  %v4881_v19 = vcombine.low %v4508_v41, %v4499_v43 }
 0xfeb   : > { %v4865_v6 = vcombine.low %v4856_v62, %v4863_v52  ;;  %v4523_v8 = vrot.slane %v4509_v0, %v7184_v10  ;;  %v6385_v12 = vpop.f32.mrb[71].mxu1  ;;  %v4524_v16 = vcombine.high %v4516_v3, %v4516_v3  ;;  %6402 = vmatpush3.bf16.msra.mxu0 %v4963_v5  ;;  %v4531_v7 = vrot.slane %v4516_v3, %v7184_v10 }
 0xfec   : > { %v4864_v14 = vcombine.low %v4842_v60, %v4849_v13  ;;  %6403 = vmatprep.subr.bf16.mxu0 %v6761_v27  ;;  %v4831_v23 = vcombine.low %v4823_v53, %v4830_v17  ;;  %v4945_v25 = vrot.slane %v4931_v15, %v7184_v10  ;;  %v4891_v31 = vrot.slane %v4881_v19, %v7184_v10 }
 0xfed   : > { %v4538_v21 = vrot.slane %v4523_v8, %v7184_v10  ;;  %v4879_v58 = vrot.slane %v4865_v6, %v7184_v10  ;;  %v4545_v22 = vrot.slane %v4524_v16, %v7184_v10  ;;  %v4938_v34 = vrot.slane %v4930_v20, %v7184_v10 }
 0xfee   : > { %v4872_v32 = vrot.slane %v4864_v14, %v7184_v10 }
 0xfef   : > { %v4884_v24 = vcombine.low %v4538_v21, %v4570_v47  ;;  %v4882_v26 = vcombine.low %v4531_v7, %v4545_v22  ;;  %v5920_v28 = vcombine.high %v4531_v7, %v4545_v22  ;;  %v4946_v41 = vcombine.low %v4938_v34, %v4945_v25 }
 0xff0   : > { %v4880_v30 = vcombine.low %v4872_v32, %v4879_v58 }
 0xff1   : > { %v4912_v33 = vrot.slane %v4884_v24, %v7184_v10  ;;  %v4898_v35 = vrot.slane %v4882_v26, %v7184_v10  ;;  %v4905_v9 = vrot.slane %v5920_v28, %v7184_v10  ;;  %v4953_v44 = vrot.slane %v4946_v41, %v7184_v10 }
 0xff2   : > { %v4964_v36 = vpack.c.bf16 %v4880_v30, %v4831_v23 }
 0xff3   : > { %v4913_v38 = vcombine.low %v4891_v31, %v4898_v35  ;;  %v4914_v40 = vcombine.low %v4905_v9, %v4912_v33 }
 0xff4   : > { %6404 = vmatpush3.bf16.msra.mxu0 %v4964_v36 }
 0xff5   : > { %6405 = vmatprep.subr.bf16.mxu0 %v6761_v27  ;;  %v4921_v42 = vrot.slane %v4913_v38, %v7184_v10  ;;  %v4928_v45 = vrot.slane %v4914_v40, %v7184_v10 }
 0xff7   : > { %v4929_v46 = vcombine.low %v4921_v42, %v4928_v45 }
 0xff9   : > { %v4965_v47 = vpack.c.bf16 %v4953_v44, %v4929_v46 }
 0xffb   : > { %v5107_v48 = vsel %vm2842_vm6, %v4965_v47, 0  ;;  %vm8043_vm6 = vcmask 80896  }
 0xffc   : > { %6406 = vmatpush3.bf16.msra.mxu0 %v5107_v48  ;;  %vm8045_vm14 = vmmov %vm8043_vm6 }
 0xffd   : > { %6428 = vmatprep.subr.bf16.mxu0 %v6761_v27 }
0x102b   : > { %v4969_v11 = vpop.permute.xlu1 %4968  ;;  %v5152_v50 = vpop.permute.xlu0 %5151 }
0x102c   : > { %6395 = vmatpush3.xpose.msk.msra.mxu1 %vm2692_vm7, %v4969_v11 }
0x102d   : > { %6411 = vmatprep.subr.mxu1 %v6761_v27 }
0x102f   : > { %6397 = vmatmul.mubr.msk.f32.vlgmr.msra.gmra.mrb[72].mxu1 %vm2692_vm7, %v7592_v39  ;;  %v5150_v10 = vpop.permute.xlu1 %5149 }
0x1030   : > { %6412 = vmatpush3.xpose.msk.msra.mxu1 %vm2692_vm7, %v5152_v50  ;;  %6413 = vmatprep.mubr.msk.f32.mxu1 %vm6762_vm4, %v6761_v27 }
0x1031   : > { %6416 = vmatprep.subr.bf16.mxu1 %v6761_v27 }
0x1033   : > { %6414 = vmatmul.mubr.msk.f32.vlgmr.msra.gmra.mrb[74].mxu1 %vm2692_vm7, %v5150_v10 }
0x1034   : > { %6417 = vmatpush3.bf16.msra.mxu1 %v7671_v59  ;;  %6424 = vmatprep.mubr.msk.bf16.mxu1 %vm6762_vm4, %v6761_v27 }
0x1035   : > { %6418 = vmatprep.subr.bf16.mxu1 %v6761_v27 }
0x1038   : > { %6419 = vmatpush3.bf16.msra.mxu1 %v4963_v5 }
0x1039   : > { %6420 = vmatprep.subr.bf16.mxu1 %v6761_v27 }
0x103c   : > { %6421 = vmatpush3.bf16.msra.mxu1 %v4964_v36 }
0x103d   : > { %6422 = vmatprep.subr.bf16.mxu1 %v6761_v27 }
0x1040   : > { %6423 = vmatpush3.bf16.msra.mxu1 %v5107_v48  ;;  %v6660_v48 = vld [vmem:[%s8030_s0] sm:$0x1f] }
0x1041   : > { %6444 = vmatprep.subr.bf16.mxu1 %v6761_v27 }
0x1102   : > { %v5041_v39 = vpop.f32.mrb[72].mxu1 }
0x1103   : > { %v6398_v51 = vpop.f32.mrb[73].mxu1  ;;  %v5045_v52 = vsel %vm2768_vm8, %v5041_v39, -inf }
0x1104   : > { %5046 = vmax.xlane.f32.xlu1 %v5045_v52 }
0x1106   : > { %v5223_v59 = vpop.f32.mrb[74].mxu1 }
0x1107   : > { %v6415_v54 = vpop.f32.mrb[75].mxu1  ;;  %v5227_v55 = vsel %vm2768_vm8, %v5223_v59, -inf }
0x1108   : > { %5228 = vmax.xlane.f32.xlu0 %v5227_v55 }
0x1191   : > { %v5047_v56 = vpop.xlane.xlu1 %5046 }
0x1192   : > { %v5048_v18 = vsub.f32 %v5041_v39, %v5047_v56 }
0x1194   : > { %v5049_v57 = vmul.f32 1.442695, %v5048_v18 }
0x1195   : > { %v5229_v49 = vpop.xlane.xlu0 %5228 }
0x1196   : > { %6644 = vpow2.f32 %v5049_v57  ;;  %v5230_v63 = vsub.f32 %v5223_v59, %v5229_v49 }
0x1198   : > { %v5231_v61 = vmul.f32 1.442695, %v5230_v63  ;;  %v6612_v63 = vld [vmem:[%s7943_s13 + $0x10] sm:$0xff]  }
0x119a   : > { %6646 = vpow2.f32 %v5231_v61  ;;  %v6613_v61 = vld [vmem:[%s7943_s13 + $0x18] sm:$0xff]  }
0x11a0   : > { %v6645_v62 = vpop.eup %6644 }
0x11a1   : > { %v5051_v1 = vsel %vm2768_vm8, %v6645_v62, 0.0 }
0x11a2   : > { %5052 = vadd.xlane.f32.xlu0 %v5051_v1 }
0x11a4   : > { %v6647_v0 = vpop.eup %6646 }
0x11a5   : > { %v5233_v2 = vsel %vm2768_vm8, %v6647_v0, 0.0  ;;  %vm8044_vm8 = vcmask 244736  }
0x11a6   : > { %5234 = vadd.xlane.f32.xlu1 %v5233_v2 }
0x122f   : > { %v5053_v53 = vpop.xlane.xlu0 %5052 }
0x1230   : > { %6648 = vrcp.f32 %v5053_v53 }
0x1233   : > { %v5235_v60 = vpop.xlane.xlu1 %5234 }
0x1234   : > { %6650 = vrcp.f32 %v5235_v60 }
0x123a   : > { %v6649_v13 = vpop.eup %6648 }
0x123b   : > { %v5055_v3 = vmul.f32 %v6649_v13, %v6645_v62 }
0x123d   : > { %5060 = vrot.lane.b32.xlu1 %v5055_v3, %s8032_s29  ;;  %5057 = vrot.lane.b32.xlu0 %v5055_v3, %s8033_s27 }
0x123e   : > { %v6651_v4 = vpop.eup %6650 }
0x123f   : > { %v5237_v5 = vmul.f32 %v6651_v4, %v6647_v0 }
0x1241   : > { %5239 = vrot.lane.b32.xlu1 %v5237_v5, %s8033_s27  ;;  %5063 = vrot.lane.b32.xlu0 %v5055_v3, %s8034_s9  ;;  %s8042_s27 = smov 55  }
0x1245   : > { %5242 = vrot.lane.b32.xlu1 %v5237_v5, %s8032_s29  ;;  %5066 = vrot.lane.b32.xlu0 %v5055_v3, %s8035_s30  ;;  %s8041_s29 = smov 50  }
0x1249   : > { %5245 = vrot.lane.b32.xlu1 %v5237_v5, %s8034_s9  ;;  %5069 = vrot.lane.b32.xlu0 %v5055_v3, %s8036_s3  ;;  %s770_s9 = sand.u32 1, %s6747_s2  }
0x124d   : > { %5248 = vrot.lane.b32.xlu1 %v5237_v5, %s8035_s30  ;;  %5072 = vrot.lane.b32.xlu0 %v5055_v3, %s8037_s28  ;;  %s5693_s30 = scalar_lea.sflag [#allocation4], %s770_s9 }
0x1251   : > { %5251 = vrot.lane.b32.xlu1 %v5237_v5, %s8036_s3  ;;  %5075 = vrot.lane.b32.xlu0 %v5055_v3, %s8038_s5  ;;  %s6779_s3 = smov [#allocation5]  }
0x1252   : > { %s6693_s0 = sshll.u32 %s6779_s3, 4  ;;  %s6694_s0 = int_to_ptr.vmem [resolvable:$false] %s6693_s0 }
0x1255   : > { %5254 = vrot.lane.b32.xlu1 %v5237_v5, %s8037_s28  ;;  %5078 = vrot.lane.b32.xlu0 %v5055_v3, %s8039_s6  ;;  %s5967_s28 = sshll.u32 %s6931_s7, 4 }
0x1259   : > { %5257 = vrot.lane.b32.xlu1 %v5237_v5, %s8038_s5  ;;  %5081 = vrot.lane.b32.xlu0 %v5055_v3, %s8040_s8  ;;  %s771_s5 = scalar_lea.vmem [#allocation5], %s770_s9 }
0x125d   : > { %5260 = vrot.lane.b32.xlu1 %v5237_v5, %s8039_s6  ;;  %5084 = vrot.lane.b32.xlu0 %v5055_v3, %s8041_s29  ;;  %s5705_s6 = sshll.u32 %s771_s5, 4  ;;  %s7890_s6 = int_to_ptr.vmem [resolvable:$true] %s5705_s6 }
0x125e   : > { %s6689_s7 = scalar_lea.vmem %s7890_s6, 16  ;;  %p6696_p2 = scmp.lt.s32.totalorder %s7890_s6, %s6694_s0 }
0x125f   : > { %p6690_p6 = scmp.ne.s32.totalorder %s7890_s6, %s6689_s7 }
0x1261   : > { %5263 = vrot.lane.b32.xlu1 %v5237_v5, %s8040_s8  ;;  %5087 = vrot.lane.b32.xlu0 %v5055_v3, %s8042_s27  ;;  %p6691_p10 = pnand %p6690_p6, %p8051_p9  ;;  %s6695_s8 = scalar_lea.vmem %s6694_s0, 32 }
0x1262   : > { %p6697_p3 = scmp.lt.s32.totalorder %s6695_s8, %s6689_s7 }
0x1263   : > { %p6692_p12 = pneg %p6691_p10 }
0x1264   : > { %p6698_p4 = por %p6697_p3, %p6696_p2 }
0x1265   : > { %5266 = vrot.lane.b32.xlu1 %v5237_v5, %s8041_s29 }
0x1266   : > { %p6699_p7 = pnand %p6698_p4, %p6692_p12 }
0x1269   : > { %5269 = vrot.lane.b32.xlu1 %v5237_v5, %s8042_s27  ;;  %s7888_s27 = scalar_lea.hbm %s7955_s25, %s5967_s28 }
0x12af   : > { %v5061_v43 = vpop.permute.xlu1 %5060  ;;  %v5058_v6 = vpop.permute.xlu0 %5057 }
0x12b0   : > { %v5090_v23 = vsel %vm2814_vm9, %v5055_v3, %v5058_v6 }
0x12b1   : > { %v5091_v32 = vsel %vm8043_vm6, %v5090_v23, %v5061_v43  ;;  %vm8046_vm6 = vcmask 449536   ;;  %v5932_v43 = vld [vmem:[%s7944_s14 + $0x1] ss:$0 sm:$0xff] }
0x12b3   : > { %v5240_v8 = vpop.permute.xlu1 %5239  ;;  %v5064_v12 = vpop.permute.xlu0 %5063 }
0x12b4   : > { %v5092_v26 = vsel %vm2818_vm11, %v5091_v32, %v5064_v12  ;;  %v5272_v36 = vsel %vm2814_vm9, %v5237_v5, %v5240_v8  ;;  %vm8047_vm9 = vmmov %vm8044_vm8 }
0x12b7   : > { %v5243_v14 = vpop.permute.xlu1 %5242  ;;  %v5067_v15 = vpop.permute.xlu0 %5066 }
0x12b8   : > { %v5093_v28 = vsel %vm2820_vm12, %v5092_v26, %v5067_v15  ;;  %v5273_v40 = vsel %vm8045_vm14, %v5272_v36, %v5243_v14  ;;  %v5938_v26 = vld [vmem:[%s7945_s15 + $0x1] ss:$0 sm:$0xff]  ;;  %v6618_v36 = vld [vmem:[%s7949_s19 + $0x30] sm:$0xff]  }
0x12bb   : > { %v5246_v16 = vpop.permute.xlu1 %5245  ;;  %v5070_v17 = vpop.permute.xlu0 %5069 }
0x12bc   : > { %v5094_v30 = vsel %vm2822_vm13, %v5093_v28, %v5070_v17  ;;  %v5274_v46 = vsel %vm2818_vm11, %v5273_v40, %v5246_v16  ;;  %vm8048_vm11 = vcmask 490496   ;;  %v5945_v40 = vld [vmem:[%s7948_s18 + $0x1] ss:$0 sm:$0xff] }
0x12bf   : > { %v5249_v19 = vpop.permute.xlu1 %5248  ;;  %v5073_v20 = vpop.permute.xlu0 %5072 }
0x12c0   : > { %v5095_v31 = vsel %vm8044_vm8, %v5094_v30, %v5073_v20  ;;  %v5275_v47 = vsel %vm2820_vm12, %v5274_v46, %v5249_v19  ;;  %vm8049_vm12 = vmmov %vm8046_vm6  ;;  %v5939_v30 = vld [vmem:[%s7946_s16 + $0x1] ss:$0 sm:$0xff] }
0x12c3   : > { %v5252_v21 = vpop.permute.xlu1 %5251  ;;  %v5076_v58 = vpop.permute.xlu0 %5075 }
0x12c4   : > { %v5096_v35 = vsel %vm2826_vm15, %v5095_v31, %v5076_v58  ;;  %v5276_v50 = vsel %vm2822_vm13, %v5275_v47, %v5252_v21  ;;  %vm8050_vm13 = vmmov %vm8048_vm11 }
0x12c7   : > { %v5255_v7 = vpop.permute.xlu1 %5254  ;;  %v5079_v22 = vpop.permute.xlu0 %5078 }
0x12c8   : > { %v5097_v9 = vsel %vm2828_vm0, %v5096_v35, %v5079_v22  ;;  %v5277_v10 = vsel %vm8047_vm9, %v5276_v50, %v5255_v7  ;;  %v6614_v22 = vld [vmem:[%s7947_s17 + $0x10] sm:$0xff]   ;;  %v6616_v35 = vld [vmem:[%s7949_s19 + $0x20] sm:$0xff]  }
0x12cb   : > { %v5258_v24 = vpop.permute.xlu1 %5257  ;;  %v5082_v25 = vpop.permute.xlu0 %5081 }
0x12cc   : > { %v5098_v38 = vsel %vm2830_vm2, %v5097_v9, %v5082_v25  ;;  %v5278_v52 = vsel %vm2826_vm15, %v5277_v10, %v5258_v24  ;;  %v6617_v9 = vld [vmem:[%s7949_s19 + $0x28] sm:$0xff]  }
0x12cf   : > { %v5261_v33 = vpop.permute.xlu1 %5260  ;;  %v5085_v34 = vpop.permute.xlu0 %5084 }
0x12d0   : > { %v5099_v41 = vsel %vm2832_vm1, %v5098_v38, %v5085_v34  ;;  %v5279_v59 = vsel %vm2828_vm0, %v5278_v52, %v5261_v33  ;;  %v6619_v38 = vld [vmem:[%s7949_s19 + $0x38] sm:$0xff]  }
0x12d3   : > { %v5264_v42 = vpop.permute.xlu1 %5263  ;;  %v5088_v45 = vpop.permute.xlu0 %5087 }
0x12d4   : > { %v5100_v44 = vsel %vm8046_vm6, %v5099_v41, %v5088_v45  ;;  %v5280_v54 = vsel %vm2830_vm2, %v5279_v59, %v5264_v42 }
0x12d5   : > { %v5101_v11 = vmul.f32 %v6660_v48, %v5100_v44 }
0x12d7   : > { %v5102_v39 = vpack.c.bf16 %v5101_v11, %v5101_v11  ;;  %v5267_v51 = vpop.permute.xlu1 %5266 }
0x12d8   : > { %v5281_v55 = vsel %vm2832_vm1, %v5280_v54, %v5267_v51 }
0x12d9   : > { %6408 = vmatmul.mubr.msk.bf16.vlgmr.msra.gmra.mrb[60].mxu0 %vm8048_vm11, %v5102_v39 }
0x12da   : > { %6432 = vmatprep.mubr.msk.bf16.mxu0 %vm6762_vm4, %v6761_v27  ;;  %6429 = vmatpush3.bf16.msra.mxu0 %v6612_v63 }
0x12db   : > { %v5270_v56 = vpop.permute.xlu1 %5269  ;;  %6430 = vmatprep.subr.bf16.mxu0 %v6761_v27 }
0x12dc   : > { %v5282_v18 = vsel %vm8049_vm12, %v5281_v55, %v5270_v56 }
0x12dd   : > { %v5283_v57 = vmul.f32 %v6660_v48, %v5282_v18 }
0x12de   : > { %6431 = vmatpush3.bf16.msra.mxu0 %v6613_v61 }
0x12df   : > { %v5284_v49 = vpack.c.bf16 %v5283_v57, %v5283_v57  ;;  %6436 = vmatprep.subr.bf16.mxu0 %v6761_v27 }
0x12e1   : > { %6425 = vmatmul.mubr.msk.bf16.vlgmr.msra.gmra.mrb[76].mxu1 %vm8050_vm13, %v5284_v49 }
0x12e2   : > { %6452 = vmatprep.mubr.msk.bf16.mxu1 %vm6762_vm4, %v6761_v27  ;;  %6445 = vmatpush3.bf16.msra.mxu1 %v6616_v35 }
0x12e3   : > { %6446 = vmatprep.subr.bf16.mxu1 %v6761_v27 }
0x12e6   : > { %6447 = vmatpush3.bf16.msra.mxu1 %v6617_v9 }
0x12e7   : > { %6448 = vmatprep.subr.bf16.mxu1 %v6761_v27 }
0x12ea   : > { %6449 = vmatpush3.bf16.msra.mxu1 %v6618_v36 }
0x12eb   : > { %6450 = vmatprep.subr.bf16.mxu1 %v6761_v27 }
0x12ee   : > { %6451 = vmatpush3.bf16.msra.mxu1 %v6619_v38 }
0x13ac   : > { %v5143_v62 = vpop.f32.mrb[60].mxu0 }
0x13ad   : > { %v6409_v1 = vpop.f32.mrb[61].mxu0 }
0x13ae   : > { %v5146_v0 = vpop.f32.mrb[62].mxu0 }
0x13af   : > { %v6410_v2 = vpop.f32.mrb[63].mxu0 }
0x13b4   : > { %v5322_v53 = vpop.f32.mrb[76].mxu1 }
0x13b5   : > { %v5328_v60 = vsel %vm2692_vm7, %v5143_v62, %v5322_v53  ;;  %v6426_v13 = vpop.f32.mrb[77].mxu1 }
0x13b6   : > { %v5329_v3 = vpack.c.bf16 %v5328_v60, %v5328_v60  ;;  %v5325_v4 = vpop.f32.mrb[78].mxu1 }
0x13b7   : > { %v6427_v5 = vpop.f32.mrb[79].mxu1 }
0x13b8   : > { %6433 = vmatmul.mubr.msk.bf16.vlgmr.msra.gmra.mrb[64].mxu0 %vm1113_vm5, %v5329_v3  ;;  %v5958_v5 = vld [vmem:[%s7950_s20 + $0x1] ss:$0 sm:$0xff] }
0x13b9   : > { %6440 = vmatprep.mubr.msk.bf16.mxu0 %vm6762_vm4, %v6761_v27  ;;  %6437 = vmatpush3.bf16.msra.mxu0 %v6614_v22  ;;  %v6621_v22 = vld [vmem:[%s7953_s23 + $0x8] sm:$0xff]  }
0x13ba   : > { %6438 = vmatprep.subr.bf16.mxu0 %v6761_v27 }
0x148b   : > { %v5392_v6 = vpop.f32.mrb[64].mxu0 }
0x148c   : > { %v5393_v8 = vadd.f32 %v5932_v43, %v5392_v6  ;;  %v6434_v12 = vpop.f32.mrb[65].mxu0 }
0x148d   : > { %v5395_v14 = vpop.f32.mrb[66].mxu0 }
0x148e   : > { %v7819_v15 = vadd.f32 %v5393_v8, %v7491_v29  ;;  %v6435_v16 = vpop.f32.mrb[67].mxu0  ;;  %v6615_v29 = vld [vmem:[%s7947_s17 + $0x18] sm:$0xff]  }
0x148f   : > { %6439 = vmatpush3.bf16.msra.mxu0 %v6615_v29 }
0x1490   : > { %v5403_v17 = vsel %vm1068_vm3, %v7819_v15, 0.0  ;;  %6456 = vmatprep.subr.bf16.mxu0 %v6761_v27 }
0x1491   : > { %5404 = vadd.xlane.f32.xlu0 %v5403_v17 }
0x151e   : > { %v5405_v19 = vpop.xlane.xlu0 %5404 }
0x151f   : > { %v5406_v20 = vmul.f32 0.03125, %v5405_v19 }
0x1521   : > { %v5407_v21 = vsub.f32 %v7819_v15, %v5406_v20 }
0x1523   : > { %v5408_v58 = vmul.f32 %v5407_v21, %v5407_v21 }
0x1525   : > { %v5409_v7 = vsel %vm1068_vm3, %v5408_v58, 0.0 }
0x1526   : > { %5410 = vadd.xlane.f32.xlu1 %v5409_v7  ;;  %v6620_v7 = vld [vmem:[%s7953_s23] sm:$0xff]  }
0x15b3   : > { %v5411_v23 = vpop.xlane.xlu1 %5410 }
0x15b4   : > { %v5412_v32 = vmul.f32 0.03125, %v5411_v23 }
0x15b6   : > { %v5413_v24 = vadd.f32 1e-05, %v5412_v32 }
0x15b8   : > { %6652 = vrsqrt.f32 %v5413_v24  ;;  %v5612_v24 = vld [vmem:[%s7951_s21] sm:$0x1] }
0x15c2   : > { %v6653_v25 = vpop.eup %6652 }
0x15c3   : > { %v5415_v28 = vmul.f32 %v6653_v25, %v5407_v21 }
0x15c5   : > { %v5422_v31 = vmul.f32 %v5938_v26, %v5415_v28  ;;  %v5613_v26 = vld [vmem:[%s7952_s22] sm:$0x1] }
0x15c7   : > { %v5429_v33 = vadd.f32 %v5939_v30, %v5422_v31 }
0x15c9   : > { %v5430_v34 = vpack.c.bf16 %v5429_v33, %v5429_v33 }
0x15cb   : > { %6441 = vmatmul.mubr.msk.bf16.vlgmr.msra.gmra.mrb[68].mxu0 %vm1113_vm5, %v5430_v34 }
0x15cc   : > { %6460 = vmatprep.mubr.msk.bf16.mxu0 %vm6762_vm4, %v6761_v27  ;;  %vm5614_vm4 = vcmask 253952   ;;  %6457 = vmatpush3.bf16.msra.mxu0 %v6620_v7 }
0x15cd   : > { %6458 = vmatprep.subr.bf16.mxu0 %v6761_v27  ;;  %v5635_v27 = vld [vmem:[%s7954_s24] sm:$0x1] }
0x15d0   : > { %6459 = vmatpush3.bf16.msra.mxu0 %v6621_v22 }
0x169e   : > { %v5493_v41 = vpop.f32.mrb[68].mxu0 }
0x169f   : > { %v5494_v42 = vadd.f32 %v5945_v40, %v5493_v41  ;;  %v6442_v45 = vpop.f32.mrb[69].mxu0 }
0x16a0   : > { %v5496_v46 = vpop.f32.mrb[70].mxu0 }
0x16a1   : > { %v5500_v44 = vmul.f32 0.70710677, %v5494_v42  ;;  %v6443_v47 = vpop.f32.mrb[71].mxu0  ;;  %v5499_v60 = vmul.f32 0.5, %v5494_v42 }
0x16a3   : > { %v5503_v48 = vand.u32 2147483647, %v5500_v44  ;;  %vm5501_vm3 = vcmp.ge.f32.partialorder %v5500_v44, 0.0 }
0x16a4   : > { %v5502_v2 = vsel %vm5501_vm3, 1.0, %v6778_v37 }
0x16a5   : > { %v5504_v11 = vmul.f32 0.3275911, %v5503_v48  ;;  %v5517_v10 = vsub.f32 0.0, %v5503_v48 }
0x16a7   : > { %v5505_v50 = vadd.f32 1.0, %v5504_v11  ;;  %v5518_v51 = vmul.f32 %v5517_v10, %v5503_v48 }
0x16a9   : > { %6654 = vrcp.f32 %v5505_v50  ;;  %v5519_v54 = vmul.f32 1.442695, %v5518_v51 }
0x16ab   : > { %6656 = vpow2.f32 %v5519_v54 }
0x16b3   : > { %v6655_v39 = vpop.eup %6654 }
0x16b4   : > { %v5508_v52 = vmul.f32 1.0614054, %v6655_v39 }
0x16b5   : > { %v6657_v62 = vpop.eup %6656 }
0x16b6   : > { %v5509_v59 = vadd.f32 -1.4531521, %v5508_v52 }
0x16b8   : > { %v5510_v55 = vmul.f32 %v6655_v39, %v5509_v59 }
0x16ba   : > { %v5511_v56 = vadd.f32 1.4214138, %v5510_v55 }
0x16bc   : > { %v5512_v18 = vmul.f32 %v6655_v39, %v5511_v56 }
0x16be   : > { %v5513_v57 = vadd.f32 -0.28449672, %v5512_v18 }
0x16c0   : > { %v5514_v49 = vmul.f32 %v6655_v39, %v5513_v57 }
0x16c2   : > { %v5515_v63 = vadd.f32 0.2548296, %v5514_v49 }
0x16c4   : > { %v5516_v61 = vmul.f32 %v6655_v39, %v5515_v63 }
0x16c6   : > { %v5521_v1 = vmul.f32 %v6657_v62, %v5516_v61 }
0x16c8   : > { %v5522_v0 = vsub.f32 1.0, %v5521_v1 }
0x16ca   : > { %v5523_v53 = vmul.f32 %v5522_v0, %v5502_v2 }
0x16cc   : > { %v5524_v13 = vadd.f32 1.0, %v5523_v53 }
0x16ce   : > { %v5525_v3 = vmul.f32 %v5524_v13, %v5499_v60 }
0x16d0   : > { %v5526_v4 = vpack.c.bf16 %v5525_v3, %v5525_v3 }
0x16d2   : > { %6453 = vmatmul.mubr.msk.bf16.vlgmr.msra.gmra.mrb[80].mxu1 %vm3297_vm10, %v5526_v4 }
0x17a5   : > { %v5605_v43 = vpop.f32.mrb[80].mxu1 }
0x17a6   : > { %v5606_v6 = vadd.f32 %v5958_v5, %v5605_v43  ;;  %v6454_v8 = vpop.f32.mrb[81].mxu1 }
0x17a7   : > { %v5608_v12 = vpop.f32.mrb[82].mxu1 }
0x17a8   : > { %v6455_v14 = vpop.f32.mrb[83].mxu1  ;;  %v5611_v16 = vadd.f32 %v5606_v6, %v7819_v15 }
0x17aa   : > { %v5615_v37 = vsel %vm5614_vm4, %v5611_v16, 0.0 }
0x17ab   : > { %5616 = vadd.xlane.f32.xlu0 %v5615_v37 }
0x1838   : > { %v5617_v17 = vpop.xlane.xlu0 %5616 }
0x1839   : > { %v5618_v19 = vmul.f32 0.03125, %v5617_v17 }
0x183b   : > { %v5619_v20 = vsub.f32 %v5611_v16, %v5618_v19 }
0x183d   : > { %v5620_v21 = vmul.f32 %v5619_v20, %v5619_v20 }
0x183f   : > { %v5621_v58 = vsel %vm5614_vm4, %v5620_v21, 0.0 }
0x1840   : > { %5622 = vadd.xlane.f32.xlu0 %v5621_v58 }
0x18cd   : > { %v5623_v15 = vpop.xlane.xlu0 %5622 }
0x18ce   : > { %v5624_v29 = vmul.f32 0.03125, %v5623_v15 }
0x18d0   : > { %v5625_v23 = vadd.f32 1e-05, %v5624_v29 }
0x18d2   : > { %6658 = vrsqrt.f32 %v5625_v23 }
0x18dc   : > { %v6659_v32 = vpop.eup %6658 }
0x18dd   : > { %v5627_v25 = vmul.f32 %v6659_v32, %v5619_v20 }
0x18df   : > { %v5628_v28 = vmul.f32 %v5627_v25, %v5612_v24 }
0x18e1   : > { %v5629_v30 = vadd.f32 %v5628_v28, %v5613_v26 }
0x18e3   : > { %v5630_v31 = vpack.c.bf16 %v5629_v30, %v5629_v30 }
0x18e5   : > { %6461 = vmatmul.mubr.msk.bf16.vlgmr.msra.gmra.mrb[72].mxu0 %vm1113_vm5, %v5630_v31 }
0x19b8   : > { %v5685_v33 = vpop.f32.mrb[72].mxu0 }
0x19b9   : > { %v5686_v34 = vadd.f32 %v5685_v33, %v5635_v27  ;;  %v6462_v35 = vpop.f32.mrb[73].mxu0 }
0x19ba   : > { %v5688_v9 = vpop.f32.mrb[74].mxu0 }
0x19bb   : > { %5691 = vst [vmem:[%s771_s5] sm:$0x1] %v5686_v34  ;;  %v6463_v36 = vpop.f32.mrb[75].mxu0 }
0x19bc   : > { %6702 = shalt.err (!%p6699_p7)
}
0x19bd   : > { %s6703_s9 = scalar_lea.hbm %s7888_s27, 16  ;;  %s6707_s29 = scalar_lea.hbm %s7955_s25, 32 }
0x19be   : > { %p6704_p8 = scmp.ne.s32.totalorder %s7888_s27, %s6703_s9  ;;  %p6708_p1 = scmp.lt.u32.totalorder %s7888_s27, %s7955_s25 }
0x19bf   : > { %p6709_p0 = scmp.lt.u32.totalorder %s6707_s29, %s6703_s9  ;;  %p6711_p6 = scmp.lt.u32.totalorder %s6703_s9, %s7888_s27 }
0x19c0   : > { %p6705_p11 = pnand %p6704_p8, %p8051_p9 }
0x19c1   : > { %p6710_p5 = por %p6709_p0, %p6708_p1 }
0x19c2   : > { %p6706_p13 = pneg %p6705_p11 }
0x19c3   : > { %p6712_p10 = por %p6711_p6, %p6710_p5 }
0x19c5   : > { %p6713_p12 = pnand %p6712_p10, %p6706_p13 }
0x19c7   : > { %6716 = shalt.err (!%p6713_p12)
}
0x19c8   : > { %6468 = dma.vmem_to_hbm [thread:$0]  (%p8051_p9), %s7890_s6, 16, %s7888_s27, %s5693_s30  }
0x19c9 PF: > { %s8052_s7 = sld [smem:[#allocation10_spill]]  ;;  %s8053_s8 = sld [smem:[#allocation8_spill]] }
0x19ca   : > { %s8054_s28 = sld [smem:[#allocation13_spill]] }
0x19cf   : > { %p6480_p2 = scmp.ge.s32.totalorder %s8052_s7, 2  ;;  %s5717_s5 = sand.u32 1, %s8053_s8  }
0x19d0   : > { %p8055_p3 = scmp.ne.s32.totalorder %s8054_s28, 0  ;;  %s5718_s3 = scalar_lea.sflag [#allocation4], %s5717_s5 }
0x19d2   : > { %p6475_p4 = pnand %p6480_p2, %p8055_p3 }
0x19d4   : > { %6738 = dma.done.wait (!%p6475_p4), %s5718_s3, 16  }
0x19d5   : > { %6740 = vsyncadd (!%p6475_p4), %s5718_s3, 4294967280  ;;  %s8056_s30 = sld [smem:[#allocation11_spill]]  ;;  %s8057_s9 = sld [smem:[#allocation9_spill]] }
0x19d6   : > { %s8058_s6 = sld [smem:[#allocation12_spill]]  ;;  %s8059_s29 = smov %s6747_s2 }
0x19db   : > { %p36_p7 = scmp.ge.s32.totalorder %s8056_s30, 4   ;;  %s8060_s2 = smov %s8057_s9 }
0x19dd   :  { %38 = sbr.rel (!%p36_p7) target bundleno = 15 (0xf), region = 172 }
0x19e4   :  { %5722 = vsyncpa [#allocation3], 1 }
0x19e5   :  { %5724 = vsyncpa [#allocation3 + $0x1], 1 }
0x19e6   :  { %5725 = vsyncpa [#allocation4], 1 }
0x19e7   :  { %5727 = vsyncpa [#allocation4 + $0x1], 1 }

</bundles_post_ra>
